<compile_context>
chip_gen: v5e
topology: v5e:2x2
jax: 0.10.0
libtpu: 0.0.40
codegen_flags: <defaults>
</compile_context>

<pallas_src>
import functools

import jax
import jax.numpy as jnp
from jax.experimental import pallas as pl
from jax.experimental.pallas import tpu as pltpu

LANE = 128
ACT_DTYPE = jnp.bfloat16        # inter-block activation storage dtype


# ----------------------------- helpers -----------------------------

def make_divisible(v, divisor=8, min_value=None):
    if min_value is None:
        min_value = divisor
    new_v = max(min_value, int(v + divisor / 2) // divisor * divisor)
    if new_v < 0.9 * v:
        new_v += divisor
    return new_v


def _pad_to(x, m):
    return (x + m - 1) // m * m


def _apply_act(y, act):
    if act == "relu":
        return jnp.maximum(y, 0.0)
    if act == "hard_swish":
        return y * jnp.clip(y + 3.0, 0.0, 6.0) * (1.0 / 6.0)
    return y


def _hardsigmoid(x):  # torch F.hardsigmoid
    return jnp.clip(x * (1.0 / 6.0) + 0.5, 0.0, 1.0)


# ----------------------------- conv1 kernel (3x3, stride 2, pad 1) -----------------------------
# The wrapper phase-decomposes the spatially-padded input (xp[a::2, b::2]) so every tap
# inside the kernel is a plain static slice (no strided reads).

def _conv1_kernel(ph_ref, w_ref, b_ref, o_ref, *, Ho, Wo, cin, cout):
    ph = ph_ref[...].reshape(4, Ho + 1, Wo + 1, cin)   # 4 = (row-phase, col-phase)
    w = w_ref[...]                                     # (9, cin, cout) bf16, BN folded
    b = b_ref[...]                                     # (1, cout) f32
    acc = jnp.zeros((Ho * Wo, cout), jnp.float32)
    for kh in range(3):
        for kw in range(3):
            t = ph[(kh % 2) * 2 + (kw % 2)]            # (Ho+1, Wo+1, cin)
            sl = t[kh // 2:kh // 2 + Ho, kw // 2:kw // 2 + Wo, :]
            acc = acc + jnp.dot(
                sl.reshape(Ho * Wo, cin).astype(jnp.bfloat16), w[kh * 3 + kw],
                preferred_element_type=jnp.float32)
    y = _apply_act(acc + b, "hard_swish")
    o_ref[...] = y.reshape(1, Ho, Wo, cout).astype(o_ref.dtype)


def conv1_op(x, w, bias):
    """x: (N, H, W, 3) f32; w: (9, cin_pad, cout_pad) bf16 (BN folded); bias: (1, cout_pad)."""
    N, H, W, _ = x.shape
    cin, cout = w.shape[1], w.shape[2]
    Ho, Wo = H // 2, W // 2
    xp = jnp.pad(x, ((0, 0), (1, 1), (1, 1), (0, 0)))
    phases = jnp.stack([xp[:, a::2, c::2, :] for a in (0, 1) for c in (0, 1)], axis=1)
    phases = jnp.pad(phases, ((0, 0), (0, 0), (0, 0), (0, 0), (0, cin - phases.shape[-1])))
    phases = phases.reshape(N, 4 * (Ho + 1), Wo + 1, cin)
    return pl.pallas_call(
        functools.partial(_conv1_kernel, Ho=Ho, Wo=Wo, cin=cin, cout=cout),
        grid=(N,),
        in_specs=[
            pl.BlockSpec((1, 4 * (Ho + 1), Wo + 1, cin), lambda n: (n, 0, 0, 0)),
            pl.BlockSpec((9, cin, cout), lambda n: (0, 0, 0)),
            pl.BlockSpec((1, cout), lambda n: (0, 0)),
        ],
        out_specs=pl.BlockSpec((1, Ho, Wo, cout), lambda n: (n, 0, 0, 0)),
        out_shape=jax.ShapeDtypeStruct((N, Ho, Wo, cout), ACT_DTYPE),
        compiler_params=pltpu.CompilerParams(dimension_semantics=("parallel",)),
    )(phases, w, bias)


# ----------------------------- fused inverted-residual block kernel -----------------------------

def _block_kernel(*refs, k, sh, act, use_se, shortcut, H, W, cin, cmid, cout):
    if use_se:
        (x_ref, we_ref, be_ref, wd_ref, bd_ref,
         w1_ref, b1_ref, w2_ref, b2_ref, wl_ref, bl_ref, o_ref) = refs
    else:
        (x_ref, we_ref, be_ref, wd_ref, bd_ref, wl_ref, bl_ref, o_ref) = refs

    p = (k - 1) // 2
    Ho = (H + 2 * p - k) // sh + 1
    Wo = W                                          # stride along W is always 1

    x = x_ref[...].reshape(H, W, cin)               # bf16, padded channels are zero

    # --- expand 1x1 conv + folded BN + act (MXU, bf16 inputs, f32 accumulate) ---
    y = jnp.dot(x.reshape(H * W, cin), we_ref[...],
                preferred_element_type=jnp.float32) + be_ref[...]
    y = _apply_act(y, act).reshape(H, W, cmid)

    # --- depthwise kxk conv, stride (sh, 1), pad p, folded BN + act (VPU taps) ---
    zr = jnp.zeros((p, W, cmid), jnp.float32)
    yp = jnp.concatenate([zr, y, zr], axis=0)               # (H+2p, W, cmid)
    zc = jnp.zeros((H + 2 * p, p, cmid), jnp.float32)
    yp = jnp.concatenate([zc, yp, zc], axis=1)              # (H+2p, W+2p, cmid)
    wd = wd_ref[...]                                        # (k*k, cmid) f32, BN folded
    bd = bd_ref[...].reshape(1, 1, cmid)
    if sh == 2:
        # One-time H-phase split (2 copies) instead of per-tap strided reshapes.
        ph = yp.reshape((H + 2 * p) // 2, 2, W + 2 * p, cmid)
        phases = (ph[:, 0], ph[:, 1])
    acc = jnp.zeros((Ho, Wo, cmid), jnp.float32)
    for kh in range(k):
        for kw in range(k):
            if sh == 1:
                tap = yp[kh:kh + Ho, kw:kw + Wo, :]
            else:
                tap = phases[kh % 2][kh // 2:kh // 2 + Ho, kw:kw + Wo, :]
            acc = acc + tap * wd[kh * k + kw].reshape(1, 1, cmid)
    y = _apply_act(acc + bd, act)

    # --- SE: global avg pool -> fc -> relu -> fc -> hardsigmoid -> scale ---
    if use_se:
        pooled = jnp.sum(y.reshape(Ho * Wo, cmid), axis=0, keepdims=True) * (1.0 / (Ho * Wo))
        h = jnp.dot(pooled, w1_ref[...], preferred_element_type=jnp.float32) + b1_ref[...]
        h = jnp.maximum(h, 0.0)
        s = jnp.dot(h, w2_ref[...], preferred_element_type=jnp.float32) + b2_ref[...]
        y = y * _hardsigmoid(s).reshape(1, 1, cmid)

    # --- linear 1x1 conv + folded BN (no act) + optional residual add ---
    z = jnp.dot(y.reshape(Ho * Wo, cmid).astype(jnp.bfloat16), wl_ref[...],
                preferred_element_type=jnp.float32) + bl_ref[...]
    if shortcut:                                    # stride 1 and cin == cout
        z = z + x.reshape(H * W, cin).astype(jnp.float32)
    o_ref[...] = z.reshape(1, Ho, Wo, cout).astype(o_ref.dtype)


def residual_block(x, bp):
    N, H, W, cin = x.shape
    cmid = bp["we"].shape[1]
    cout = bp["wl"].shape[1]
    k, sh = bp["k"], bp["stride"][0]
    p = (k - 1) // 2
    Ho = (H + 2 * p - k) // sh + 1
    use_se = bp["use_se"]
    assert sh == 1 or H % 2 == 0

    args = [x, bp["we"], bp["be"], bp["wd"], bp["bd"]]
    in_specs = [
        pl.BlockSpec((1, H, W, cin), lambda n: (n, 0, 0, 0)),
        pl.BlockSpec((cin, cmid), lambda n: (0, 0)),
        pl.BlockSpec((1, cmid), lambda n: (0, 0)),
        pl.BlockSpec((k * k, cmid), lambda n: (0, 0)),
        pl.BlockSpec((1, cmid), lambda n: (0, 0)),
    ]
    if use_se:
        cr = bp["w1"].shape[1]
        args += [bp["w1"], bp["b1"], bp["w2"], bp["b2"]]
        in_specs += [
            pl.BlockSpec((cmid, cr), lambda n: (0, 0)),
            pl.BlockSpec((1, cr), lambda n: (0, 0)),
            pl.BlockSpec((cr, cmid), lambda n: (0, 0)),
            pl.BlockSpec((1, cmid), lambda n: (0, 0)),
        ]
    args += [bp["wl"], bp["bl"]]
    in_specs += [
        pl.BlockSpec((cmid, cout), lambda n: (0, 0)),
        pl.BlockSpec((1, cout), lambda n: (0, 0)),
    ]
    kernel = functools.partial(
        _block_kernel, k=k, sh=sh, act=bp["act"], use_se=use_se,
        shortcut=bp["shortcut"], H=H, W=W, cin=cin, cmid=cmid, cout=cout)
    return pl.pallas_call(
        kernel,
        grid=(N,),
        in_specs=in_specs,
        out_specs=pl.BlockSpec((1, Ho, W, cout), lambda n: (n, 0, 0, 0)),
        out_shape=jax.ShapeDtypeStruct((N, Ho, W, cout), ACT_DTYPE),
        compiler_params=pltpu.CompilerParams(dimension_semantics=("parallel",)),
    )(*args)


# ----------------------------- conv2 (1x1) + 2x2 max-pool fused kernel -----------------------------

def _conv2_pool_kernel(xe_ref, xo_ref, w_ref, b_ref, o_ref, *, H, Wo, cin, cout):
    w = w_ref[...]
    b = b_ref[...]

    def branch(xv):                                  # xv: (H, Wo, cin) = one W-phase
        v = jnp.dot(xv.reshape(H * Wo, cin), w,
                    preferred_element_type=jnp.float32) + b
        v = _apply_act(v, "hard_swish").reshape(H // 2, 2, Wo, cout)
        return jnp.max(v, axis=1)                    # pool over H pairs

    ye = branch(xe_ref[...].reshape(H, Wo, cin))
    yo = branch(xo_ref[...].reshape(H, Wo, cin))
    o_ref[...] = jnp.maximum(ye, yo).reshape(1, H // 2, Wo, cout)   # pool over W pairs


def conv2_maxpool(x, w, bias):
    N, H, W, cin = x.shape
    cout = w.shape[1]
    Ho, Wo = H // 2, W // 2
    xe = x[:, :, 0::2, :]
    xo = x[:, :, 1::2, :]
    return pl.pallas_call(
        functools.partial(_conv2_pool_kernel, H=H, Wo=Wo, cin=cin, cout=cout),
        grid=(N,),
        in_specs=[
            pl.BlockSpec((1, H, Wo, cin), lambda n: (n, 0, 0, 0)),
            pl.BlockSpec((1, H, Wo, cin), lambda n: (n, 0, 0, 0)),
            pl.BlockSpec((cin, cout), lambda n: (0, 0)),
            pl.BlockSpec((1, cout), lambda n: (0, 0)),
        ],
        out_specs=pl.BlockSpec((1, Ho, Wo, cout), lambda n: (n, 0, 0, 0)),
        out_shape=jax.ShapeDtypeStruct((N, Ho, Wo, cout), jnp.float32),
        compiler_params=pltpu.CompilerParams(dimension_semantics=("parallel",)),
    )(xe, xo, w, bias)


# ----------------------------- parameters (random, BN folded, channel-padded) -----------------------------

class _KeyGen:
    def __init__(self, key):
        self.key = key

    def __call__(self):
        self.key, sub = jax.random.split(self.key)
        return sub


def _fold_bn(kg, c):
    gamma = 1.0 + 0.1 * jax.random.normal(kg(), (c,), jnp.float32)
    beta = 0.1 * jax.random.normal(kg(), (c,), jnp.float32)
    mean = 0.05 * jax.random.normal(kg(), (c,), jnp.float32)
    var = 1.0 + 0.1 * jax.random.uniform(kg(), (c,), jnp.float32)
    scale = gamma / jnp.sqrt(var + 1e-5)
    bias = beta - mean * scale
    return scale, bias


def init_params(seed=0, in_channels=3, scale=0.5):
    kg = _KeyGen(jax.random.PRNGKey(seed))

    def conv_w(shape, fan_in):
        return jax.random.normal(kg(), shape, jnp.float32) * (2.0 / fan_in) ** 0.5

    def pad2(a, r, c):
        return jnp.pad(a, ((0, r - a.shape[0]), (0, c - a.shape[1])))

    def pad_row(a, c):                    # (1, n) -> (1, c)
        return jnp.pad(a, ((0, 0), (0, c - a.shape[1])))

    params = {}
    inplanes = make_divisible(16 * scale)                         # 8
    c1p = _pad_to(inplanes, LANE)
    cin_k = _pad_to(in_channels, 8)
    # conv1: 3x3 stride 2 pad 1, hard_swish ; fold BN scale into weight columns
    w1 = conv_w((3, 3, in_channels, inplanes), 3 * 3 * in_channels)
    s1, b1 = _fold_bn(kg, inplanes)
    w1 = (w1 * s1).reshape(9, in_channels, inplanes)
    w1 = jnp.pad(w1, ((0, 0), (0, cin_k - in_channels), (0, c1p - inplanes)))
    params["conv1"] = {"w": w1.astype(jnp.bfloat16),
                       "b": pad_row(b1.reshape(1, inplanes), c1p)}

    # MobileNetV3-small config (strides = [2, 2, 2, 2], W-stride always 1)
    cfg = [
        [3, 16, 16, True, "relu", (2, 1)],
        [3, 72, 24, False, "relu", (2, 1)],
        [3, 88, 24, False, "relu", 1],
        [5, 96, 40, True, "hard_swish", (2, 1)],
        [5, 240, 40, True, "hard_swish", 1],
        [5, 240, 40, True, "hard_swish", 1],
        [5, 120, 48, True, "hard_swish", 1],
        [5, 144, 48, True, "hard_swish", 1],
        [5, 288, 96, True, "hard_swish", (2, 1)],
        [5, 576, 96, True, "hard_swish", 1],
        [5, 576, 96, True, "hard_swish", 1],
    ]
    blocks = []
    cin = inplanes
    for (k, exp, c, se, act, s) in cfg:
        cmid = make_divisible(scale * exp)
        cout = make_divisible(scale * c)
        stride = (s, s) if isinstance(s, int) else tuple(s)
        cin_p, cmid_p, cout_p = _pad_to(cin, LANE), _pad_to(cmid, LANE), _pad_to(cout, LANE)
        bp = {"k": k, "act": act, "use_se": se, "stride": stride,
              "shortcut": stride == (1, 1) and cin == cout}
        # expand 1x1 (BN scale folded into columns)
        we = conv_w((cin, cmid), cin)
        es, eb = _fold_bn(kg, cmid)
        bp["we"] = pad2(we * es, cin_p, cmid_p).astype(jnp.bfloat16)
        bp["be"] = pad_row(eb.reshape(1, cmid), cmid_p)
        # depthwise kxk (BN scale folded)
        wd = conv_w((k, k, cmid), k * k)
        dsc, dbi = _fold_bn(kg, cmid)
        bp["wd"] = pad_row((wd * dsc).reshape(k * k, cmid), cmid_p)
        bp["bd"] = pad_row(dbi.reshape(1, cmid), cmid_p)
        if se:
            cr = cmid // 4
            cr_p = _pad_to(cr, LANE)
            bp["w1"] = pad2(conv_w((cmid, cr), cmid), cmid_p, cr_p)
            bp["b1"] = pad_row(0.1 * jax.random.normal(kg(), (1, cr), jnp.float32), cr_p)
            bp["w2"] = pad2(conv_w((cr, cmid), cr), cr_p, cmid_p)
            bp["b2"] = pad_row(0.1 * jax.random.normal(kg(), (1, cmid), jnp.float32), cmid_p)
        # linear 1x1 (BN scale folded)
        wl = conv_w((cmid, cout), cmid)
        ls, lb = _fold_bn(kg, cout)
        bp["wl"] = pad2(wl * ls, cmid_p, cout_p).astype(jnp.bfloat16)
        bp["bl"] = pad_row(lb.reshape(1, cout), cout_p)
        blocks.append(bp)
        cin = cout
    params["blocks"] = blocks

    cout2 = make_divisible(scale * 576)                           # 288
    c2p = _pad_to(cout2, LANE)
    wc2 = conv_w((cin, cout2), cin)
    sc2, bc2 = _fold_bn(kg, cout2)
    params["conv2"] = {"w": pad2(wc2 * sc2, _pad_to(cin, LANE), c2p).astype(jnp.bfloat16),
                       "b": pad_row(bc2.reshape(1, cout2), c2p)}
    params["out_channels"] = cout2
    return params


# ----------------------------- forward -----------------------------

def mobilenet_v3_forward(x_nchw, params):
    x = jnp.transpose(x_nchw, (0, 2, 3, 1)).astype(jnp.float32)     # NCHW -> NHWC
    x = conv1_op(x, params["conv1"]["w"], params["conv1"]["b"])     # (N, H/2, W/2, 128) bf16
    for bp in params["blocks"]:
        x = residual_block(x, bp)                                   # fused per-block kernels
    x = conv2_maxpool(x, params["conv2"]["w"], params["conv2"]["b"])
    x = x[..., :params["out_channels"]]                             # drop zero channel padding
    return jnp.transpose(x, (0, 3, 1, 2))                           # NHWC -> NCHW


# ----------------------------- demo -----------------------------

if __name__ == "__main__":
    key = jax.random.PRNGKey(0)
    # PyTorch-style NCHW input (text-recognition style: tall enough to survive 5 H-strides)
    x = jax.random.normal(key, (2, 3, 64, 32), jnp.float32)
    params = init_params(seed=0)
    out = mobilenet_v3_forward(x, params)
    out = jax.block_until_ready(out)
    assert out.shape == (2, 288, 1, 8), out.shape
    assert bool(jnp.all(jnp.isfinite(out)))
    print("KERNEL_OK")
</pallas_src>

<mosaic_0001>
module attributes {stable_mosaic.version = 11 : i64} {
  func.func @_conv1_kernel(%arg0: i32, %arg1: memref<1x132x17x8xf32, #tpu.memory_space<vmem>>, %arg2: memref<9x8x128xbf16, #tpu.memory_space<vmem>>, %arg3: memref<1x128xf32, #tpu.memory_space<vmem>>, %arg4: memref<1x32x16x128xbf16, #tpu.memory_space<vmem>>) attributes {dimension_semantics = [#tpu.dimension_semantics<parallel>], iteration_bounds = array<i64: 2>, scalar_prefetch = 0 : i64, scratch_operands = 0 : i64, tpu.core_type = #tpu.core_type<tc>, window_params = [{transform_indices = @transform_0, window_bounds = array<i64: 1, 132, 17, 8>}, {pipeline_mode = #tpu.pipeline_mode<synchronous>, transform_indices = @transform_1, window_bounds = array<i64: 9, 8, 128>}, {pipeline_mode = #tpu.pipeline_mode<synchronous>, transform_indices = @transform_2, window_bounds = array<i64: 1, 128>}, {transform_indices = @transform_3, window_bounds = array<i64: 1, 32, 16, 128>}]} {
    %c0 = arith.constant 0 : index
    %c0_0 = arith.constant 0 : index
    %c0_1 = arith.constant 0 : index
    %c0_2 = arith.constant 0 : index
    %0 = vector.load %arg1[%c0, %c0_0, %c0_1, %c0_2] : memref<1x132x17x8xf32, #tpu.memory_space<vmem>>, vector<1x132x17x8xf32>
    %1 = vector.shape_cast %0 : vector<1x132x17x8xf32> to vector<4x33x17x8xf32>
    %c0_3 = arith.constant 0 : index
    %c0_4 = arith.constant 0 : index
    %c0_5 = arith.constant 0 : index
    %2 = vector.load %arg2[%c0_3, %c0_4, %c0_5] : memref<9x8x128xbf16, #tpu.memory_space<vmem>>, vector<9x8x128xbf16>
    %c0_6 = arith.constant 0 : index
    %c0_7 = arith.constant 0 : index
    %3 = vector.load %arg3[%c0_6, %c0_7] : memref<1x128xf32, #tpu.memory_space<vmem>>, vector<1x128xf32>
    %cst = arith.constant 0.000000e+00 : f32
    %4 = vector.broadcast %cst : f32 to vector<512x128xf32>
    %5 = vector.extract_strided_slice %1 {offsets = [0, 0, 0, 0], sizes = [1, 33, 17, 8], strides = [1, 1, 1, 1]} : vector<4x33x17x8xf32> to vector<1x33x17x8xf32>
    %6 = vector.shape_cast %5 : vector<1x33x17x8xf32> to vector<33x17x8xf32>
    %7 = vector.extract_strided_slice %6 {offsets = [0, 0, 0], sizes = [32, 16, 8], strides = [1, 1, 1]} : vector<33x17x8xf32> to vector<32x16x8xf32>
    %8 = vector.shape_cast %7 : vector<32x16x8xf32> to vector<512x8xf32>
    %9 = arith.truncf %8 : vector<512x8xf32> to vector<512x8xbf16>
    %10 = vector.extract_strided_slice %2 {offsets = [0, 0, 0], sizes = [1, 8, 128], strides = [1, 1, 1]} : vector<9x8x128xbf16> to vector<1x8x128xbf16>
    %11 = vector.shape_cast %10 : vector<1x8x128xbf16> to vector<8x128xbf16>
    %cst_8 = arith.constant dense<0.000000e+00> : vector<512x128xf32>
    %12 = tpu.matmul %9, %11, %cst_8 {dimension_numbers = #tpu.dot_dimension_numbers<[1], [0], [0], [1], [0, 0, 1, 1], [], []>} : vector<512x8xbf16>, vector<8x128xbf16>, vector<512x128xf32> -> vector<512x128xf32>
    %13 = arith.addf %4, %12 : vector<512x128xf32>
    %14 = vector.extract_strided_slice %1 {offsets = [1, 0, 0, 0], sizes = [1, 33, 17, 8], strides = [1, 1, 1, 1]} : vector<4x33x17x8xf32> to vector<1x33x17x8xf32>
    %15 = vector.shape_cast %14 : vector<1x33x17x8xf32> to vector<33x17x8xf32>
    %16 = vector.extract_strided_slice %15 {offsets = [0, 0, 0], sizes = [32, 16, 8], strides = [1, 1, 1]} : vector<33x17x8xf32> to vector<32x16x8xf32>
    %17 = vector.shape_cast %16 : vector<32x16x8xf32> to vector<512x8xf32>
    %18 = arith.truncf %17 : vector<512x8xf32> to vector<512x8xbf16>
    %19 = vector.extract_strided_slice %2 {offsets = [1, 0, 0], sizes = [1, 8, 128], strides = [1, 1, 1]} : vector<9x8x128xbf16> to vector<1x8x128xbf16>
    %20 = vector.shape_cast %19 : vector<1x8x128xbf16> to vector<8x128xbf16>
    %cst_9 = arith.constant dense<0.000000e+00> : vector<512x128xf32>
    %21 = tpu.matmul %18, %20, %cst_9 {dimension_numbers = #tpu.dot_dimension_numbers<[1], [0], [0], [1], [0, 0, 1, 1], [], []>} : vector<512x8xbf16>, vector<8x128xbf16>, vector<512x128xf32> -> vector<512x128xf32>
    %22 = arith.addf %13, %21 : vector<512x128xf32>
    %23 = vector.extract_strided_slice %1 {offsets = [0, 0, 0, 0], sizes = [1, 33, 17, 8], strides = [1, 1, 1, 1]} : vector<4x33x17x8xf32> to vector<1x33x17x8xf32>
    %24 = vector.shape_cast %23 : vector<1x33x17x8xf32> to vector<33x17x8xf32>
    %25 = vector.extract_strided_slice %24 {offsets = [0, 1, 0], sizes = [32, 16, 8], strides = [1, 1, 1]} : vector<33x17x8xf32> to vector<32x16x8xf32>
    %26 = vector.shape_cast %25 : vector<32x16x8xf32> to vector<512x8xf32>
    %27 = arith.truncf %26 : vector<512x8xf32> to vector<512x8xbf16>
    %28 = vector.extract_strided_slice %2 {offsets = [2, 0, 0], sizes = [1, 8, 128], strides = [1, 1, 1]} : vector<9x8x128xbf16> to vector<1x8x128xbf16>
    %29 = vector.shape_cast %28 : vector<1x8x128xbf16> to vector<8x128xbf16>
    %cst_10 = arith.constant dense<0.000000e+00> : vector<512x128xf32>
    %30 = tpu.matmul %27, %29, %cst_10 {dimension_numbers = #tpu.dot_dimension_numbers<[1], [0], [0], [1], [0, 0, 1, 1], [], []>} : vector<512x8xbf16>, vector<8x128xbf16>, vector<512x128xf32> -> vector<512x128xf32>
    %31 = arith.addf %22, %30 : vector<512x128xf32>
    %32 = vector.extract_strided_slice %1 {offsets = [2, 0, 0, 0], sizes = [1, 33, 17, 8], strides = [1, 1, 1, 1]} : vector<4x33x17x8xf32> to vector<1x33x17x8xf32>
    %33 = vector.shape_cast %32 : vector<1x33x17x8xf32> to vector<33x17x8xf32>
    %34 = vector.extract_strided_slice %33 {offsets = [0, 0, 0], sizes = [32, 16, 8], strides = [1, 1, 1]} : vector<33x17x8xf32> to vector<32x16x8xf32>
    %35 = vector.shape_cast %34 : vector<32x16x8xf32> to vector<512x8xf32>
    %36 = arith.truncf %35 : vector<512x8xf32> to vector<512x8xbf16>
    %37 = vector.extract_strided_slice %2 {offsets = [3, 0, 0], sizes = [1, 8, 128], strides = [1, 1, 1]} : vector<9x8x128xbf16> to vector<1x8x128xbf16>
    %38 = vector.shape_cast %37 : vector<1x8x128xbf16> to vector<8x128xbf16>
    %cst_11 = arith.constant dense<0.000000e+00> : vector<512x128xf32>
    %39 = tpu.matmul %36, %38, %cst_11 {dimension_numbers = #tpu.dot_dimension_numbers<[1], [0], [0], [1], [0, 0, 1, 1], [], []>} : vector<512x8xbf16>, vector<8x128xbf16>, vector<512x128xf32> -> vector<512x128xf32>
    %40 = arith.addf %31, %39 : vector<512x128xf32>
    %41 = vector.extract_strided_slice %1 {offsets = [3, 0, 0, 0], sizes = [1, 33, 17, 8], strides = [1, 1, 1, 1]} : vector<4x33x17x8xf32> to vector<1x33x17x8xf32>
    %42 = vector.shape_cast %41 : vector<1x33x17x8xf32> to vector<33x17x8xf32>
    %43 = vector.extract_strided_slice %42 {offsets = [0, 0, 0], sizes = [32, 16, 8], strides = [1, 1, 1]} : vector<33x17x8xf32> to vector<32x16x8xf32>
    %44 = vector.shape_cast %43 : vector<32x16x8xf32> to vector<512x8xf32>
    %45 = arith.truncf %44 : vector<512x8xf32> to vector<512x8xbf16>
    %46 = vector.extract_strided_slice %2 {offsets = [4, 0, 0], sizes = [1, 8, 128], strides = [1, 1, 1]} : vector<9x8x128xbf16> to vector<1x8x128xbf16>
    %47 = vector.shape_cast %46 : vector<1x8x128xbf16> to vector<8x128xbf16>
    %cst_12 = arith.constant dense<0.000000e+00> : vector<512x128xf32>
    %48 = tpu.matmul %45, %47, %cst_12 {dimension_numbers = #tpu.dot_dimension_numbers<[1], [0], [0], [1], [0, 0, 1, 1], [], []>} : vector<512x8xbf16>, vector<8x128xbf16>, vector<512x128xf32> -> vector<512x128xf32>
    %49 = arith.addf %40, %48 : vector<512x128xf32>
    %50 = vector.extract_strided_slice %1 {offsets = [2, 0, 0, 0], sizes = [1, 33, 17, 8], strides = [1, 1, 1, 1]} : vector<4x33x17x8xf32> to vector<1x33x17x8xf32>
    %51 = vector.shape_cast %50 : vector<1x33x17x8xf32> to vector<33x17x8xf32>
    %52 = vector.extract_strided_slice %51 {offsets = [0, 1, 0], sizes = [32, 16, 8], strides = [1, 1, 1]} : vector<33x17x8xf32> to vector<32x16x8xf32>
    %53 = vector.shape_cast %52 : vector<32x16x8xf32> to vector<512x8xf32>
    %54 = arith.truncf %53 : vector<512x8xf32> to vector<512x8xbf16>
    %55 = vector.extract_strided_slice %2 {offsets = [5, 0, 0], sizes = [1, 8, 128], strides = [1, 1, 1]} : vector<9x8x128xbf16> to vector<1x8x128xbf16>
    %56 = vector.shape_cast %55 : vector<1x8x128xbf16> to vector<8x128xbf16>
    %cst_13 = arith.constant dense<0.000000e+00> : vector<512x128xf32>
    %57 = tpu.matmul %54, %56, %cst_13 {dimension_numbers = #tpu.dot_dimension_numbers<[1], [0], [0], [1], [0, 0, 1, 1], [], []>} : vector<512x8xbf16>, vector<8x128xbf16>, vector<512x128xf32> -> vector<512x128xf32>
    %58 = arith.addf %49, %57 : vector<512x128xf32>
    %59 = vector.extract_strided_slice %1 {offsets = [0, 0, 0, 0], sizes = [1, 33, 17, 8], strides = [1, 1, 1, 1]} : vector<4x33x17x8xf32> to vector<1x33x17x8xf32>
    %60 = vector.shape_cast %59 : vector<1x33x17x8xf32> to vector<33x17x8xf32>
    %61 = vector.extract_strided_slice %60 {offsets = [1, 0, 0], sizes = [32, 16, 8], strides = [1, 1, 1]} : vector<33x17x8xf32> to vector<32x16x8xf32>
    %62 = vector.shape_cast %61 : vector<32x16x8xf32> to vector<512x8xf32>
    %63 = arith.truncf %62 : vector<512x8xf32> to vector<512x8xbf16>
    %64 = vector.extract_strided_slice %2 {offsets = [6, 0, 0], sizes = [1, 8, 128], strides = [1, 1, 1]} : vector<9x8x128xbf16> to vector<1x8x128xbf16>
    %65 = vector.shape_cast %64 : vector<1x8x128xbf16> to vector<8x128xbf16>
    %cst_14 = arith.constant dense<0.000000e+00> : vector<512x128xf32>
    %66 = tpu.matmul %63, %65, %cst_14 {dimension_numbers = #tpu.dot_dimension_numbers<[1], [0], [0], [1], [0, 0, 1, 1], [], []>} : vector<512x8xbf16>, vector<8x128xbf16>, vector<512x128xf32> -> vector<512x128xf32>
    %67 = arith.addf %58, %66 : vector<512x128xf32>
    %68 = vector.extract_strided_slice %1 {offsets = [1, 0, 0, 0], sizes = [1, 33, 17, 8], strides = [1, 1, 1, 1]} : vector<4x33x17x8xf32> to vector<1x33x17x8xf32>
    %69 = vector.shape_cast %68 : vector<1x33x17x8xf32> to vector<33x17x8xf32>
    %70 = vector.extract_strided_slice %69 {offsets = [1, 0, 0], sizes = [32, 16, 8], strides = [1, 1, 1]} : vector<33x17x8xf32> to vector<32x16x8xf32>
    %71 = vector.shape_cast %70 : vector<32x16x8xf32> to vector<512x8xf32>
    %72 = arith.truncf %71 : vector<512x8xf32> to vector<512x8xbf16>
    %73 = vector.extract_strided_slice %2 {offsets = [7, 0, 0], sizes = [1, 8, 128], strides = [1, 1, 1]} : vector<9x8x128xbf16> to vector<1x8x128xbf16>
    %74 = vector.shape_cast %73 : vector<1x8x128xbf16> to vector<8x128xbf16>
    %cst_15 = arith.constant dense<0.000000e+00> : vector<512x128xf32>
    %75 = tpu.matmul %72, %74, %cst_15 {dimension_numbers = #tpu.dot_dimension_numbers<[1], [0], [0], [1], [0, 0, 1, 1], [], []>} : vector<512x8xbf16>, vector<8x128xbf16>, vector<512x128xf32> -> vector<512x128xf32>
    %76 = arith.addf %67, %75 : vector<512x128xf32>
    %77 = vector.extract_strided_slice %1 {offsets = [0, 0, 0, 0], sizes = [1, 33, 17, 8], strides = [1, 1, 1, 1]} : vector<4x33x17x8xf32> to vector<1x33x17x8xf32>
    %78 = vector.shape_cast %77 : vector<1x33x17x8xf32> to vector<33x17x8xf32>
    %79 = vector.extract_strided_slice %78 {offsets = [1, 1, 0], sizes = [32, 16, 8], strides = [1, 1, 1]} : vector<33x17x8xf32> to vector<32x16x8xf32>
    %80 = vector.shape_cast %79 : vector<32x16x8xf32> to vector<512x8xf32>
    %81 = arith.truncf %80 : vector<512x8xf32> to vector<512x8xbf16>
    %82 = vector.extract_strided_slice %2 {offsets = [8, 0, 0], sizes = [1, 8, 128], strides = [1, 1, 1]} : vector<9x8x128xbf16> to vector<1x8x128xbf16>
    %83 = vector.shape_cast %82 : vector<1x8x128xbf16> to vector<8x128xbf16>
    %cst_16 = arith.constant dense<0.000000e+00> : vector<512x128xf32>
    %84 = tpu.matmul %81, %83, %cst_16 {dimension_numbers = #tpu.dot_dimension_numbers<[1], [0], [0], [1], [0, 0, 1, 1], [], []>} : vector<512x8xbf16>, vector<8x128xbf16>, vector<512x128xf32> -> vector<512x128xf32>
    %85 = arith.addf %76, %84 : vector<512x128xf32>
    %86 = vector.broadcast %3 : vector<1x128xf32> to vector<512x128xf32>
    %87 = arith.addf %85, %86 : vector<512x128xf32>
    %cst_17 = arith.constant 3.000000e+00 : f32
    %88 = vector.broadcast %cst_17 : f32 to vector<512x128xf32>
    %89 = arith.addf %87, %88 : vector<512x128xf32>
    %cst_18 = arith.constant 0.000000e+00 : f32
    %cst_19 = arith.constant 6.000000e+00 : f32
    %90 = vector.broadcast %cst_18 : f32 to vector<512x128xf32>
    %91 = arith.maximumf %90, %89 : vector<512x128xf32>
    %92 = vector.broadcast %cst_19 : f32 to vector<512x128xf32>
    %93 = arith.minimumf %92, %91 : vector<512x128xf32>
    %94 = arith.mulf %87, %93 : vector<512x128xf32>
    %cst_20 = arith.constant 0.166666672 : f32
    %95 = vector.broadcast %cst_20 : f32 to vector<512x128xf32>
    %96 = arith.mulf %94, %95 : vector<512x128xf32>
    %97 = vector.shape_cast %96 : vector<512x128xf32> to vector<1x32x16x128xf32>
    %98 = arith.truncf %97 : vector<1x32x16x128xf32> to vector<1x32x16x128xbf16>
    %c0_21 = arith.constant 0 : index
    %c0_22 = arith.constant 0 : index
    %c0_23 = arith.constant 0 : index
    %c0_24 = arith.constant 0 : index
    %99 = vector.load %arg4[%c0_21, %c0_22, %c0_23, %c0_24] : memref<1x32x16x128xbf16, #tpu.memory_space<vmem>>, vector<1x32x16x128xbf16>
    tpu.vector_store %arg4[%c0_21, %c0_22, %c0_23, %c0_24], %98 {strides = array<i32>} : memref<1x32x16x128xbf16, #tpu.memory_space<vmem>>, vector<1x32x16x128xbf16>,
    return
  }
  func.func @transform_0(%arg0: i32) -> (i32, i32, i32, i32) {
    %c0_i32 = arith.constant 0 : i32
    %c0_i32_0 = arith.constant 0 : i32
    %c0_i32_1 = arith.constant 0 : i32
    %c0_i32_2 = arith.constant 0 : i32
    return %arg0, %c0_i32, %c0_i32_0, %c0_i32_1 : i32, i32, i32, i32
  }
  func.func @transform_1(%arg0: i32) -> (i32, i32, i32) {
    %c0_i32 = arith.constant 0 : i32
    %c0_i32_0 = arith.constant 0 : i32
    %c0_i32_1 = arith.constant 0 : i32
    %c0_i32_2 = arith.constant 0 : i32
    return %c0_i32, %c0_i32_0, %c0_i32_1 : i32, i32, i32
  }
  func.func @transform_2(%arg0: i32) -> (i32, i32) {
    %c0_i32 = arith.constant 0 : i32
    %c0_i32_0 = arith.constant 0 : i32
    %c0_i32_1 = arith.constant 0 : i32
    return %c0_i32, %c0_i32_0 : i32, i32
  }
  func.func @transform_3(%arg0: i32) -> (i32, i32, i32, i32) {
    %c0_i32 = arith.constant 0 : i32
    %c0_i32_0 = arith.constant 0 : i32
    %c0_i32_1 = arith.constant 0 : i32
    %c0_i32_2 = arith.constant 0 : i32
    return %arg0, %c0_i32, %c0_i32_0, %c0_i32_1 : i32, i32, i32, i32
  }
}

</mosaic_0001>

<bundles_post_ra>
// kernel: tpu_custom_call.1
= control target key start
LH: loop header
LB: loop body
LE: loop exit
PB: predicated region body
PF: predicated region fallthrough
CT: control target
= control target key end

     0   :  { %8 = vsyncpa [#allocation3], 0  ;;  %s7277_s0 = inlined_call_operand.vmem [shape: f32[2,132,17,8], index: 0, kind: input, shape index: {}]   ;;  %s7278_s1 = inlined_call_operand.vmem [shape: bf16[9,8,128], index: 1, kind: input, shape index: {}]   ;;  %s7279_s2 = inlined_call_operand.vmem [shape: f32[1,128], index: 2, kind: input, shape index: {}]   ;;  %s7280_s3 = inlined_call_operand.hbm [shape: bf16[2,32,16,128], index: 3, kind: output, shape index: {}]  }
   0x1   :  { %10 = vsyncpa [#allocation3 + $0x1], 0  ;;  %s5214_s12 = smov 0   ;;  %s5216_s13 = smov 0  }
   0x2   :  { %s5218_s14 = smov 0   ;;  %s5220_s15 = smov 0  }
   0x3 LB: > { %s5235_s16 = sadd.s32 4294967295, %s5190_s15   ;;  %s4527_s17 = sadd.s32 4294967294, %s5190_s15   ;;  %s5190_s15 = sphi %s5220_s15, %s7632_s15   ;;  %s5186_s14 = sphi %s5218_s14, %s7631_s14   ;;  %s5182_s13 = sphi %s5216_s13, %s7630_s13   ;;  %s5178_s12 = sphi %s5214_s12, %s7629_s12  }
   0x4   : > { %s5239_s18 = sadd.s32 1, %s5190_s15   ;;  %s91_s19 = sadd.s32 1, %s5186_s14 }
   0x5   : > { %s88_s20 = ssub.s32 %s5190_s15, %s5239_s18  ;;  %p101_p0 = scmp.ne.s32.totalorder %s5186_s14, %s5182_s13 }
   0x6   : > { %p89_p1 = scmp.eq.s32.totalorder %s88_s20, 0  ;;  %p102_p2 = scmp.eq.s32.totalorder %s5235_s16, 1 }
   0x7   : > { %p107_p3 = scmp.ne.s32.totalorder %s5182_s13, %s5178_s12  ;;  %p108_p4 = scmp.eq.s32.totalorder %s4527_s17, 1 }
   0x8   : > { %s5250_s21 = scalar_select %p89_p1, %s5186_s14, %s91_s19  }
   0x9   : > { %p5252_p5 = por %p102_p2, %p101_p0  ;;  %p5256_p6 = por %p108_p4, %p107_p3 }
   0xa   : > { %p4530_p7 = scmp.ge.s32.totalorder %s5190_s15, 1  ;;  %p140_p8 = scmp.lt.s32.totalorder %s5190_s15, 3 }
   0xc   : > { %p141_p9 = pnand %p4530_p7, %p140_p8 }
   0xe   : > { %144 = sbr.rel (%p141_p9) target bundleno = 1330 (0x532), region = 32 }
  0x13   : > { %v496_v0 = vld [vmem:[%s7278_s1 + $0x4] sm:$0xf]  ;;  %vm666_vm0 = vcmask 1043456   ;;  %p164_p10 = scmp.lt.s32.totalorder %s5235_s16, 1  ;;  %v497_v2 = vld [vmem:[%s7278_s1 + $0x8] sm:$0xf] }
  0x14   : > { %v668_v1 = vsel %vm666_vm0, %v496_v0, 0  ;;  %v498_v3 = vld [vmem:[%s7278_s1 + $0xc] sm:$0xf]  ;;  %v1557_v4 = vsel %vm666_vm0, %v497_v2, 0  ;;  %v495_v6 = vld [vmem:[%s7278_s1] sm:$0xf] }
  0x15   : > { %5018 = vmatpush.bf16.msra.mxu1 %v668_v1  ;;  %5019 = vmatpush.bf16.msra.mxu2 %v668_v1  ;;  %s165_s30 = scalar_select %p164_p10, %s5235_s16, 1  ;;  %v1921_v5 = vsel %vm666_vm0, %v498_v3, 0  ;;  %v936_v7 = vsel %vm666_vm0, %v495_v6, 0  ;;  %v499_v8 = vld [vmem:[%s7278_s1 + $0x10] sm:$0xf]  ;;  %vm569_vm1 = vcmask 64512  }
  0x16   : > { %5020 = vmatpush.bf16.msra.mxu3 %v668_v1  ;;  %677 = vmatpush.bf16.msra.mxu0 %v668_v1  ;;  %v2285_v9 = vsel %vm666_vm0, %v499_v8, 0  ;;  %vm1203_vm2 = vcmask 1046528   ;;  %s161_s4 = sand.u32 1, %s5182_s13  }
  0x17   : > { %s5021_s8 = smul.u32 3168, %s165_s30  ;;  %s4531_s5 = sshll.u32 %s161_s4, 8 }
  0x18   : > { %s6649_s6 = scalar_lea.vmem [#allocation2], %s4531_s5  ;;  %s4450_s26 = scalar_lea.sflag [#allocation3], %s161_s4 }
  0x19   : > { %1566 = vmatpush.bf16.msrb.mxu2 %v1557_v4  ;;  %945 = vmatpush.bf16.msrb.mxu1 %v936_v7  ;;  %s5287_s11 = scalar_lea.vmem %s7277_s0, %s5021_s8  ;;  %s4462_s24 = sshll.u32 %s6649_s6, 4  ;;  %s4463_s24 = int_to_ptr.vmem [resolvable:$true] %s4462_s24 }
  0x1a   : > { %1930 = vmatpush.bf16.msrb.mxu3 %v1921_v5  ;;  %2294 = vmatpush.bf16.msrb.mxu0 %v2285_v9  ;;  %v285_v10 = vld [vmem:[%s5287_s11 + $0x3d8] sm:$0xff]  ;;  %v286_v11 = vld [vmem:[%s5287_s11 + $0x3e0] sm:$0xff]  ;;  %v287_v22 = vld [vmem:[%s5287_s11 + $0x3f0] sm:$0xff]  ;;  %s5148_s30 = scalar_lea.hbm %s7280_s3, 512 }
  0x1b   : > { %v301_v12 = vld [vmem:[%s5287_s11 + $0x498] sm:$0xff]  ;;  %v5292_v13 = vpack.c.bf16 %v286_v11, %v285_v10  ;;  %v302_v14 = vld [vmem:[%s5287_s11 + $0x4a0] sm:$0xff]  ;;  %v303_v24 = vld [vmem:[%s5287_s11 + $0x4b0] sm:$0xff] }
  0x1c   : > { %v317_v15 = vld [vmem:[%s5287_s11 + $0x558] sm:$0xff]  ;;  %v318_v16 = vld [vmem:[%s5287_s11 + $0x560] sm:$0xff]  ;;  %v5297_v17 = vpack.c.bf16 %v302_v14, %v301_v12  ;;  %v319_v26 = vld [vmem:[%s5287_s11 + $0x570] sm:$0xff] }
  0x1d   : > { %7340 = vst [vmem:[#allocation5_spill] sm:$0xff] %v5292_v13  ;;  %v5299_v18 = vpack.c.bf16 %v318_v16, %v317_v15  ;;  %v269_v19 = vld [vmem:[%s5287_s11 + $0x318] sm:$0xff]  ;;  %v270_v20 = vld [vmem:[%s5287_s11 + $0x320] sm:$0xff]  ;;  %4541 = vmatmul.msk.bf16.vlgmr.msra.gmra.mxu1 %vm569_vm1, %v5292_v13  ;;  %v271_v28 = vld [vmem:[%s5287_s11 + $0x330] sm:$0xff] }
  0x1e   : > { %7341 = vst [vmem:[#allocation6_spill] sm:$0xff] %v5297_v17  ;;  %v537_v21 = vpack.c.bf16 %v270_v20, %v269_v19  ;;  %4549 = vmatmul.msk.bf16.vlgmr.msra.gmra.mxu2 %vm569_vm1, %v5297_v17  ;;  %v288_v23 = vld [vmem:[%s5287_s11 + $0x3f8] sm:$0xff]  ;;  %v289_v34 = vld [vmem:[%s5287_s11 + $0x408] sm:$0xff]  ;;  %v290_v35 = vld [vmem:[%s5287_s11 + $0x410] sm:$0xff] }
  0x1f   : > { %7342 = vst [vmem:[#allocation7_spill] sm:$0xff] %v5299_v18  ;;  %4557 = vmatmul.msk.bf16.vlgmr.msra.gmra.mxu3 %vm569_vm1, %v5299_v18  ;;  %v304_v25 = vld [vmem:[%s5287_s11 + $0x4b8] sm:$0xff]  ;;  %v5318_v30 = vpack.c.bf16 %v288_v23, %v287_v22  ;;  %v305_v36 = vld [vmem:[%s5287_s11 + $0x4c8] sm:$0xff]  ;;  %v306_v37 = vld [vmem:[%s5287_s11 + $0x4d0] sm:$0xff]  ;;  %v5342_v42 = vpack.c.bf16 %v290_v35, %v289_v34 }
  0x20   : > { %4533 = vmatmul.msk.bf16.vlgmr.msra.gmra.mxu0 %vm569_vm1, %v537_v21  ;;  %v320_v27 = vld [vmem:[%s5287_s11 + $0x578] sm:$0xff]  ;;  %v5320_v31 = vpack.c.bf16 %v304_v25, %v303_v24  ;;  %v321_v38 = vld [vmem:[%s5287_s11 + $0x588] sm:$0xff]  ;;  %v322_v39 = vld [vmem:[%s5287_s11 + $0x590] sm:$0xff]  ;;  %v5344_v43 = vpack.c.bf16 %v306_v37, %v305_v36 }
  0x21   : > { %v272_v29 = vld [vmem:[%s5287_s11 + $0x338] sm:$0xff]  ;;  %7343 = vst [vmem:[#allocation8_spill] sm:$0xff] %v5318_v30  ;;  %v5322_v32 = vpack.c.bf16 %v320_v27, %v319_v26  ;;  %v273_v40 = vld [vmem:[%s5287_s11 + $0x348] sm:$0xff]  ;;  %v274_v41 = vld [vmem:[%s5287_s11 + $0x350] sm:$0xff]  ;;  %v5346_v44 = vpack.c.bf16 %v322_v39, %v321_v38 }
  0x22   : > { %7344 = vst [vmem:[#allocation9_spill] sm:$0xff] %v5320_v31  ;;  %v5324_v33 = vpack.c.bf16 %v272_v29, %v271_v28  ;;  %v5348_v45 = vpack.c.bf16 %v274_v41, %v273_v40  ;;  %v291_v46 = vld [vmem:[%s5287_s11 + $0x420] sm:$0xff]  ;;  %v292_v47 = vld [vmem:[%s5287_s11 + $0x428] sm:$0xff]  ;;  %v293_v58 = vld [vmem:[%s5287_s11 + $0x438] sm:$0xff] }
  0x23   : > { %7345 = vst [vmem:[#allocation10_spill] sm:$0xff] %v5322_v32  ;;  %v307_v48 = vld [vmem:[%s5287_s11 + $0x4e0] sm:$0xff]  ;;  %v308_v49 = vld [vmem:[%s5287_s11 + $0x4e8] sm:$0xff]  ;;  %v5366_v54 = vpack.c.bf16 %v292_v47, %v291_v46  ;;  %v309_v60 = vld [vmem:[%s5287_s11 + $0x4f8] sm:$0xff] }
  0x24   : > { %7346 = vst [vmem:[#allocation11_spill] sm:$0xff] %v5324_v33  ;;  %v323_v50 = vld [vmem:[%s5287_s11 + $0x5a0] sm:$0xff]  ;;  %v324_v51 = vld [vmem:[%s5287_s11 + $0x5a8] sm:$0xff]  ;;  %v5368_v55 = vpack.c.bf16 %v308_v49, %v307_v48  ;;  %v325_v62 = vld [vmem:[%s5287_s11 + $0x5b8] sm:$0xff] }
  0x25   : > { %7347 = vst [vmem:[#allocation12_spill] sm:$0xff] %v5342_v42  ;;  %v275_v52 = vld [vmem:[%s5287_s11 + $0x360] sm:$0xff]  ;;  %v276_v53 = vld [vmem:[%s5287_s11 + $0x368] sm:$0xff]  ;;  %v5370_v56 = vpack.c.bf16 %v324_v51, %v323_v50  ;;  %v277_v0 = vld [vmem:[%s5287_s11 + $0x378] sm:$0xff] }
  0x26   : > { %7348 = vst [vmem:[#allocation13_spill] sm:$0xff] %v5344_v43  ;;  %v5372_v57 = vpack.c.bf16 %v276_v53, %v275_v52  ;;  %v294_v59 = vld [vmem:[%s5287_s11 + $0x440] sm:$0xff]  ;;  %v295_v6 = vld [vmem:[%s5287_s11 + $0x450] sm:$0xff]  ;;  %v296_v7 = vld [vmem:[%s5287_s11 + $0x458] sm:$0xff] }
  0x27   : > { %7349 = vst [vmem:[#allocation14_spill] sm:$0xff] %v5346_v44  ;;  %v310_v61 = vld [vmem:[%s5287_s11 + $0x500] sm:$0xff]  ;;  %v5390_v2 = vpack.c.bf16 %v294_v59, %v293_v58  ;;  %v311_v8 = vld [vmem:[%s5287_s11 + $0x510] sm:$0xff]  ;;  %v312_v9 = vld [vmem:[%s5287_s11 + $0x518] sm:$0xff]  ;;  %v5414_v15 = vpack.c.bf16 %v296_v7, %v295_v6 }
  0x28   : > { %7350 = vst [vmem:[#allocation15_spill] sm:$0xff] %v5348_v45  ;;  %v326_v63 = vld [vmem:[%s5287_s11 + $0x5c0] sm:$0xff]  ;;  %v5392_v3 = vpack.c.bf16 %v310_v61, %v309_v60  ;;  %v327_v10 = vld [vmem:[%s5287_s11 + $0x5d0] sm:$0xff]  ;;  %v328_v11 = vld [vmem:[%s5287_s11 + $0x5d8] sm:$0xff]  ;;  %v5416_v16 = vpack.c.bf16 %v312_v9, %v311_v8 }
  0x29   : > { %7351 = vst [vmem:[#allocation16_spill] sm:$0xff] %v5366_v54  ;;  %v278_v1 = vld [vmem:[%s5287_s11 + $0x380] sm:$0xff]  ;;  %v5394_v4 = vpack.c.bf16 %v326_v63, %v325_v62  ;;  %v279_v12 = vld [vmem:[%s5287_s11 + $0x390] sm:$0xff]  ;;  %v280_v14 = vld [vmem:[%s5287_s11 + $0x398] sm:$0xff]  ;;  %v5418_v19 = vpack.c.bf16 %v328_v11, %v327_v10 }
  0x2a   : > { %7352 = vst [vmem:[#allocation17_spill] sm:$0xff] %v5368_v55  ;;  %v5396_v5 = vpack.c.bf16 %v278_v1, %v277_v0  ;;  %v5420_v20 = vpack.c.bf16 %v280_v14, %v279_v12  ;;  %v297_v21 = vld [vmem:[%s5287_s11 + $0x468] sm:$0xff]  ;;  %v298_v22 = vld [vmem:[%s5287_s11 + $0x470] sm:$0xff]  ;;  %v336_v38 = vld [vmem:[%s5287_s11 + $0x638] sm:$0xff] }
  0x2b   : > { %7353 = vst [vmem:[#allocation18_spill] sm:$0xff] %v5370_v56  ;;  %v313_v23 = vld [vmem:[%s5287_s11 + $0x528] sm:$0xff]  ;;  %v314_v24 = vld [vmem:[%s5287_s11 + $0x530] sm:$0xff]  ;;  %v5438_v29 = vpack.c.bf16 %v298_v22, %v297_v21  ;;  %v337_v39 = vld [vmem:[%s5287_s11 + $0x640] sm:$0x1]  ;;  %v2617_v41 = vrot.slane %v336_v38, 1 }
  0x2c   : > { %7354 = vst [vmem:[#allocation19_spill] sm:$0xff] %v5372_v57  ;;  %v329_v25 = vld [vmem:[%s5287_s11 + $0x5e8] sm:$0xff]  ;;  %v330_v26 = vld [vmem:[%s5287_s11 + $0x5f0] sm:$0xff]  ;;  %v5440_v34 = vpack.c.bf16 %v314_v24, %v313_v23  ;;  %v501_v46 = vld [vmem:[%s7278_s1 + $0x18] sm:$0xf]  ;;  %v2619_v47 = vrot.slane %v337_v39, 1 }
  0x2d   : > { %4542 = vmatmul.msk.bf16.gmra.mxu1 %vm569_vm1, %v5318_v30  ;;  %7355 = vst [vmem:[#allocation20_spill] sm:$0xff] %v5390_v2  ;;  %v281_v27 = vld [vmem:[%s5287_s11 + $0x3a8] sm:$0xff]  ;;  %v282_v28 = vld [vmem:[%s5287_s11 + $0x3b0] sm:$0xff]  ;;  %v5442_v35 = vpack.c.bf16 %v330_v26, %v329_v25  ;;  %v3209_v48 = vsel %vm666_vm0, %v501_v46, 0  ;;  %v502_v49 = vld [vmem:[%s7278_s1 + $0x1c] sm:$0xf] }
  0x2e   : > { %4550 = vmatmul.msk.bf16.gmra.mxu2 %vm569_vm1, %v5320_v31  ;;  %7356 = vst [vmem:[#allocation21_spill] sm:$0xff] %v5392_v3  ;;  %v5444_v36 = vpack.c.bf16 %v282_v28, %v281_v27  ;;  %v335_v37 = vld [vmem:[%s5287_s11 + $0x630] sm:$0xff]  ;;  %v3449_v51 = vsel %vm666_vm0, %v502_v49, 0  ;;  %v5469_v52 = vsel %vm1203_vm2, %v2617_v41, %v2619_v47  ;;  %v503_v60 = vld [vmem:[%s7278_s1 + $0x20] sm:$0xf]  ;;  %v300_v63 = vld [vmem:[%s5287_s11 + $0x488] sm:$0xff] }
  0x2f   : > { %4558 = vmatmul.msk.bf16.gmra.mxu3 %vm569_vm1, %v5322_v32  ;;  %7357 = vst [vmem:[#allocation22_spill] sm:$0xff] %v5394_v4  ;;  %v2616_v40 = vrot.slane %v335_v37, 1  ;;  %3218 = vmatpush.bf16.msra.mxu2 %v3209_v48  ;;  %v500_v53 = vld [vmem:[%s7278_s1 + $0x14] sm:$0xf]  ;;  %v3699_v61 = vsel %vm666_vm0, %v503_v60, 0  ;;  %v299_v62 = vld [vmem:[%s5287_s11 + $0x480] sm:$0xff]  ;;  %v1792_v48 = vpack.c.bf16 %v336_v38, %v335_v37 }
  0x30   : > { %4534 = vmatmul.msk.bf16.gmra.mxu0 %vm569_vm1, %v5324_v33  ;;  %7358 = vst [vmem:[#allocation23_spill] sm:$0xff] %v5396_v5  ;;  %3458 = vmatpush.bf16.msra.mxu3 %v3449_v51  ;;  %v2969_v59 = vsel %vm666_vm0, %v500_v53, 0  ;;  %v315_v0 = vld [vmem:[%s5287_s11 + $0x540] sm:$0xff]  ;;  %v316_v1 = vld [vmem:[%s5287_s11 + $0x548] sm:$0xff]  ;;  %v5489_v10 = vpack.c.bf16 %v300_v63, %v299_v62  ;;  %v172_v23 = vld [vmem:[%s5287_s11 + $0x10] sm:$0x1] }
  0x31   : > { %7359 = vst [vmem:[#allocation24_spill] sm:$0xff] %v5414_v15  ;;  %v5465_v50 = vsel %vm1203_vm2, %v2616_v40, %v2617_v41  ;;  %2978 = vmatpush.bf16.msra.mxu1 %v2969_v59  ;;  %3708 = vmatpush.bf16.msra.mxu0 %v3699_v61  ;;  %v331_v6 = vld [vmem:[%s5287_s11 + $0x600] sm:$0xff]  ;;  %v332_v7 = vld [vmem:[%s5287_s11 + $0x608] sm:$0xff]  ;;  %v5491_v11 = vpack.c.bf16 %v316_v1, %v315_v0  ;;  %v1207_v26 = vrot.slane %v172_v23, 1  ;;  %v432_v40 = vld [vmem:[%s5287_s11 + $0x950] sm:$0xff] }
  0x32   : > { %7360 = vst [vmem:[#allocation25_spill] sm:$0xff] %v5416_v16  ;;  %v283_v8 = vld [vmem:[%s5287_s11 + $0x3c0] sm:$0xff]  ;;  %v284_v9 = vld [vmem:[%s5287_s11 + $0x3c8] sm:$0xff]  ;;  %v5493_v12 = vpack.c.bf16 %v332_v7, %v331_v6  ;;  %v173_v53 = vld [vmem:[%s5287_s11 + $0x18] sm:$0xff] }
  0x33   : > { %7361 = vst [vmem:[#allocation26_spill] sm:$0xff] %v5418_v19  ;;  %v5495_v14 = vpack.c.bf16 %v284_v9, %v283_v8  ;;  %v170_v21 = vld [vmem:[%s5287_s11] sm:$0xff]  ;;  %v171_v22 = vld [vmem:[%s5287_s11 + $0x8] sm:$0xff]  ;;  %v1209_v62 = vrot.slane %v173_v53, 1  ;;  %v339_v9 = vld [vmem:[%s5287_s11 + $0x650] sm:$0xff] }
  0x34   : > { %7362 = vst [vmem:[#allocation27_spill] sm:$0xff] %v5420_v20  ;;  %v1204_v24 = vrot.slane %v170_v21, 1  ;;  %v1205_v25 = vrot.slane %v171_v22, 1  ;;  %v431_v39 = vld [vmem:[%s5287_s11 + $0x948] sm:$0xff]  ;;  %v505_v41 = vpack.c.bf16 %v171_v22, %v170_v21  ;;  %v174_v59 = vld [vmem:[%s5287_s11 + $0x20] sm:$0xff]  ;;  %v438_v32 = vld [vmem:[%s5287_s11 + $0x998] sm:$0xff] }
  0x35   : > { %7363 = vst [vmem:[#allocation28_spill] sm:$0xff] %v5438_v29  ;;  %v2156_v49 = vpack.c.bf16 %v432_v40, %v431_v39  ;;  %v175_v60 = vld [vmem:[%s5287_s11 + $0x28] sm:$0x1]  ;;  %v1210_v63 = vrot.slane %v174_v59, 1  ;;  %v433_v21 = vld [vmem:[%s5287_s11 + $0x960] sm:$0xff]  ;;  %v348_v31 = vld [vmem:[%s5287_s11 + $0x698] sm:$0xff] }
  0x36   : > { %7364 = vst [vmem:[#allocation29_spill] sm:$0xff] %v5440_v34  ;;  %v1206_v27 = vsel %vm1203_vm2, %v1204_v24, %v1205_v25  ;;  %v1208_v28 = vsel %vm1203_vm2, %v1205_v25, %v1207_v26  ;;  %v1212_v0 = vrot.slane %v175_v60, 1  ;;  %v338_v8 = vld [vmem:[%s5287_s11 + $0x648] sm:$0xff]  ;;  %v5541_v25 = vpack.c.bf16 %v174_v59, %v173_v53 }
  0x37   : > { %7365 = vst [vmem:[#allocation30_spill] sm:$0xff] %v5442_v35  ;;  %v1428_v47 = vpack.c.bf16 %v1208_v28, %v1206_v27  ;;  %v1211_v6 = vsel %vm1203_vm2, %v1209_v62, %v1210_v63  ;;  %v434_v22 = vld [vmem:[%s5287_s11 + $0x968] sm:$0xff]  ;;  %v1793_v28 = vpack.c.bf16 %v339_v9, %v338_v8  ;;  %v341_v8 = vld [vmem:[%s5287_s11 + $0x660] sm:$0xff] }
  0x38   : > { %7366 = vst [vmem:[#allocation31_spill] sm:$0xff] %v5444_v36  ;;  %v1213_v7 = vsel %vm1203_vm2, %v1210_v63, %v1212_v0  ;;  %v2157_v39 = vpack.c.bf16 %v434_v22, %v433_v21  ;;  %v342_v9 = vld [vmem:[%s5287_s11 + $0x668] sm:$0xff]  ;;  %v435_v21 = vld [vmem:[%s5287_s11 + $0x978] sm:$0xff]  ;;  %v436_v22 = vld [vmem:[%s5287_s11 + $0x980] sm:$0xff] }
  0x39   : > { %7367 = vst [vmem:[#allocation32_spill] sm:$0xff] %v5465_v50  ;;  %v5545_v27 = vpack.c.bf16 %v1213_v7, %v1211_v6  ;;  %v439_v17 = vld [vmem:[%s5287_s11 + $0x9a8] sm:$0xff] }
  0x3a   : > { %7368 = vst [vmem:[#allocation33_spill] sm:$0xff] %v5469_v52 }
  0x3b   : > { %7369 = vst [vmem:[#allocation34_spill] sm:$0xff] %v5489_v10 }
  0x3c   : > { %7370 = vst [vmem:[#allocation35_spill] sm:$0xff] %v5491_v11 }
  0x3d   : > { %4543 = vmatmul.msk.bf16.gmra.mxu1 %vm569_vm1, %v5342_v42  ;;  %7371 = vst [vmem:[#allocation36_spill] sm:$0xff] %v5493_v12 }
  0x3e   : > { %4551 = vmatmul.msk.bf16.gmra.mxu2 %vm569_vm1, %v5344_v43  ;;  %7372 = vst [vmem:[#allocation37_spill] sm:$0xff] %v5495_v14 }
  0x3f   : > { %4559 = vmatmul.msk.bf16.gmra.mxu3 %vm569_vm1, %v5346_v44  ;;  %7375 = vst [vmem:[#allocation40_spill] sm:$0xff] %v5541_v25  ;;  %v437_v44 = vld [vmem:[%s5287_s11 + $0x990] sm:$0xff] }
  0x40   : > { %4535 = vmatmul.msk.bf16.gmra.mxu0 %vm569_vm1, %v5348_v45  ;;  %7376 = vst [vmem:[#allocation41_spill] sm:$0xff] %v5545_v27 }
  0x4d   : > { %4544 = vmatmul.msk.bf16.gmra.mxu1 %vm569_vm1, %v5366_v54 }
  0x4e   : > { %4552 = vmatmul.msk.bf16.gmra.mxu2 %vm569_vm1, %v5368_v55 }
  0x4f   : > { %4560 = vmatmul.msk.bf16.gmra.mxu3 %vm569_vm1, %v5370_v56  ;;  %v345_v56 = vld [vmem:[%s5287_s11 + $0x680] sm:$0xff] }
  0x50   : > { %4536 = vmatmul.msk.bf16.gmra.mxu0 %vm569_vm1, %v5372_v57 }
  0x5d   : > { %4545 = vmatmul.msk.bf16.gmra.mxu1 %vm569_vm1, %v5390_v2 }
  0x5e   : > { %4553 = vmatmul.msk.bf16.gmra.mxu2 %vm569_vm1, %v5392_v3  ;;  %v2159_v3 = vpack.c.bf16 %v438_v32, %v437_v44 }
  0x5f   : > { %4561 = vmatmul.msk.bf16.gmra.mxu3 %vm569_vm1, %v5394_v4 }
  0x60   : > { %4537 = vmatmul.msk.bf16.gmra.mxu0 %vm569_vm1, %v5396_v5 }
  0x6d   : > { %4546 = vmatmul.msk.bf16.gmra.mxu1 %vm569_vm1, %v5414_v15 }
  0x6e   : > { %4554 = vmatmul.msk.bf16.gmra.mxu2 %vm569_vm1, %v5416_v16 }
  0x6f   : > { %4562 = vmatmul.msk.bf16.gmra.mxu3 %vm569_vm1, %v5418_v19 }
  0x70   : > { %4538 = vmatmul.msk.bf16.gmra.mxu0 %vm569_vm1, %v5420_v20  ;;  %v442_v20 = vld [vmem:[%s5287_s11 + $0x9c8] sm:$0xff] }
  0x7d   : > { %4547 = vmatmul.msk.bf16.gmra.mxu1 %vm569_vm1, %v5438_v29 }
  0x7e   : > { %4555 = vmatmul.msk.bf16.gmra.mxu2 %vm569_vm1, %v5440_v34 }
  0x7f   : > { %4563 = vmatmul.msk.bf16.gmra.mxu3 %vm569_vm1, %v5442_v35  ;;  %v2158_v35 = vpack.c.bf16 %v436_v22, %v435_v21 }
  0x80   : > { %4539 = vmatmul.msk.bf16.gmra.mxu0 %vm569_vm1, %v5444_v36  ;;  %v441_v36 = vld [vmem:[%s5287_s11 + $0x9c0] sm:$0xff] }
  0x81   : > { %v2161_v5 = vpack.c.bf16 %v442_v20, %v441_v36 }
  0x8d   : > { %4548 = vmatmul.msk.bf16.gmra.mxu1 %vm569_vm1, %v5489_v10  ;;  %v440_v10 = vld [vmem:[%s5287_s11 + $0x9b0] sm:$0xff] }
  0x8e   : > { %4556 = vmatmul.msk.bf16.gmra.mxu2 %vm569_vm1, %v5491_v11  ;;  %v2160_v42 = vpack.c.bf16 %v440_v10, %v439_v17 }
  0x8f   : > { %4564 = vmatmul.msk.bf16.gmra.mxu3 %vm569_vm1, %v5493_v12 }
  0x90   : > { %4540 = vmatmul.msk.bf16.gmra.mxu0 %vm569_vm1, %v5495_v14  ;;  %v351_v14 = vld [vmem:[%s5287_s11 + $0x6b0] sm:$0xff] }
  0x9a   : > { %v5512_v46 = vpop.f32.mrf.mxu1 }
  0x9d   : > { %v5514_v51 = vpop.f32.mrf.mxu0  ;;  %4565 = vmatmul.msk.bf16.vlgmr.msrb.gmra.mxu1 %vm569_vm1, %v505_v41  ;;  %v176_v41 = vld [vmem:[%s5287_s11 + $0x30] sm:$0xff] }
  0x9e   : > { %4597 = vmatmul.msk.bf16.vlgmr.msrb.gmra.mxu2 %vm569_vm1, %v1428_v47  ;;  %v177_v47 = vld [vmem:[%s5287_s11 + $0x38] sm:$0xff]  ;;  %v1214_v60 = vrot.slane %v176_v41, 1 }
  0x9f   : > { %4629 = vmatmul.msk.bf16.vlgmr.msrb.gmra.mxu3 %vm569_vm1, %v1792_v48  ;;  %v178_v48 = vld [vmem:[%s5287_s11 + $0x40] sm:$0x1]  ;;  %v1215_v62 = vrot.slane %v177_v47, 1  ;;  %v5576_v58 = vpack.c.bf16 %v177_v47, %v176_v41  ;;  %v179_v41 = vld [vmem:[%s5287_s11 + $0x48] sm:$0xff]  ;;  %v180_v47 = vld [vmem:[%s5287_s11 + $0x50] sm:$0xff] }
  0xa0   : > { %4661 = vmatmul.msk.bf16.vlgmr.msrb.gmra.mxu0 %vm569_vm1, %v2156_v49  ;;  %v1217_v63 = vrot.slane %v178_v48, 1  ;;  %v1220_v21 = vrot.slane %v180_v47, 1  ;;  %v5611_v34 = vpack.c.bf16 %v180_v47, %v179_v41 }
  0xa1   : > { %v5523_v61 = vpop.f32.mrf.mxu2  ;;  %v1216_v6 = vsel %vm1203_vm2, %v1214_v60, %v1215_v62  ;;  %7379 = vst [vmem:[#allocation44_spill] sm:$0xff] %v5576_v58  ;;  %v1794_v60 = vpack.c.bf16 %v342_v9, %v341_v8  ;;  %v1219_v9 = vrot.slane %v179_v41, 1  ;;  %v183_v41 = vld [vmem:[%s5287_s11 + $0x68] sm:$0xff] }
  0xa2   : > { %v5525_v37 = vpop.f32.mrf.mxu3  ;;  %v5527_v38 = vpop.f32.mrf.mxu1  ;;  %v1218_v7 = vsel %vm1203_vm2, %v1215_v62, %v1217_v63  ;;  %v181_v63 = vld [vmem:[%s5287_s11 + $0x58] sm:$0x1]  ;;  %7383 = vst [vmem:[#allocation48_spill] sm:$0xff] %v5611_v34 }
  0xa3   : > { %7373 = vst [vmem:[#allocation38_spill] sm:$0xff] %v5525_v37  ;;  %v5580_v12 = vpack.c.bf16 %v1218_v7, %v1216_v6  ;;  %v1222_v22 = vrot.slane %v181_v63, 1  ;;  %v447_v37 = vld [vmem:[%s5287_s11 + $0xa08] sm:$0xff] }
  0xa5   : > { %v5529_v1 = vpop.f32.mrf.mxu0  ;;  %7380 = vst [vmem:[#allocation45_spill] sm:$0xff] %v5580_v12  ;;  %v1223_v4 = vsel %vm1203_vm2, %v1220_v21, %v1222_v22 }
  0xa9   : > { %v5537_v23 = vpop.f32.mrf.mxu2 }
  0xaa   : > { %v5539_v24 = vpop.f32.mrf.mxu3  ;;  %v5543_v26 = vpop.f32.mrf.mxu1 }
  0xab   : > { %7374 = vst [vmem:[#allocation39_spill] sm:$0xff] %v5539_v24 }
  0xad   : > { %v5547_v40 = vpop.f32.mrf.mxu0  ;;  %4566 = vmatmul.msk.bf16.gmra.mxu1 %vm569_vm1, %v5541_v25 }
  0xae   : > { %4598 = vmatmul.msk.bf16.gmra.mxu2 %vm569_vm1, %v5545_v27  ;;  %v448_v27 = vld [vmem:[%s5287_s11 + $0xa10] sm:$0xff] }
  0xaf   : > { %4630 = vmatmul.msk.bf16.gmra.mxu3 %vm569_vm1, %v1793_v28 }
  0xb0   : > { %4662 = vmatmul.msk.bf16.gmra.mxu0 %vm569_vm1, %v2157_v39 }
  0xb1   : > { %v5558_v49 = vpop.f32.mrf.mxu2 }
  0xb2   : > { %v5560_v53 = vpop.f32.mrf.mxu3  ;;  %v5562_v59 = vpop.f32.mrf.mxu1 }
  0xb3   : > { %7377 = vst [vmem:[#allocation42_spill] sm:$0xff] %v5560_v53  ;;  %v446_v53 = vld [vmem:[%s5287_s11 + $0x9f8] sm:$0xff] }
  0xb5   : > { %v5564_v0 = vpop.f32.mrf.mxu0 }
  0xb9   : > { %v5572_v28 = vpop.f32.mrf.mxu2 }
  0xba   : > { %v5574_v39 = vpop.f32.mrf.mxu3  ;;  %v5578_v48 = vpop.f32.mrf.mxu1 }
  0xbb   : > { %7378 = vst [vmem:[#allocation43_spill] sm:$0xff] %v5574_v39  ;;  %v445_v39 = vld [vmem:[%s5287_s11 + $0x9f0] sm:$0xff] }
  0xbc   : > { %v2163_v24 = vpack.c.bf16 %v446_v53, %v445_v39 }
  0xbd   : > { %v5582_v62 = vpop.f32.mrf.mxu0  ;;  %4567 = vmatmul.msk.bf16.gmra.mxu1 %vm569_vm1, %v5576_v58 }
  0xbe   : > { %4599 = vmatmul.msk.bf16.gmra.mxu2 %vm569_vm1, %v5580_v12 }
  0xbf   : > { %4631 = vmatmul.msk.bf16.gmra.mxu3 %vm569_vm1, %v1794_v60  ;;  %v1221_v60 = vsel %vm1203_vm2, %v1219_v9, %v1220_v21 }
  0xc0   : > { %4663 = vmatmul.msk.bf16.gmra.mxu0 %vm569_vm1, %v2158_v35  ;;  %v344_v35 = vld [vmem:[%s5287_s11 + $0x678] sm:$0xff]  ;;  %v5615_v16 = vpack.c.bf16 %v1223_v4, %v1221_v60  ;;  %v182_v4 = vld [vmem:[%s5287_s11 + $0x60] sm:$0xff]  ;;  %v1225_v60 = vrot.slane %v183_v41, 1 }
  0xc1   : > { %v5593_v6 = vpop.f32.mrf.mxu2  ;;  %v1795_v9 = vpack.c.bf16 %v345_v56, %v344_v35  ;;  %v184_v56 = vld [vmem:[%s5287_s11 + $0x70] sm:$0x1]  ;;  %v1224_v22 = vrot.slane %v182_v4, 1  ;;  %v5646_v2 = vpack.c.bf16 %v183_v41, %v182_v4  ;;  %v186_v4 = vld [vmem:[%s5287_s11 + $0x80] sm:$0xff] }
  0xc2   : > { %v5595_v7 = vpop.f32.mrf.mxu3  ;;  %v5597_v8 = vpop.f32.mrf.mxu1  ;;  %7384 = vst [vmem:[#allocation49_spill] sm:$0xff] %v5615_v16  ;;  %v1227_v35 = vrot.slane %v184_v56, 1 }
  0xc3   : > { %7381 = vst [vmem:[#allocation46_spill] sm:$0xff] %v5595_v7 }
  0xc4   : > { %v1228_v43 = vsel %vm1203_vm2, %v1225_v60, %v1227_v35  ;;  %7387 = vst [vmem:[#allocation52_spill] sm:$0xff] %v5646_v2 }
  0xc5   : > { %v5599_v19 = vpop.f32.mrf.mxu0 }
  0xc9   : > { %v5607_v18 = vpop.f32.mrf.mxu2 }
  0xca   : > { %v5609_v11 = vpop.f32.mrf.mxu3  ;;  %v5613_v63 = vpop.f32.mrf.mxu1 }
  0xcb   : > { %7382 = vst [vmem:[#allocation47_spill] sm:$0xff] %v5609_v11  ;;  %v444_v11 = vld [vmem:[%s5287_s11 + $0x9e0] sm:$0xff] }
  0xcd   : > { %v5617_v21 = vpop.f32.mrf.mxu0  ;;  %4568 = vmatmul.msk.bf16.gmra.mxu1 %vm569_vm1, %v5611_v34 }
  0xce   : > { %4600 = vmatmul.msk.bf16.gmra.mxu2 %vm569_vm1, %v5615_v16 }
  0xcf   : > { %4632 = vmatmul.msk.bf16.gmra.mxu3 %vm569_vm1, %v1795_v9  ;;  %v1226_v9 = vsel %vm1203_vm2, %v1224_v22, %v1225_v60 }
  0xd0   : > { %4664 = vmatmul.msk.bf16.gmra.mxu0 %vm569_vm1, %v2159_v3  ;;  %v347_v3 = vld [vmem:[%s5287_s11 + $0x690] sm:$0xff]  ;;  %v5650_v54 = vpack.c.bf16 %v1228_v43, %v1226_v9  ;;  %v185_v43 = vld [vmem:[%s5287_s11 + $0x78] sm:$0xff]  ;;  %v1230_v9 = vrot.slane %v186_v4, 1 }
  0xd1   : > { %v5628_v32 = vpop.f32.mrf.mxu2  ;;  %v1796_v22 = vpack.c.bf16 %v348_v31, %v347_v3  ;;  %v187_v31 = vld [vmem:[%s5287_s11 + $0x88] sm:$0x1]  ;;  %v1229_v35 = vrot.slane %v185_v43, 1 }
  0xd2   : > { %v5630_v44 = vpop.f32.mrf.mxu3  ;;  %v5632_v47 = vpop.f32.mrf.mxu1  ;;  %7388 = vst [vmem:[#allocation53_spill] sm:$0xff] %v5650_v54  ;;  %v1232_v3 = vrot.slane %v187_v31, 1 }
  0xd3   : > { %7385 = vst [vmem:[#allocation50_spill] sm:$0xff] %v5630_v44  ;;  %v5681_v44 = vpack.c.bf16 %v186_v4, %v185_v43  ;;  %v189_v43 = vld [vmem:[%s5287_s11 + $0x98] sm:$0xff] }
  0xd4   : > { %v1233_v13 = vsel %vm1203_vm2, %v1230_v9, %v1232_v3 }
  0xd5   : > { %v5634_v55 = vpop.f32.mrf.mxu0  ;;  %7391 = vst [vmem:[#allocation56_spill] sm:$0xff] %v5681_v44 }
  0xd9   : > { %v5642_v29 = vpop.f32.mrf.mxu2 }
  0xda   : > { %v5644_v15 = vpop.f32.mrf.mxu3  ;;  %v5648_v56 = vpop.f32.mrf.mxu1 }
  0xdb   : > { %7386 = vst [vmem:[#allocation51_spill] sm:$0xff] %v5644_v15 }
  0xdd   : > { %v5652_v60 = vpop.f32.mrf.mxu0  ;;  %4569 = vmatmul.msk.bf16.gmra.mxu1 %vm569_vm1, %v5646_v2  ;;  %v443_v2 = vld [vmem:[%s5287_s11 + $0x9d8] sm:$0xff] }
  0xde   : > { %4601 = vmatmul.msk.bf16.gmra.mxu2 %vm569_vm1, %v5650_v54  ;;  %v2162_v34 = vpack.c.bf16 %v444_v11, %v443_v2 }
  0xdf   : > { %4633 = vmatmul.msk.bf16.gmra.mxu3 %vm569_vm1, %v1796_v22  ;;  %v1231_v22 = vsel %vm1203_vm2, %v1229_v35, %v1230_v9 }
  0xe0   : > { %4665 = vmatmul.msk.bf16.gmra.mxu0 %vm569_vm1, %v2160_v42  ;;  %v350_v42 = vld [vmem:[%s5287_s11 + $0x6a8] sm:$0xff]  ;;  %v5685_v54 = vpack.c.bf16 %v1233_v13, %v1231_v22  ;;  %v188_v13 = vld [vmem:[%s5287_s11 + $0x90] sm:$0xff]  ;;  %v1235_v22 = vrot.slane %v189_v43, 1 }
  0xe1   : > { %v5663_v17 = vpop.f32.mrf.mxu2  ;;  %v1797_v35 = vpack.c.bf16 %v351_v14, %v350_v42  ;;  %v190_v14 = vld [vmem:[%s5287_s11 + $0xa0] sm:$0x1]  ;;  %v1234_v3 = vrot.slane %v188_v13, 1  ;;  %v5716_v16 = vpack.c.bf16 %v189_v43, %v188_v13  ;;  %v192_v13 = vld [vmem:[%s5287_s11 + $0xb0] sm:$0xff] }
  0xe2   : > { %v5665_v10 = vpop.f32.mrf.mxu3  ;;  %v5667_v41 = vpop.f32.mrf.mxu1  ;;  %7392 = vst [vmem:[#allocation57_spill] sm:$0xff] %v5685_v54  ;;  %v1237_v42 = vrot.slane %v190_v14, 1 }
  0xe3   : > { %7389 = vst [vmem:[#allocation54_spill] sm:$0xff] %v5665_v10 }
  0xe4   : > { %7397 = vst [vmem:[#allocation62_spill] sm:$0xff] %v5716_v16 }
  0xe5   : > { %v5669_v30 = vpop.f32.mrf.mxu0 }
  0xe9   : > { %v5677_v15 = vpop.f32.mrf.mxu2 }
  0xea   : > { %v5679_v10 = vpop.f32.mrf.mxu3  ;;  %v5683_v31 = vpop.f32.mrf.mxu1 }
  0xeb   : > { %7390 = vst [vmem:[#allocation55_spill] sm:$0xff] %v5679_v10 }
  0xed   : > { %v5687_v9 = vpop.f32.mrf.mxu0  ;;  %4570 = vmatmul.msk.bf16.gmra.mxu1 %vm569_vm1, %v5681_v44  ;;  %v354_v44 = vld [vmem:[%s5287_s11 + $0x6c8] sm:$0xff] }
  0xee   : > { %4602 = vmatmul.msk.bf16.gmra.mxu2 %vm569_vm1, %v5685_v54  ;;  %v1238_v54 = vsel %vm1203_vm2, %v1235_v22, %v1237_v42 }
  0xef   : > { %4634 = vmatmul.msk.bf16.gmra.mxu3 %vm569_vm1, %v1797_v35  ;;  %v1236_v35 = vsel %vm1203_vm2, %v1234_v3, %v1235_v22 }
  0xf0   : > { %4666 = vmatmul.msk.bf16.gmra.mxu0 %vm569_vm1, %v2161_v5  ;;  %v353_v5 = vld [vmem:[%s5287_s11 + $0x6c0] sm:$0xff]  ;;  %v5720_v57 = vpack.c.bf16 %v1238_v54, %v1236_v35  ;;  %v191_v54 = vld [vmem:[%s5287_s11 + $0xa8] sm:$0xff]  ;;  %v1240_v35 = vrot.slane %v192_v13, 1 }
  0xf1   : > { %v5698_v20 = vpop.f32.mrf.mxu2  ;;  %v1798_v3 = vpack.c.bf16 %v354_v44, %v353_v5  ;;  %v193_v44 = vld [vmem:[%s5287_s11 + $0xb8] sm:$0x1]  ;;  %v1239_v42 = vrot.slane %v191_v54, 1  ;;  %v5751_v45 = vpack.c.bf16 %v192_v13, %v191_v54  ;;  %v195_v54 = vld [vmem:[%s5287_s11 + $0xc8] sm:$0xff] }
  0xf2   : > { %7393 = vst [vmem:[#allocation58_spill] sm:$0xff] %v5698_v20  ;;  %v5700_v36 = vpop.f32.mrf.mxu3  ;;  %v5702_v4 = vpop.f32.mrf.mxu1  ;;  %v1242_v5 = vrot.slane %v193_v44, 1 }
  0xf3   : > { %7394 = vst [vmem:[#allocation59_spill] sm:$0xff] %v5700_v36 }
  0xf4   : > { %7398 = vst [vmem:[#allocation63_spill] sm:$0xff] %v5720_v57 }
  0xf5   : > { %v5704_v10 = vpop.f32.mrf.mxu0  ;;  %7403 = vst [vmem:[#allocation68_spill] sm:$0xff] %v5751_v45 }
  0xf9   : > { %v5712_v7 = vpop.f32.mrf.mxu2 }
  0xfa   : > { %7395 = vst [vmem:[#allocation60_spill] sm:$0xff] %v5712_v7  ;;  %v5714_v36 = vpop.f32.mrf.mxu3  ;;  %v5718_v14 = vpop.f32.mrf.mxu1  ;;  %v450_v7 = vld [vmem:[%s5287_s11 + $0xa28] sm:$0xff] }
  0xfb   : > { %7396 = vst [vmem:[#allocation61_spill] sm:$0xff] %v5714_v36 }
  0xfd   : > { %v5722_v22 = vpop.f32.mrf.mxu0  ;;  %4571 = vmatmul.msk.bf16.gmra.mxu1 %vm569_vm1, %v5716_v16  ;;  %v357_v16 = vld [vmem:[%s5287_s11 + $0x6e0] sm:$0xff] }
  0xfe   : > { %4603 = vmatmul.msk.bf16.gmra.mxu2 %vm569_vm1, %v5720_v57  ;;  %v1243_v57 = vsel %vm1203_vm2, %v1240_v35, %v1242_v5 }
  0xff   : > { %4635 = vmatmul.msk.bf16.gmra.mxu3 %vm569_vm1, %v1798_v3  ;;  %v1241_v3 = vsel %vm1203_vm2, %v1239_v42, %v1240_v35 }
 0x100   : > { %4667 = vmatmul.msk.bf16.gmra.mxu0 %vm569_vm1, %v2162_v34  ;;  %v356_v34 = vld [vmem:[%s5287_s11 + $0x6d8] sm:$0xff]  ;;  %v5755_v58 = vpack.c.bf16 %v1243_v57, %v1241_v3  ;;  %v194_v57 = vld [vmem:[%s5287_s11 + $0xc0] sm:$0xff]  ;;  %v1245_v3 = vrot.slane %v195_v54, 1 }
 0x101   : > { %v5733_v2 = vpop.f32.mrf.mxu2  ;;  %v1799_v42 = vpack.c.bf16 %v357_v16, %v356_v34  ;;  %v196_v16 = vld [vmem:[%s5287_s11 + $0xd0] sm:$0x1]  ;;  %v1244_v5 = vrot.slane %v194_v57, 1  ;;  %v5786_v25 = vpack.c.bf16 %v195_v54, %v194_v57  ;;  %v197_v57 = vld [vmem:[%s5287_s11 + $0xd8] sm:$0xff]  ;;  %v199_v54 = vld [vmem:[%s5287_s11 + $0xe8] sm:$0x1] }
 0x102   : > { %7399 = vst [vmem:[#allocation64_spill] sm:$0xff] %v5733_v2  ;;  %v5735_v11 = vpop.f32.mrf.mxu3  ;;  %v5737_v43 = vpop.f32.mrf.mxu1  ;;  %v1247_v34 = vrot.slane %v196_v16, 1  ;;  %v449_v2 = vld [vmem:[%s5287_s11 + $0xa20] sm:$0xff] }
 0x103   : > { %7400 = vst [vmem:[#allocation65_spill] sm:$0xff] %v5735_v11 }
 0x104   : > { %7404 = vst [vmem:[#allocation69_spill] sm:$0xff] %v5755_v58 }
 0x105   : > { %v5739_v36 = vpop.f32.mrf.mxu0  ;;  %7409 = vst [vmem:[#allocation74_spill] sm:$0xff] %v5786_v25 }
 0x109   : > { %v5747_v12 = vpop.f32.mrf.mxu2 }
 0x10a   : > { %7401 = vst [vmem:[#allocation66_spill] sm:$0xff] %v5747_v12  ;;  %v5749_v11 = vpop.f32.mrf.mxu3  ;;  %v5753_v44 = vpop.f32.mrf.mxu1 }
 0x10b   : > { %7402 = vst [vmem:[#allocation67_spill] sm:$0xff] %v5749_v11 }
 0x10d   : > { %v5757_v35 = vpop.f32.mrf.mxu0  ;;  %4572 = vmatmul.msk.bf16.gmra.mxu1 %vm569_vm1, %v5751_v45  ;;  %v360_v45 = vld [vmem:[%s5287_s11 + $0x6f8] sm:$0xff] }
 0x10e   : > { %4604 = vmatmul.msk.bf16.gmra.mxu2 %vm569_vm1, %v5755_v58  ;;  %v1248_v58 = vsel %vm1203_vm2, %v1245_v3, %v1247_v34 }
 0x10f   : > { %4636 = vmatmul.msk.bf16.gmra.mxu3 %vm569_vm1, %v1799_v42  ;;  %v1246_v42 = vsel %vm1203_vm2, %v1244_v5, %v1245_v3  ;;  %v2164_v5 = vpack.c.bf16 %v448_v27, %v447_v37 }
 0x110   : > { %4668 = vmatmul.msk.bf16.gmra.mxu0 %vm569_vm1, %v2163_v24  ;;  %v359_v24 = vld [vmem:[%s5287_s11 + $0x6f0] sm:$0xff]  ;;  %v5788_v50 = vpack.c.bf16 %v1248_v58, %v1246_v42  ;;  %v198_v58 = vld [vmem:[%s5287_s11 + $0xe0] sm:$0xff]  ;;  %v1249_v42 = vrot.slane %v197_v57, 1 }
 0x111   : > { %v5768_v53 = vpop.f32.mrf.mxu2  ;;  %v1800_v52 = vpack.c.bf16 %v360_v45, %v359_v24  ;;  %v1250_v24 = vrot.slane %v198_v58, 1 }
 0x112   : > { %7405 = vst [vmem:[#allocation70_spill] sm:$0xff] %v5768_v53  ;;  %v5770_v39 = vpop.f32.mrf.mxu3  ;;  %v5772_v13 = vpop.f32.mrf.mxu1 }
 0x113   : > { %7406 = vst [vmem:[#allocation71_spill] sm:$0xff] %v5770_v39 }
 0x114   : > { %7410 = vst [vmem:[#allocation75_spill] sm:$0xff] %v5788_v50 }
 0x115   : > { %v5774_v11 = vpop.f32.mrf.mxu0 }
 0x119   : > { %v5782_v33 = vpop.f32.mrf.mxu2 }
 0x11a   : > { %7407 = vst [vmem:[#allocation72_spill] sm:$0xff] %v5782_v33  ;;  %v5784_v39 = vpop.f32.mrf.mxu3  ;;  %v947_v16 = vpop.f32.mrf.mxu1  ;;  %v363_v33 = vld [vmem:[%s5287_s11 + $0x710] sm:$0xff] }
 0x11b   : > { %7408 = vst [vmem:[#allocation73_spill] sm:$0xff] %v5784_v39  ;;  %v948_v3 = vadd.f32 %v947_v16, %v5514_v51  ;;  %v1252_v39 = vrot.slane %v199_v54, 1  ;;  %v1251_v51 = vsel %vm1203_vm2, %v1249_v42, %v1250_v24 }
 0x11d   : > { %v2296_v53 = vpop.f32.mrf.mxu0  ;;  %4573 = vmatmul.msk.bf16.gmra.mxu1 %vm569_vm1, %v5786_v25  ;;  %v1253_v16 = vsel %vm1203_vm2, %v1250_v24, %v1252_v39 }
 0x11e   : > { %4605 = vmatmul.msk.bf16.gmra.mxu2 %vm569_vm1, %v5788_v50 }
 0x11f   : > { %4637 = vmatmul.msk.bf16.gmra.mxu3 %vm569_vm1, %v1800_v52 }
 0x120   : > { %4669 = vmatmul.msk.bf16.gmra.mxu0 %vm569_vm1, %v2164_v5  ;;  %v362_v5 = vld [vmem:[%s5287_s11 + $0x708] sm:$0xff] }
 0x121   : > { %v1568_v45 = vpop.f32.mrf.mxu2 }
 0x122   : > { %v1932_v37 = vpop.f32.mrf.mxu3  ;;  %v1728_v27 = vadd.f32 %v1568_v45, %v948_v3  ;;  %v949_v34 = vpop.f32.mrf.mxu1  ;;  %v5809_v45 = vpack.c.bf16 %v198_v58, %v197_v57 }
 0x123   : > { %v950_v12 = vadd.f32 %v949_v34, %v5529_v1 }
 0x124   : > { %v2092_v50 = vadd.f32 %v1932_v37, %v1728_v27  ;;  %v1801_v37 = vpack.c.bf16 %v363_v33, %v362_v5  ;;  %v2165_v27 = vpack.c.bf16 %v450_v7, %v449_v2  ;;  %v201_v33 = vld [vmem:[%s5287_s11 + $0xf8] sm:$0xff]  ;;  %v202_v7 = vld [vmem:[%s5287_s11 + $0x100] sm:$0x1] }
 0x125   : > { %v2298_v52 = vpop.f32.mrf.mxu0 }
 0x126   : > { %v5800_v25 = vadd.f32 %v2296_v53, %v2092_v50  ;;  %v5811_v53 = vpack.c.bf16 %v1253_v16, %v1251_v51  ;;  %v1255_v51 = vrot.slane %v201_v33, 1  ;;  %v1257_v16 = vrot.slane %v202_v7, 1 }
 0x128   : > { %7411 = vst [vmem:[#allocation76_spill] sm:$0xff] %v5800_v25 }
 0x129   : > { %v1570_v20 = vpop.f32.mrf.mxu2 }
 0x12a   : > { %v1934_v3 = vpop.f32.mrf.mxu3  ;;  %v1729_v54 = vadd.f32 %v1570_v20, %v950_v12  ;;  %v952_v50 = vpop.f32.mrf.mxu1  ;;  %v200_v20 = vld [vmem:[%s5287_s11 + $0xf0] sm:$0xff] }
 0x12b   : > { %v953_v12 = vadd.f32 %v952_v50, %v5547_v40  ;;  %v1254_v24 = vrot.slane %v200_v20, 1  ;;  %v365_v50 = vld [vmem:[%s5287_s11 + $0x720] sm:$0xff] }
 0x12c   : > { %v2093_v39 = vadd.f32 %v1934_v3, %v1729_v54  ;;  %v1258_v54 = vsel %vm1203_vm2, %v1255_v51, %v1257_v16 }
 0x12d   : > { %v2301_v42 = vpop.f32.mrf.mxu0  ;;  %4574 = vmatmul.msk.bf16.gmra.mxu1 %vm569_vm1, %v5809_v45  ;;  %v1256_v40 = vsel %vm1203_vm2, %v1254_v24, %v1255_v51 }
 0x12e   : > { %4606 = vmatmul.msk.bf16.gmra.mxu2 %vm569_vm1, %v5811_v53  ;;  %v5818_v1 = vadd.f32 %v2298_v52, %v2093_v39  ;;  %v451_v39 = vld [vmem:[%s5287_s11 + $0xa38] sm:$0xff] }
 0x12f   : > { %4638 = vmatmul.msk.bf16.gmra.mxu3 %vm569_vm1, %v1801_v37  ;;  %v366_v37 = vld [vmem:[%s5287_s11 + $0x728] sm:$0xff] }
 0x130   : > { %7412 = vst [vmem:[#allocation77_spill] sm:$0xff] %v5818_v1  ;;  %4670 = vmatmul.msk.bf16.gmra.mxu0 %vm569_vm1, %v2165_v27  ;;  %v452_v1 = vld [vmem:[%s5287_s11 + $0xa40] sm:$0xff] }
 0x131   : > { %v1573_v2 = vpop.f32.mrf.mxu2  ;;  %v2166_v24 = vpack.c.bf16 %v452_v1, %v451_v39  ;;  %v204_v1 = vld [vmem:[%s5287_s11 + $0x110] sm:$0xff] }
 0x132   : > { %v1937_v57 = vpop.f32.mrf.mxu3  ;;  %v1730_v58 = vadd.f32 %v1573_v2, %v953_v12  ;;  %v954_v34 = vpop.f32.mrf.mxu1  ;;  %v5834_v2 = vpack.c.bf16 %v201_v33, %v200_v20  ;;  %v203_v20 = vld [vmem:[%s5287_s11 + $0x108] sm:$0xff]  ;;  %v205_v33 = vld [vmem:[%s5287_s11 + $0x118] sm:$0x1] }
 0x133   : > { %v955_v27 = vadd.f32 %v954_v34, %v5564_v0 }
 0x134   : > { %v2094_v52 = vadd.f32 %v1937_v57, %v1730_v58  ;;  %v5836_v57 = vpack.c.bf16 %v1258_v54, %v1256_v40  ;;  %v1802_v58 = vpack.c.bf16 %v366_v37, %v365_v50  ;;  %v1259_v50 = vrot.slane %v203_v20, 1 }
 0x135   : > { %v2303_v5 = vpop.f32.mrf.mxu0  ;;  %v1260_v37 = vrot.slane %v204_v1, 1 }
 0x136   : > { %v5825_v3 = vadd.f32 %v2301_v42, %v2094_v52 }
 0x138   : > { %7413 = vst [vmem:[#allocation78_spill] sm:$0xff] %v5825_v3 }
 0x139   : > { %v1575_v25 = vpop.f32.mrf.mxu2 }
 0x13a   : > { %v1939_v12 = vpop.f32.mrf.mxu3  ;;  %v1731_v7 = vadd.f32 %v1575_v25, %v955_v27  ;;  %v957_v42 = vpop.f32.mrf.mxu1  ;;  %v1262_v27 = vrot.slane %v205_v33, 1 }
 0x13b   : > { %v958_v25 = vadd.f32 %v957_v42, %v5582_v62  ;;  %v1261_v62 = vsel %vm1203_vm2, %v1259_v50, %v1260_v37  ;;  %v368_v42 = vld [vmem:[%s5287_s11 + $0x738] sm:$0xff] }
 0x13c   : > { %v2095_v51 = vadd.f32 %v1939_v12, %v1731_v7  ;;  %v1263_v7 = vsel %vm1203_vm2, %v1260_v37, %v1262_v27 }
 0x13d   : > { %v2306_v16 = vpop.f32.mrf.mxu0  ;;  %4575 = vmatmul.msk.bf16.gmra.mxu1 %vm569_vm1, %v5834_v2 }
 0x13e   : > { %4607 = vmatmul.msk.bf16.gmra.mxu2 %vm569_vm1, %v5836_v57  ;;  %v5843_v0 = vadd.f32 %v2303_v5, %v2095_v51  ;;  %v453_v51 = vld [vmem:[%s5287_s11 + $0xa50] sm:$0xff] }
 0x13f   : > { %4639 = vmatmul.msk.bf16.gmra.mxu3 %vm569_vm1, %v1802_v58  ;;  %v369_v58 = vld [vmem:[%s5287_s11 + $0x740] sm:$0xff] }
 0x140   : > { %7414 = vst [vmem:[#allocation79_spill] sm:$0xff] %v5843_v0  ;;  %4671 = vmatmul.msk.bf16.gmra.mxu0 %vm569_vm1, %v2166_v24  ;;  %v454_v0 = vld [vmem:[%s5287_s11 + $0xa58] sm:$0xff] }
 0x141   : > { %v1578_v34 = vpop.f32.mrf.mxu2  ;;  %v2167_v50 = vpack.c.bf16 %v454_v0, %v453_v51  ;;  %v207_v0 = vld [vmem:[%s5287_s11 + $0x128] sm:$0xff] }
 0x142   : > { %v1942_v52 = vpop.f32.mrf.mxu3  ;;  %v1732_v40 = vadd.f32 %v1578_v34, %v958_v25  ;;  %v959_v54 = vpop.f32.mrf.mxu1  ;;  %v5859_v34 = vpack.c.bf16 %v204_v1, %v203_v20  ;;  %v206_v20 = vld [vmem:[%s5287_s11 + $0x120] sm:$0xff]  ;;  %v208_v1 = vld [vmem:[%s5287_s11 + $0x130] sm:$0x1] }
 0x143   : > { %v960_v24 = vadd.f32 %v959_v54, %v5599_v19 }
 0x144   : > { %v2096_v5 = vadd.f32 %v1942_v52, %v1732_v40  ;;  %v5861_v52 = vpack.c.bf16 %v1263_v7, %v1261_v62  ;;  %v1803_v40 = vpack.c.bf16 %v369_v58, %v368_v42  ;;  %v1264_v42 = vrot.slane %v206_v20, 1 }
 0x145   : > { %v2308_v39 = vpop.f32.mrf.mxu0  ;;  %v1265_v58 = vrot.slane %v207_v0, 1 }
 0x146   : > { %v5850_v12 = vadd.f32 %v2306_v16, %v2096_v5 }
 0x148   : > { %7415 = vst [vmem:[#allocation80_spill] sm:$0xff] %v5850_v12 }
 0x149   : > { %v1580_v3 = vpop.f32.mrf.mxu2 }
 0x14a   : > { %v1944_v25 = vpop.f32.mrf.mxu3  ;;  %v1733_v33 = vadd.f32 %v1580_v3, %v960_v24  ;;  %v962_v16 = vpop.f32.mrf.mxu1  ;;  %v1267_v24 = vrot.slane %v208_v1, 1 }
 0x14b   : > { %v963_v3 = vadd.f32 %v962_v16, %v5617_v21  ;;  %v1266_v21 = vsel %vm1203_vm2, %v1264_v42, %v1265_v58  ;;  %v371_v16 = vld [vmem:[%s5287_s11 + $0x750] sm:$0xff] }
 0x14c   : > { %v2097_v37 = vadd.f32 %v1944_v25, %v1733_v33  ;;  %v1268_v33 = vsel %vm1203_vm2, %v1265_v58, %v1267_v24 }
 0x14d   : > { %v2311_v27 = vpop.f32.mrf.mxu0  ;;  %4576 = vmatmul.msk.bf16.gmra.mxu1 %vm569_vm1, %v5859_v34 }
 0x14e   : > { %4608 = vmatmul.msk.bf16.gmra.mxu2 %vm569_vm1, %v5861_v52  ;;  %v5868_v19 = vadd.f32 %v2308_v39, %v2097_v37  ;;  %v455_v37 = vld [vmem:[%s5287_s11 + $0xa68] sm:$0xff] }
 0x14f   : > { %4640 = vmatmul.msk.bf16.gmra.mxu3 %vm569_vm1, %v1803_v40  ;;  %v372_v40 = vld [vmem:[%s5287_s11 + $0x758] sm:$0xff] }
 0x150   : > { %7416 = vst [vmem:[#allocation81_spill] sm:$0xff] %v5868_v19  ;;  %4672 = vmatmul.msk.bf16.gmra.mxu0 %vm569_vm1, %v2167_v50  ;;  %v456_v19 = vld [vmem:[%s5287_s11 + $0xa70] sm:$0xff] }
 0x151   : > { %v1583_v54 = vpop.f32.mrf.mxu2  ;;  %v2168_v42 = vpack.c.bf16 %v456_v19, %v455_v37  ;;  %v210_v19 = vld [vmem:[%s5287_s11 + $0x140] sm:$0xff] }
 0x152   : > { %v1947_v5 = vpop.f32.mrf.mxu3  ;;  %v1734_v62 = vadd.f32 %v1583_v54, %v963_v3  ;;  %v964_v7 = vpop.f32.mrf.mxu1  ;;  %v5884_v54 = vpack.c.bf16 %v207_v0, %v206_v20  ;;  %v209_v20 = vld [vmem:[%s5287_s11 + $0x138] sm:$0xff]  ;;  %v211_v0 = vld [vmem:[%s5287_s11 + $0x148] sm:$0x1] }
 0x153   : > { %v965_v50 = vadd.f32 %v964_v7, %v5634_v55 }
 0x154   : > { %v2098_v39 = vadd.f32 %v1947_v5, %v1734_v62  ;;  %v5886_v5 = vpack.c.bf16 %v1268_v33, %v1266_v21  ;;  %v1804_v62 = vpack.c.bf16 %v372_v40, %v371_v16  ;;  %v1269_v16 = vrot.slane %v209_v20, 1 }
 0x155   : > { %v2313_v51 = vpop.f32.mrf.mxu0  ;;  %v1270_v40 = vrot.slane %v210_v19, 1 }
 0x156   : > { %v5875_v25 = vadd.f32 %v2311_v27, %v2098_v39 }
 0x158   : > { %7417 = vst [vmem:[#allocation82_spill] sm:$0xff] %v5875_v25 }
 0x159   : > { %v1585_v12 = vpop.f32.mrf.mxu2 }
 0x15a   : > { %v1949_v3 = vpop.f32.mrf.mxu3  ;;  %v1735_v1 = vadd.f32 %v1585_v12, %v965_v50  ;;  %v967_v27 = vpop.f32.mrf.mxu1  ;;  %v1272_v50 = vrot.slane %v211_v0, 1 }
 0x15b   : > { %v968_v12 = vadd.f32 %v967_v27, %v5652_v60  ;;  %v1271_v60 = vsel %vm1203_vm2, %v1269_v16, %v1270_v40  ;;  %v374_v27 = vld [vmem:[%s5287_s11 + $0x768] sm:$0xff] }
 0x15c   : > { %v2099_v58 = vadd.f32 %v1949_v3, %v1735_v1  ;;  %v1273_v1 = vsel %vm1203_vm2, %v1270_v40, %v1272_v50 }
 0x15d   : > { %v2316_v24 = vpop.f32.mrf.mxu0  ;;  %4577 = vmatmul.msk.bf16.gmra.mxu1 %vm569_vm1, %v5884_v54 }
 0x15e   : > { %4609 = vmatmul.msk.bf16.gmra.mxu2 %vm569_vm1, %v5886_v5  ;;  %v5893_v55 = vadd.f32 %v2313_v51, %v2099_v58  ;;  %v457_v58 = vld [vmem:[%s5287_s11 + $0xa80] sm:$0xff] }
 0x15f   : > { %4641 = vmatmul.msk.bf16.gmra.mxu3 %vm569_vm1, %v1804_v62  ;;  %v375_v62 = vld [vmem:[%s5287_s11 + $0x770] sm:$0xff] }
 0x160   : > { %7418 = vst [vmem:[#allocation83_spill] sm:$0xff] %v5893_v55  ;;  %4673 = vmatmul.msk.bf16.gmra.mxu0 %vm569_vm1, %v2168_v42  ;;  %v458_v55 = vld [vmem:[%s5287_s11 + $0xa88] sm:$0xff] }
 0x161   : > { %v1588_v7 = vpop.f32.mrf.mxu2  ;;  %v2169_v16 = vpack.c.bf16 %v458_v55, %v457_v58  ;;  %v213_v55 = vld [vmem:[%s5287_s11 + $0x158] sm:$0xff] }
 0x162   : > { %v1952_v39 = vpop.f32.mrf.mxu3  ;;  %v1736_v21 = vadd.f32 %v1588_v7, %v968_v12  ;;  %v969_v33 = vpop.f32.mrf.mxu1  ;;  %v5909_v7 = vpack.c.bf16 %v210_v19, %v209_v20  ;;  %v212_v20 = vld [vmem:[%s5287_s11 + $0x150] sm:$0xff]  ;;  %v214_v19 = vld [vmem:[%s5287_s11 + $0x160] sm:$0x1] }
 0x163   : > { %v970_v42 = vadd.f32 %v969_v33, %v5669_v30 }
 0x164   : > { %v2100_v51 = vadd.f32 %v1952_v39, %v1736_v21  ;;  %v5911_v39 = vpack.c.bf16 %v1273_v1, %v1271_v60  ;;  %v1805_v21 = vpack.c.bf16 %v375_v62, %v374_v27  ;;  %v1274_v27 = vrot.slane %v212_v20, 1 }
 0x165   : > { %v2318_v37 = vpop.f32.mrf.mxu0  ;;  %v1275_v62 = vrot.slane %v213_v55, 1 }
 0x166   : > { %v5900_v3 = vadd.f32 %v2316_v24, %v2100_v51 }
 0x168   : > { %7419 = vst [vmem:[#allocation84_spill] sm:$0xff] %v5900_v3 }
 0x169   : > { %v1590_v25 = vpop.f32.mrf.mxu2 }
 0x16a   : > { %v1954_v12 = vpop.f32.mrf.mxu3  ;;  %v1737_v0 = vadd.f32 %v1590_v25, %v970_v42  ;;  %v972_v24 = vpop.f32.mrf.mxu1  ;;  %v1277_v42 = vrot.slane %v214_v19, 1 }
 0x16b   : > { %v973_v25 = vadd.f32 %v972_v24, %v5687_v9  ;;  %v1276_v9 = vsel %vm1203_vm2, %v1274_v27, %v1275_v62  ;;  %v377_v24 = vld [vmem:[%s5287_s11 + $0x780] sm:$0xff] }
 0x16c   : > { %v2101_v40 = vadd.f32 %v1954_v12, %v1737_v0  ;;  %v1278_v0 = vsel %vm1203_vm2, %v1275_v62, %v1277_v42 }
 0x16d   : > { %v2321_v50 = vpop.f32.mrf.mxu0  ;;  %4578 = vmatmul.msk.bf16.gmra.mxu1 %vm569_vm1, %v5909_v7 }
 0x16e   : > { %4610 = vmatmul.msk.bf16.gmra.mxu2 %vm569_vm1, %v5911_v39  ;;  %v5918_v30 = vadd.f32 %v2318_v37, %v2101_v40  ;;  %v459_v40 = vld [vmem:[%s5287_s11 + $0xa98] sm:$0xff] }
 0x16f   : > { %4642 = vmatmul.msk.bf16.gmra.mxu3 %vm569_vm1, %v1805_v21  ;;  %v378_v21 = vld [vmem:[%s5287_s11 + $0x788] sm:$0xff] }
 0x170   : > { %7420 = vst [vmem:[#allocation85_spill] sm:$0xff] %v5918_v30  ;;  %4674 = vmatmul.msk.bf16.gmra.mxu0 %vm569_vm1, %v2169_v16  ;;  %v460_v30 = vld [vmem:[%s5287_s11 + $0xaa0] sm:$0xff] }
 0x171   : > { %v1593_v33 = vpop.f32.mrf.mxu2  ;;  %v2170_v27 = vpack.c.bf16 %v460_v30, %v459_v40  ;;  %v216_v30 = vld [vmem:[%s5287_s11 + $0x170] sm:$0xff] }
 0x172   : > { %v1957_v51 = vpop.f32.mrf.mxu3  ;;  %v1738_v60 = vadd.f32 %v1593_v33, %v973_v25  ;;  %v974_v1 = vpop.f32.mrf.mxu1  ;;  %v5934_v33 = vpack.c.bf16 %v213_v55, %v212_v20  ;;  %v215_v20 = vld [vmem:[%s5287_s11 + $0x168] sm:$0xff]  ;;  %v217_v55 = vld [vmem:[%s5287_s11 + $0x178] sm:$0x1] }
 0x173   : > { %v975_v16 = vadd.f32 %v974_v1, %v5704_v10 }
 0x174   : > { %v2102_v37 = vadd.f32 %v1957_v51, %v1738_v60  ;;  %v5936_v51 = vpack.c.bf16 %v1278_v0, %v1276_v9  ;;  %v1806_v60 = vpack.c.bf16 %v378_v21, %v377_v24  ;;  %v1279_v24 = vrot.slane %v215_v20, 1 }
 0x175   : > { %v2323_v58 = vpop.f32.mrf.mxu0  ;;  %v1280_v21 = vrot.slane %v216_v30, 1 }
 0x176   : > { %v5925_v12 = vadd.f32 %v2321_v50, %v2102_v37 }
 0x178   : > { %7421 = vst [vmem:[#allocation86_spill] sm:$0xff] %v5925_v12 }
 0x179   : > { %v1595_v3 = vpop.f32.mrf.mxu2 }
 0x17a   : > { %v1959_v25 = vpop.f32.mrf.mxu3  ;;  %v1739_v19 = vadd.f32 %v1595_v3, %v975_v16  ;;  %v977_v50 = vpop.f32.mrf.mxu1  ;;  %v1282_v16 = vrot.slane %v217_v55, 1 }
 0x17b   : > { %v978_v3 = vadd.f32 %v977_v50, %v5722_v22  ;;  %v1281_v22 = vsel %vm1203_vm2, %v1279_v24, %v1280_v21  ;;  %v380_v50 = vld [vmem:[%s5287_s11 + $0x798] sm:$0xff] }
 0x17c   : > { %v2103_v62 = vadd.f32 %v1959_v25, %v1739_v19  ;;  %v1283_v19 = vsel %vm1203_vm2, %v1280_v21, %v1282_v16 }
 0x17d   : > { %v2326_v42 = vpop.f32.mrf.mxu0  ;;  %4579 = vmatmul.msk.bf16.gmra.mxu1 %vm569_vm1, %v5934_v33 }
 0x17e   : > { %4611 = vmatmul.msk.bf16.gmra.mxu2 %vm569_vm1, %v5936_v51  ;;  %v5943_v10 = vadd.f32 %v2323_v58, %v2103_v62  ;;  %v461_v62 = vld [vmem:[%s5287_s11 + $0xab0] sm:$0xff] }
 0x17f   : > { %4643 = vmatmul.msk.bf16.gmra.mxu3 %vm569_vm1, %v1806_v60  ;;  %v381_v60 = vld [vmem:[%s5287_s11 + $0x7a0] sm:$0xff] }
 0x180   : > { %7422 = vst [vmem:[#allocation87_spill] sm:$0xff] %v5943_v10  ;;  %4675 = vmatmul.msk.bf16.gmra.mxu0 %vm569_vm1, %v2170_v27  ;;  %v462_v10 = vld [vmem:[%s5287_s11 + $0xab8] sm:$0xff] }
 0x181   : > { %v1598_v1 = vpop.f32.mrf.mxu2  ;;  %v2171_v24 = vpack.c.bf16 %v462_v10, %v461_v62  ;;  %v219_v10 = vld [vmem:[%s5287_s11 + $0x188] sm:$0xff] }
 0x182   : > { %v1962_v37 = vpop.f32.mrf.mxu3  ;;  %v1740_v9 = vadd.f32 %v1598_v1, %v978_v3  ;;  %v979_v0 = vpop.f32.mrf.mxu1  ;;  %v5959_v1 = vpack.c.bf16 %v216_v30, %v215_v20  ;;  %v218_v20 = vld [vmem:[%s5287_s11 + $0x180] sm:$0xff]  ;;  %v220_v30 = vld [vmem:[%s5287_s11 + $0x190] sm:$0x1] }
 0x183   : > { %v980_v27 = vadd.f32 %v979_v0, %v5739_v36 }
 0x184   : > { %v2104_v58 = vadd.f32 %v1962_v37, %v1740_v9  ;;  %v5961_v37 = vpack.c.bf16 %v1283_v19, %v1281_v22  ;;  %v1807_v9 = vpack.c.bf16 %v381_v60, %v380_v50  ;;  %v1284_v50 = vrot.slane %v218_v20, 1 }
 0x185   : > { %v2328_v40 = vpop.f32.mrf.mxu0  ;;  %v1285_v60 = vrot.slane %v219_v10, 1 }
 0x186   : > { %v5950_v25 = vadd.f32 %v2326_v42, %v2104_v58 }
 0x188   : > { %7423 = vst [vmem:[#allocation88_spill] sm:$0xff] %v5950_v25 }
 0x189   : > { %v1600_v12 = vpop.f32.mrf.mxu2 }
 0x18a   : > { %v1964_v3 = vpop.f32.mrf.mxu3  ;;  %v1741_v55 = vadd.f32 %v1600_v12, %v980_v27  ;;  %v982_v42 = vpop.f32.mrf.mxu1  ;;  %v1287_v27 = vrot.slane %v220_v30, 1 }
 0x18b   : > { %v983_v12 = vadd.f32 %v982_v42, %v5757_v35  ;;  %v1286_v35 = vsel %vm1203_vm2, %v1284_v50, %v1285_v60  ;;  %v383_v42 = vld [vmem:[%s5287_s11 + $0x7b0] sm:$0xff] }
 0x18c   : > { %v2105_v21 = vadd.f32 %v1964_v3, %v1741_v55  ;;  %v1288_v55 = vsel %vm1203_vm2, %v1285_v60, %v1287_v27 }
 0x18d   : > { %v2331_v16 = vpop.f32.mrf.mxu0  ;;  %4580 = vmatmul.msk.bf16.gmra.mxu1 %vm569_vm1, %v5959_v1 }
 0x18e   : > { %4612 = vmatmul.msk.bf16.gmra.mxu2 %vm569_vm1, %v5961_v37  ;;  %v5968_v36 = vadd.f32 %v2328_v40, %v2105_v21  ;;  %v463_v21 = vld [vmem:[%s5287_s11 + $0xac8] sm:$0xff] }
 0x18f   : > { %4644 = vmatmul.msk.bf16.gmra.mxu3 %vm569_vm1, %v1807_v9  ;;  %v384_v9 = vld [vmem:[%s5287_s11 + $0x7b8] sm:$0xff] }
 0x190   : > { %7424 = vst [vmem:[#allocation89_spill] sm:$0xff] %v5968_v36  ;;  %4676 = vmatmul.msk.bf16.gmra.mxu0 %vm569_vm1, %v2171_v24  ;;  %v464_v36 = vld [vmem:[%s5287_s11 + $0xad0] sm:$0xff] }
 0x191   : > { %v1603_v0 = vpop.f32.mrf.mxu2  ;;  %v2172_v50 = vpack.c.bf16 %v464_v36, %v463_v21  ;;  %v222_v36 = vld [vmem:[%s5287_s11 + $0x1a0] sm:$0xff] }
 0x192   : > { %v1967_v58 = vpop.f32.mrf.mxu3  ;;  %v1742_v22 = vadd.f32 %v1603_v0, %v983_v12  ;;  %v984_v19 = vpop.f32.mrf.mxu1  ;;  %v5984_v0 = vpack.c.bf16 %v219_v10, %v218_v20  ;;  %v221_v20 = vld [vmem:[%s5287_s11 + $0x198] sm:$0xff]  ;;  %v223_v10 = vld [vmem:[%s5287_s11 + $0x1a8] sm:$0x1] }
 0x193   : > { %v985_v24 = vadd.f32 %v984_v19, %v5774_v11 }
 0x194   : > { %v2106_v40 = vadd.f32 %v1967_v58, %v1742_v22  ;;  %v5986_v58 = vpack.c.bf16 %v1288_v55, %v1286_v35  ;;  %v1808_v22 = vpack.c.bf16 %v384_v9, %v383_v42  ;;  %v1289_v42 = vrot.slane %v221_v20, 1 }
 0x195   : > { %v2333_v62 = vpop.f32.mrf.mxu0  ;;  %v1290_v9 = vrot.slane %v222_v36, 1 }
 0x196   : > { %v5975_v3 = vadd.f32 %v2331_v16, %v2106_v40 }
 0x198   : > { %7425 = vst [vmem:[#allocation90_spill] sm:$0xff] %v5975_v3 }
 0x199   : > { %v1605_v25 = vpop.f32.mrf.mxu2 }
 0x19a   : > { %v1969_v12 = vpop.f32.mrf.mxu3  ;;  %v1743_v30 = vadd.f32 %v1605_v25, %v985_v24  ;;  %v987_v16 = vpop.f32.mrf.mxu1  ;;  %v1292_v24 = vrot.slane %v223_v10, 1 }
 0x19b   : > { %v988_v25 = vadd.f32 %v987_v16, %v5512_v46  ;;  %v1291_v46 = vsel %vm1203_vm2, %v1289_v42, %v1290_v9  ;;  %v386_v16 = vld [vmem:[%s5287_s11 + $0x7c8] sm:$0xff] }
 0x19c   : > { %v2107_v60 = vadd.f32 %v1969_v12, %v1743_v30  ;;  %v1293_v30 = vsel %vm1203_vm2, %v1290_v9, %v1292_v24 }
 0x19d   : > { %v2336_v27 = vpop.f32.mrf.mxu0  ;;  %4581 = vmatmul.msk.bf16.gmra.mxu1 %vm569_vm1, %v5984_v0 }
 0x19e   : > { %4613 = vmatmul.msk.bf16.gmra.mxu2 %vm569_vm1, %v5986_v58  ;;  %v5993_v11 = vadd.f32 %v2333_v62, %v2107_v60  ;;  %v465_v60 = vld [vmem:[%s5287_s11 + $0xae0] sm:$0xff] }
 0x19f   : > { %4645 = vmatmul.msk.bf16.gmra.mxu3 %vm569_vm1, %v1808_v22  ;;  %v387_v22 = vld [vmem:[%s5287_s11 + $0x7d0] sm:$0xff] }
 0x1a0   : > { %7426 = vst [vmem:[#allocation91_spill] sm:$0xff] %v5993_v11  ;;  %4677 = vmatmul.msk.bf16.gmra.mxu0 %vm569_vm1, %v2172_v50  ;;  %v466_v11 = vld [vmem:[%s5287_s11 + $0xae8] sm:$0xff] }
 0x1a1   : > { %v1608_v19 = vpop.f32.mrf.mxu2  ;;  %v2173_v42 = vpack.c.bf16 %v466_v11, %v465_v60  ;;  %v225_v11 = vld [vmem:[%s5287_s11 + $0x1b8] sm:$0xff] }
 0x1a2   : > { %v1972_v40 = vpop.f32.mrf.mxu3  ;;  %v1744_v35 = vadd.f32 %v1608_v19, %v988_v25  ;;  %v989_v55 = vpop.f32.mrf.mxu1  ;;  %v6009_v19 = vpack.c.bf16 %v222_v36, %v221_v20  ;;  %v224_v20 = vld [vmem:[%s5287_s11 + $0x1b0] sm:$0xff]  ;;  %v226_v36 = vld [vmem:[%s5287_s11 + $0x1c0] sm:$0x1] }
 0x1a3   : > { %v990_v50 = vadd.f32 %v989_v55, %v5527_v38 }
 0x1a4   : > { %v2108_v62 = vadd.f32 %v1972_v40, %v1744_v35  ;;  %v6011_v40 = vpack.c.bf16 %v1293_v30, %v1291_v46  ;;  %v1809_v35 = vpack.c.bf16 %v387_v22, %v386_v16  ;;  %v1294_v16 = vrot.slane %v224_v20, 1 }
 0x1a5   : > { %v2338_v21 = vpop.f32.mrf.mxu0  ;;  %v1295_v22 = vrot.slane %v225_v11, 1 }
 0x1a6   : > { %v6000_v12 = vadd.f32 %v2336_v27, %v2108_v62 }
 0x1a8   : > { %7427 = vst [vmem:[#allocation92_spill] sm:$0xff] %v6000_v12 }
 0x1a9   : > { %v1610_v3 = vpop.f32.mrf.mxu2 }
 0x1aa   : > { %v1974_v25 = vpop.f32.mrf.mxu3  ;;  %v1745_v10 = vadd.f32 %v1610_v3, %v990_v50  ;;  %v992_v27 = vpop.f32.mrf.mxu1  ;;  %v1297_v50 = vrot.slane %v226_v36, 1 }
 0x1ab   : > { %v993_v3 = vadd.f32 %v992_v27, %v5543_v26  ;;  %v1296_v26 = vsel %vm1203_vm2, %v1294_v16, %v1295_v22  ;;  %v389_v27 = vld [vmem:[%s5287_s11 + $0x7e0] sm:$0xff] }
 0x1ac   : > { %v2109_v9 = vadd.f32 %v1974_v25, %v1745_v10  ;;  %v1298_v10 = vsel %vm1203_vm2, %v1295_v22, %v1297_v50 }
 0x1ad   : > { %v2341_v24 = vpop.f32.mrf.mxu0  ;;  %4582 = vmatmul.msk.bf16.gmra.mxu1 %vm569_vm1, %v6009_v19 }
 0x1ae   : > { %4614 = vmatmul.msk.bf16.gmra.mxu2 %vm569_vm1, %v6011_v40  ;;  %v6018_v38 = vadd.f32 %v2338_v21, %v2109_v9  ;;  %v467_v9 = vld [vmem:[%s5287_s11 + $0xaf8] sm:$0xff] }
 0x1af   : > { %4646 = vmatmul.msk.bf16.gmra.mxu3 %vm569_vm1, %v1809_v35  ;;  %v390_v35 = vld [vmem:[%s5287_s11 + $0x7e8] sm:$0xff] }
 0x1b0   : > { %7428 = vst [vmem:[#allocation93_spill] sm:$0xff] %v6018_v38  ;;  %4678 = vmatmul.msk.bf16.gmra.mxu0 %vm569_vm1, %v2173_v42  ;;  %v468_v38 = vld [vmem:[%s5287_s11 + $0xb00] sm:$0xff] }
 0x1b1   : > { %v1613_v55 = vpop.f32.mrf.mxu2  ;;  %v2174_v16 = vpack.c.bf16 %v468_v38, %v467_v9  ;;  %v228_v38 = vld [vmem:[%s5287_s11 + $0x1d0] sm:$0xff] }
 0x1b2   : > { %v1977_v62 = vpop.f32.mrf.mxu3  ;;  %v1746_v46 = vadd.f32 %v1613_v55, %v993_v3  ;;  %v994_v30 = vpop.f32.mrf.mxu1  ;;  %v6034_v55 = vpack.c.bf16 %v225_v11, %v224_v20  ;;  %v227_v20 = vld [vmem:[%s5287_s11 + $0x1c8] sm:$0xff]  ;;  %v229_v11 = vld [vmem:[%s5287_s11 + $0x1d8] sm:$0x1] }
 0x1b3   : > { %v995_v42 = vadd.f32 %v994_v30, %v5562_v59 }
 0x1b4   : > { %v2110_v21 = vadd.f32 %v1977_v62, %v1746_v46  ;;  %v6036_v62 = vpack.c.bf16 %v1298_v10, %v1296_v26  ;;  %v1810_v46 = vpack.c.bf16 %v390_v35, %v389_v27  ;;  %v1299_v27 = vrot.slane %v227_v20, 1 }
 0x1b5   : > { %v2343_v60 = vpop.f32.mrf.mxu0  ;;  %v1300_v35 = vrot.slane %v228_v38, 1 }
 0x1b6   : > { %v6025_v25 = vadd.f32 %v2341_v24, %v2110_v21 }
 0x1b8   : > { %7429 = vst [vmem:[#allocation94_spill] sm:$0xff] %v6025_v25 }
 0x1b9   : > { %v1615_v12 = vpop.f32.mrf.mxu2 }
 0x1ba   : > { %v1979_v3 = vpop.f32.mrf.mxu3  ;;  %v1747_v36 = vadd.f32 %v1615_v12, %v995_v42  ;;  %v997_v24 = vpop.f32.mrf.mxu1  ;;  %v1302_v42 = vrot.slane %v229_v11, 1 }
 0x1bb   : > { %v998_v12 = vadd.f32 %v997_v24, %v5578_v48  ;;  %v1301_v48 = vsel %vm1203_vm2, %v1299_v27, %v1300_v35  ;;  %v392_v24 = vld [vmem:[%s5287_s11 + $0x7f8] sm:$0xff] }
 0x1bc   : > { %v2111_v22 = vadd.f32 %v1979_v3, %v1747_v36  ;;  %v1303_v36 = vsel %vm1203_vm2, %v1300_v35, %v1302_v42 }
 0x1bd   : > { %v2346_v50 = vpop.f32.mrf.mxu0  ;;  %4583 = vmatmul.msk.bf16.gmra.mxu1 %vm569_vm1, %v6034_v55 }
 0x1be   : > { %4615 = vmatmul.msk.bf16.gmra.mxu2 %vm569_vm1, %v6036_v62  ;;  %v6043_v59 = vadd.f32 %v2343_v60, %v2111_v22  ;;  %v469_v22 = vld [vmem:[%s5287_s11 + $0xb10] sm:$0xff] }
 0x1bf   : > { %4647 = vmatmul.msk.bf16.gmra.mxu3 %vm569_vm1, %v1810_v46  ;;  %v393_v46 = vld [vmem:[%s5287_s11 + $0x800] sm:$0xff] }
 0x1c0   : > { %7430 = vst [vmem:[#allocation95_spill] sm:$0xff] %v6043_v59  ;;  %4679 = vmatmul.msk.bf16.gmra.mxu0 %vm569_vm1, %v2174_v16  ;;  %v470_v59 = vld [vmem:[%s5287_s11 + $0xb18] sm:$0xff] }
 0x1c1   : > { %v1618_v30 = vpop.f32.mrf.mxu2  ;;  %v2175_v27 = vpack.c.bf16 %v470_v59, %v469_v22  ;;  %v231_v59 = vld [vmem:[%s5287_s11 + $0x1e8] sm:$0xff] }
 0x1c2   : > { %v1982_v21 = vpop.f32.mrf.mxu3  ;;  %v1748_v26 = vadd.f32 %v1618_v30, %v998_v12  ;;  %v999_v10 = vpop.f32.mrf.mxu1  ;;  %v6059_v30 = vpack.c.bf16 %v228_v38, %v227_v20  ;;  %v230_v20 = vld [vmem:[%s5287_s11 + $0x1e0] sm:$0xff]  ;;  %v232_v38 = vld [vmem:[%s5287_s11 + $0x1f0] sm:$0x1] }
 0x1c3   : > { %v1000_v16 = vadd.f32 %v999_v10, %v5597_v8 }
 0x1c4   : > { %v2112_v60 = vadd.f32 %v1982_v21, %v1748_v26  ;;  %v6061_v21 = vpack.c.bf16 %v1303_v36, %v1301_v48  ;;  %v1811_v26 = vpack.c.bf16 %v393_v46, %v392_v24  ;;  %v1304_v24 = vrot.slane %v230_v20, 1 }
 0x1c5   : > { %v2348_v9 = vpop.f32.mrf.mxu0  ;;  %v1305_v46 = vrot.slane %v231_v59, 1 }
 0x1c6   : > { %v6050_v3 = vadd.f32 %v2346_v50, %v2112_v60 }
 0x1c8   : > { %7431 = vst [vmem:[#allocation96_spill] sm:$0xff] %v6050_v3 }
 0x1c9   : > { %v1620_v25 = vpop.f32.mrf.mxu2 }
 0x1ca   : > { %v1984_v12 = vpop.f32.mrf.mxu3  ;;  %v1749_v11 = vadd.f32 %v1620_v25, %v1000_v16  ;;  %v1002_v50 = vpop.f32.mrf.mxu1  ;;  %v1307_v16 = vrot.slane %v232_v38, 1 }
 0x1cb   : > { %v1003_v25 = vadd.f32 %v1002_v50, %v5613_v63  ;;  %v1306_v63 = vsel %vm1203_vm2, %v1304_v24, %v1305_v46  ;;  %v395_v50 = vld [vmem:[%s5287_s11 + $0x810] sm:$0xff] }
 0x1cc   : > { %v2113_v35 = vadd.f32 %v1984_v12, %v1749_v11  ;;  %v1308_v11 = vsel %vm1203_vm2, %v1305_v46, %v1307_v16 }
 0x1cd   : > { %v2351_v42 = vpop.f32.mrf.mxu0  ;;  %4584 = vmatmul.msk.bf16.gmra.mxu1 %vm569_vm1, %v6059_v30 }
 0x1ce   : > { %4616 = vmatmul.msk.bf16.gmra.mxu2 %vm569_vm1, %v6061_v21  ;;  %v6068_v8 = vadd.f32 %v2348_v9, %v2113_v35  ;;  %v471_v35 = vld [vmem:[%s5287_s11 + $0xb28] sm:$0xff] }
 0x1cf   : > { %4648 = vmatmul.msk.bf16.gmra.mxu3 %vm569_vm1, %v1811_v26  ;;  %v396_v26 = vld [vmem:[%s5287_s11 + $0x818] sm:$0xff] }
 0x1d0   : > { %7432 = vst [vmem:[#allocation97_spill] sm:$0xff] %v6068_v8  ;;  %4680 = vmatmul.msk.bf16.gmra.mxu0 %vm569_vm1, %v2175_v27  ;;  %v472_v8 = vld [vmem:[%s5287_s11 + $0xb30] sm:$0xff] }
 0x1d1   : > { %v1623_v10 = vpop.f32.mrf.mxu2  ;;  %v2176_v24 = vpack.c.bf16 %v472_v8, %v471_v35  ;;  %v234_v8 = vld [vmem:[%s5287_s11 + $0x200] sm:$0xff] }
 0x1d2   : > { %v1987_v60 = vpop.f32.mrf.mxu3  ;;  %v1750_v48 = vadd.f32 %v1623_v10, %v1003_v25  ;;  %v1004_v36 = vpop.f32.mrf.mxu1  ;;  %v6084_v10 = vpack.c.bf16 %v231_v59, %v230_v20  ;;  %v233_v20 = vld [vmem:[%s5287_s11 + $0x1f8] sm:$0xff]  ;;  %v235_v59 = vld [vmem:[%s5287_s11 + $0x208] sm:$0x1] }
 0x1d3   : > { %v1005_v27 = vadd.f32 %v1004_v36, %v5632_v47 }
 0x1d4   : > { %v2114_v9 = vadd.f32 %v1987_v60, %v1750_v48  ;;  %v6086_v60 = vpack.c.bf16 %v1308_v11, %v1306_v63  ;;  %v1812_v48 = vpack.c.bf16 %v396_v26, %v395_v50  ;;  %v1309_v50 = vrot.slane %v233_v20, 1 }
 0x1d5   : > { %v2353_v22 = vpop.f32.mrf.mxu0  ;;  %v1310_v26 = vrot.slane %v234_v8, 1 }
 0x1d6   : > { %v6075_v12 = vadd.f32 %v2351_v42, %v2114_v9 }
 0x1d8   : > { %7433 = vst [vmem:[#allocation98_spill] sm:$0xff] %v6075_v12 }
 0x1d9   : > { %v1625_v3 = vpop.f32.mrf.mxu2 }
 0x1da   : > { %v1989_v25 = vpop.f32.mrf.mxu3  ;;  %v1751_v38 = vadd.f32 %v1625_v3, %v1005_v27  ;;  %v1007_v42 = vpop.f32.mrf.mxu1  ;;  %v1312_v27 = vrot.slane %v235_v59, 1 }
 0x1db   : > { %v1008_v3 = vadd.f32 %v1007_v42, %v5648_v56  ;;  %v1311_v56 = vsel %vm1203_vm2, %v1309_v50, %v1310_v26  ;;  %v398_v42 = vld [vmem:[%s5287_s11 + $0x828] sm:$0xff] }
 0x1dc   : > { %v2115_v46 = vadd.f32 %v1989_v25, %v1751_v38  ;;  %v1313_v38 = vsel %vm1203_vm2, %v1310_v26, %v1312_v27 }
 0x1dd   : > { %v2356_v16 = vpop.f32.mrf.mxu0  ;;  %4585 = vmatmul.msk.bf16.gmra.mxu1 %vm569_vm1, %v6084_v10 }
 0x1de   : > { %4617 = vmatmul.msk.bf16.gmra.mxu2 %vm569_vm1, %v6086_v60  ;;  %v6093_v47 = vadd.f32 %v2353_v22, %v2115_v46  ;;  %v473_v46 = vld [vmem:[%s5287_s11 + $0xb40] sm:$0xff] }
 0x1df   : > { %4649 = vmatmul.msk.bf16.gmra.mxu3 %vm569_vm1, %v1812_v48  ;;  %v399_v48 = vld [vmem:[%s5287_s11 + $0x830] sm:$0xff] }
 0x1e0   : > { %7434 = vst [vmem:[#allocation99_spill] sm:$0xff] %v6093_v47  ;;  %4681 = vmatmul.msk.bf16.gmra.mxu0 %vm569_vm1, %v2176_v24  ;;  %v474_v47 = vld [vmem:[%s5287_s11 + $0xb48] sm:$0xff] }
 0x1e1   : > { %v1628_v36 = vpop.f32.mrf.mxu2  ;;  %v2177_v50 = vpack.c.bf16 %v474_v47, %v473_v46  ;;  %v237_v47 = vld [vmem:[%s5287_s11 + $0x218] sm:$0xff] }
 0x1e2   : > { %v1992_v9 = vpop.f32.mrf.mxu3  ;;  %v1752_v63 = vadd.f32 %v1628_v36, %v1008_v3  ;;  %v1009_v11 = vpop.f32.mrf.mxu1  ;;  %v6109_v36 = vpack.c.bf16 %v234_v8, %v233_v20  ;;  %v236_v20 = vld [vmem:[%s5287_s11 + $0x210] sm:$0xff]  ;;  %v238_v8 = vld [vmem:[%s5287_s11 + $0x220] sm:$0x1] }
 0x1e3   : > { %v1010_v24 = vadd.f32 %v1009_v11, %v5667_v41 }
 0x1e4   : > { %v2116_v22 = vadd.f32 %v1992_v9, %v1752_v63  ;;  %v6111_v9 = vpack.c.bf16 %v1313_v38, %v1311_v56  ;;  %v1813_v63 = vpack.c.bf16 %v399_v48, %v398_v42  ;;  %v1314_v42 = vrot.slane %v236_v20, 1 }
 0x1e5   : > { %v2358_v35 = vpop.f32.mrf.mxu0  ;;  %v1315_v48 = vrot.slane %v237_v47, 1 }
 0x1e6   : > { %v6100_v25 = vadd.f32 %v2356_v16, %v2116_v22 }
 0x1e8   : > { %7435 = vst [vmem:[#allocation100_spill] sm:$0xff] %v6100_v25 }
 0x1e9   : > { %v1630_v12 = vpop.f32.mrf.mxu2 }
 0x1ea   : > { %v1994_v3 = vpop.f32.mrf.mxu3  ;;  %v1753_v59 = vadd.f32 %v1630_v12, %v1010_v24  ;;  %v1012_v16 = vpop.f32.mrf.mxu1  ;;  %v1317_v24 = vrot.slane %v238_v8, 1 }
 0x1eb   : > { %v1013_v12 = vadd.f32 %v1012_v16, %v5683_v31  ;;  %v1316_v31 = vsel %vm1203_vm2, %v1314_v42, %v1315_v48  ;;  %v401_v16 = vld [vmem:[%s5287_s11 + $0x840] sm:$0xff] }
 0x1ec   : > { %v2117_v26 = vadd.f32 %v1994_v3, %v1753_v59  ;;  %v1318_v59 = vsel %vm1203_vm2, %v1315_v48, %v1317_v24 }
 0x1ed   : > { %v2361_v27 = vpop.f32.mrf.mxu0  ;;  %4586 = vmatmul.msk.bf16.gmra.mxu1 %vm569_vm1, %v6109_v36 }
 0x1ee   : > { %4618 = vmatmul.msk.bf16.gmra.mxu2 %vm569_vm1, %v6111_v9  ;;  %v6118_v41 = vadd.f32 %v2358_v35, %v2117_v26  ;;  %v475_v26 = vld [vmem:[%s5287_s11 + $0xb58] sm:$0xff] }
 0x1ef   : > { %4650 = vmatmul.msk.bf16.gmra.mxu3 %vm569_vm1, %v1813_v63  ;;  %v402_v63 = vld [vmem:[%s5287_s11 + $0x848] sm:$0xff] }
 0x1f0   : > { %7436 = vst [vmem:[#allocation101_spill] sm:$0xff] %v6118_v41  ;;  %4682 = vmatmul.msk.bf16.gmra.mxu0 %vm569_vm1, %v2177_v50  ;;  %v476_v41 = vld [vmem:[%s5287_s11 + $0xb60] sm:$0xff] }
 0x1f1   : > { %v1633_v11 = vpop.f32.mrf.mxu2  ;;  %v2178_v42 = vpack.c.bf16 %v476_v41, %v475_v26  ;;  %v240_v41 = vld [vmem:[%s5287_s11 + $0x230] sm:$0xff] }
 0x1f2   : > { %v1997_v22 = vpop.f32.mrf.mxu3  ;;  %v1754_v56 = vadd.f32 %v1633_v11, %v1013_v12  ;;  %v1014_v38 = vpop.f32.mrf.mxu1  ;;  %v6134_v11 = vpack.c.bf16 %v237_v47, %v236_v20  ;;  %v239_v20 = vld [vmem:[%s5287_s11 + $0x228] sm:$0xff]  ;;  %v241_v47 = vld [vmem:[%s5287_s11 + $0x238] sm:$0x1] }
 0x1f3   : > { %v1015_v50 = vadd.f32 %v1014_v38, %v5702_v4 }
 0x1f4   : > { %v2118_v35 = vadd.f32 %v1997_v22, %v1754_v56  ;;  %v6136_v22 = vpack.c.bf16 %v1318_v59, %v1316_v31  ;;  %v1814_v56 = vpack.c.bf16 %v402_v63, %v401_v16  ;;  %v1319_v16 = vrot.slane %v239_v20, 1 }
 0x1f5   : > { %v2363_v46 = vpop.f32.mrf.mxu0  ;;  %v1320_v63 = vrot.slane %v240_v41, 1 }
 0x1f6   : > { %v6125_v3 = vadd.f32 %v2361_v27, %v2118_v35 }
 0x1f8   : > { %7437 = vst [vmem:[#allocation102_spill] sm:$0xff] %v6125_v3 }
 0x1f9   : > { %v1635_v25 = vpop.f32.mrf.mxu2 }
 0x1fa   : > { %v1999_v12 = vpop.f32.mrf.mxu3  ;;  %v1755_v8 = vadd.f32 %v1635_v25, %v1015_v50  ;;  %v1017_v27 = vpop.f32.mrf.mxu1  ;;  %v1322_v50 = vrot.slane %v241_v47, 1 }
 0x1fb   : > { %v1018_v25 = vadd.f32 %v1017_v27, %v5718_v14  ;;  %v1321_v14 = vsel %vm1203_vm2, %v1319_v16, %v1320_v63  ;;  %v404_v27 = vld [vmem:[%s5287_s11 + $0x858] sm:$0xff] }
 0x1fc   : > { %v2119_v48 = vadd.f32 %v1999_v12, %v1755_v8  ;;  %v1323_v8 = vsel %vm1203_vm2, %v1320_v63, %v1322_v50 }
 0x1fd   : > { %v2366_v24 = vpop.f32.mrf.mxu0  ;;  %4587 = vmatmul.msk.bf16.gmra.mxu1 %vm569_vm1, %v6134_v11 }
 0x1fe   : > { %4619 = vmatmul.msk.bf16.gmra.mxu2 %vm569_vm1, %v6136_v22  ;;  %v6143_v4 = vadd.f32 %v2363_v46, %v2119_v48  ;;  %v477_v48 = vld [vmem:[%s5287_s11 + $0xb70] sm:$0xff] }
 0x1ff   : > { %4651 = vmatmul.msk.bf16.gmra.mxu3 %vm569_vm1, %v1814_v56  ;;  %v405_v56 = vld [vmem:[%s5287_s11 + $0x860] sm:$0xff] }
 0x200   : > { %7438 = vst [vmem:[#allocation103_spill] sm:$0xff] %v6143_v4  ;;  %4683 = vmatmul.msk.bf16.gmra.mxu0 %vm569_vm1, %v2178_v42  ;;  %v478_v4 = vld [vmem:[%s5287_s11 + $0xb78] sm:$0xff] }
 0x201   : > { %v1638_v38 = vpop.f32.mrf.mxu2  ;;  %v2179_v16 = vpack.c.bf16 %v478_v4, %v477_v48  ;;  %v243_v4 = vld [vmem:[%s5287_s11 + $0x248] sm:$0xff] }
 0x202   : > { %v2002_v35 = vpop.f32.mrf.mxu3  ;;  %v1756_v31 = vadd.f32 %v1638_v38, %v1018_v25  ;;  %v1019_v59 = vpop.f32.mrf.mxu1  ;;  %v6159_v38 = vpack.c.bf16 %v240_v41, %v239_v20  ;;  %v242_v20 = vld [vmem:[%s5287_s11 + $0x240] sm:$0xff]  ;;  %v244_v41 = vld [vmem:[%s5287_s11 + $0x250] sm:$0x1] }
 0x203   : > { %v1020_v42 = vadd.f32 %v1019_v59, %v5737_v43 }
 0x204   : > { %v2120_v46 = vadd.f32 %v2002_v35, %v1756_v31  ;;  %v6161_v35 = vpack.c.bf16 %v1323_v8, %v1321_v14  ;;  %v1815_v31 = vpack.c.bf16 %v405_v56, %v404_v27  ;;  %v1324_v27 = vrot.slane %v242_v20, 1 }
 0x205   : > { %v2368_v26 = vpop.f32.mrf.mxu0  ;;  %v1325_v56 = vrot.slane %v243_v4, 1 }
 0x206   : > { %v6150_v12 = vadd.f32 %v2366_v24, %v2120_v46 }
 0x208   : > { %7439 = vst [vmem:[#allocation104_spill] sm:$0xff] %v6150_v12 }
 0x209   : > { %v1640_v3 = vpop.f32.mrf.mxu2 }
 0x20a   : > { %v2004_v25 = vpop.f32.mrf.mxu3  ;;  %v1757_v47 = vadd.f32 %v1640_v3, %v1020_v42  ;;  %v1022_v24 = vpop.f32.mrf.mxu1  ;;  %v1327_v42 = vrot.slane %v244_v41, 1 }
 0x20b   : > { %v1023_v3 = vadd.f32 %v1022_v24, %v5753_v44  ;;  %v1326_v44 = vsel %vm1203_vm2, %v1324_v27, %v1325_v56  ;;  %v407_v24 = vld [vmem:[%s5287_s11 + $0x870] sm:$0xff] }
 0x20c   : > { %v2121_v63 = vadd.f32 %v2004_v25, %v1757_v47  ;;  %v1328_v47 = vsel %vm1203_vm2, %v1325_v56, %v1327_v42 }
 0x20d   : > { %v2371_v50 = vpop.f32.mrf.mxu0  ;;  %4588 = vmatmul.msk.bf16.gmra.mxu1 %vm569_vm1, %v6159_v38 }
 0x20e   : > { %4620 = vmatmul.msk.bf16.gmra.mxu2 %vm569_vm1, %v6161_v35  ;;  %v6168_v43 = vadd.f32 %v2368_v26, %v2121_v63  ;;  %v479_v63 = vld [vmem:[%s5287_s11 + $0xb88] sm:$0xff] }
 0x20f   : > { %4652 = vmatmul.msk.bf16.gmra.mxu3 %vm569_vm1, %v1815_v31  ;;  %v408_v31 = vld [vmem:[%s5287_s11 + $0x878] sm:$0xff] }
 0x210   : > { %7440 = vst [vmem:[#allocation105_spill] sm:$0xff] %v6168_v43  ;;  %4684 = vmatmul.msk.bf16.gmra.mxu0 %vm569_vm1, %v2179_v16  ;;  %v480_v43 = vld [vmem:[%s5287_s11 + $0xb90] sm:$0xff] }
 0x211   : > { %v1643_v59 = vpop.f32.mrf.mxu2  ;;  %v2180_v27 = vpack.c.bf16 %v480_v43, %v479_v63  ;;  %v246_v43 = vld [vmem:[%s5287_s11 + $0x260] sm:$0xff] }
 0x212   : > { %v2007_v46 = vpop.f32.mrf.mxu3  ;;  %v1758_v14 = vadd.f32 %v1643_v59, %v1023_v3  ;;  %v1024_v8 = vpop.f32.mrf.mxu1  ;;  %v6184_v59 = vpack.c.bf16 %v243_v4, %v242_v20  ;;  %v245_v20 = vld [vmem:[%s5287_s11 + $0x258] sm:$0xff]  ;;  %v247_v4 = vld [vmem:[%s5287_s11 + $0x268] sm:$0x1] }
 0x213   : > { %v1025_v16 = vadd.f32 %v1024_v8, %v5772_v13 }
 0x214   : > { %v2122_v26 = vadd.f32 %v2007_v46, %v1758_v14  ;;  %v6186_v46 = vpack.c.bf16 %v1328_v47, %v1326_v44  ;;  %v1816_v14 = vpack.c.bf16 %v408_v31, %v407_v24  ;;  %v1329_v24 = vrot.slane %v245_v20, 1 }
 0x215   : > { %v2373_v48 = vpop.f32.mrf.mxu0  ;;  %v1330_v31 = vrot.slane %v246_v43, 1 }
 0x216   : > { %v6175_v25 = vadd.f32 %v2371_v50, %v2122_v26 }
 0x218   : > { %7441 = vst [vmem:[#allocation106_spill] sm:$0xff] %v6175_v25 }
 0x219   : > { %v1645_v12 = vpop.f32.mrf.mxu2 }
 0x21a   : > { %v2009_v3 = vpop.f32.mrf.mxu3  ;;  %v1759_v41 = vadd.f32 %v1645_v12, %v1025_v16  ;;  %v1027_v50 = vpop.f32.mrf.mxu1  ;;  %v1332_v16 = vrot.slane %v247_v4, 1 }
 0x21b   : > { %v1028_v12 = vadd.f32 %v1027_v50, %v5523_v61  ;;  %v1331_v61 = vsel %vm1203_vm2, %v1329_v24, %v1330_v31  ;;  %v410_v50 = vld [vmem:[%s5287_s11 + $0x888] sm:$0xff] }
 0x21c   : > { %v2123_v56 = vadd.f32 %v2009_v3, %v1759_v41  ;;  %v1333_v41 = vsel %vm1203_vm2, %v1330_v31, %v1332_v16 }
 0x21d   : > { %v2376_v42 = vpop.f32.mrf.mxu0  ;;  %4589 = vmatmul.msk.bf16.gmra.mxu1 %vm569_vm1, %v6184_v59 }
 0x21e   : > { %4621 = vmatmul.msk.bf16.gmra.mxu2 %vm569_vm1, %v6186_v46  ;;  %v6193_v13 = vadd.f32 %v2373_v48, %v2123_v56  ;;  %v481_v56 = vld [vmem:[%s5287_s11 + $0xba0] sm:$0xff] }
 0x21f   : > { %4653 = vmatmul.msk.bf16.gmra.mxu3 %vm569_vm1, %v1816_v14  ;;  %v411_v14 = vld [vmem:[%s5287_s11 + $0x890] sm:$0xff] }
 0x220   : > { %7442 = vst [vmem:[#allocation107_spill] sm:$0xff] %v6193_v13  ;;  %4685 = vmatmul.msk.bf16.gmra.mxu0 %vm569_vm1, %v2180_v27  ;;  %v482_v13 = vld [vmem:[%s5287_s11 + $0xba8] sm:$0xff] }
 0x221   : > { %v1648_v8 = vpop.f32.mrf.mxu2  ;;  %v2181_v24 = vpack.c.bf16 %v482_v13, %v481_v56  ;;  %v249_v13 = vld [vmem:[%s5287_s11 + $0x278] sm:$0xff] }
 0x222   : > { %v2012_v26 = vpop.f32.mrf.mxu3  ;;  %v1760_v44 = vadd.f32 %v1648_v8, %v1028_v12  ;;  %v1029_v47 = vpop.f32.mrf.mxu1  ;;  %v6209_v8 = vpack.c.bf16 %v246_v43, %v245_v20  ;;  %v248_v20 = vld [vmem:[%s5287_s11 + $0x270] sm:$0xff]  ;;  %v250_v43 = vld [vmem:[%s5287_s11 + $0x280] sm:$0x1] }
 0x223   : > { %v1030_v27 = vadd.f32 %v1029_v47, %v5537_v23 }
 0x224   : > { %v2124_v48 = vadd.f32 %v2012_v26, %v1760_v44  ;;  %v6211_v26 = vpack.c.bf16 %v1333_v41, %v1331_v61  ;;  %v1817_v44 = vpack.c.bf16 %v411_v14, %v410_v50  ;;  %v1334_v50 = vrot.slane %v248_v20, 1 }
 0x225   : > { %v2378_v63 = vpop.f32.mrf.mxu0  ;;  %v1335_v14 = vrot.slane %v249_v13, 1 }
 0x226   : > { %v6200_v3 = vadd.f32 %v2376_v42, %v2124_v48 }
 0x228   : > { %7443 = vst [vmem:[#allocation108_spill] sm:$0xff] %v6200_v3 }
 0x229   : > { %v1650_v25 = vpop.f32.mrf.mxu2 }
 0x22a   : > { %v2014_v12 = vpop.f32.mrf.mxu3  ;;  %v1761_v4 = vadd.f32 %v1650_v25, %v1030_v27  ;;  %v1032_v42 = vpop.f32.mrf.mxu1  ;;  %v1337_v27 = vrot.slane %v250_v43, 1 }
 0x22b   : > { %v1033_v25 = vadd.f32 %v1032_v42, %v5558_v49  ;;  %v1336_v49 = vsel %vm1203_vm2, %v1334_v50, %v1335_v14  ;;  %v413_v42 = vld [vmem:[%s5287_s11 + $0x8a0] sm:$0xff] }
 0x22c   : > { %v2125_v31 = vadd.f32 %v2014_v12, %v1761_v4  ;;  %v1338_v4 = vsel %vm1203_vm2, %v1335_v14, %v1337_v27 }
 0x22d   : > { %v2381_v16 = vpop.f32.mrf.mxu0  ;;  %4590 = vmatmul.msk.bf16.gmra.mxu1 %vm569_vm1, %v6209_v8 }
 0x22e   : > { %4622 = vmatmul.msk.bf16.gmra.mxu2 %vm569_vm1, %v6211_v26  ;;  %v6218_v23 = vadd.f32 %v2378_v63, %v2125_v31  ;;  %v483_v31 = vld [vmem:[%s5287_s11 + $0xbb8] sm:$0xff] }
 0x22f   : > { %4654 = vmatmul.msk.bf16.gmra.mxu3 %vm569_vm1, %v1817_v44  ;;  %v414_v44 = vld [vmem:[%s5287_s11 + $0x8a8] sm:$0xff] }
 0x230   : > { %7444 = vst [vmem:[#allocation109_spill] sm:$0xff] %v6218_v23  ;;  %4686 = vmatmul.msk.bf16.gmra.mxu0 %vm569_vm1, %v2181_v24  ;;  %v484_v23 = vld [vmem:[%s5287_s11 + $0xbc0] sm:$0xff] }
 0x231   : > { %v1653_v47 = vpop.f32.mrf.mxu2  ;;  %v2182_v50 = vpack.c.bf16 %v484_v23, %v483_v31  ;;  %v252_v23 = vld [vmem:[%s5287_s11 + $0x290] sm:$0xff] }
 0x232   : > { %v2017_v48 = vpop.f32.mrf.mxu3  ;;  %v1762_v61 = vadd.f32 %v1653_v47, %v1033_v25  ;;  %v1034_v41 = vpop.f32.mrf.mxu1  ;;  %v6234_v47 = vpack.c.bf16 %v249_v13, %v248_v20  ;;  %v251_v20 = vld [vmem:[%s5287_s11 + $0x288] sm:$0xff]  ;;  %v253_v13 = vld [vmem:[%s5287_s11 + $0x298] sm:$0x1] }
 0x233   : > { %v1035_v24 = vadd.f32 %v1034_v41, %v5572_v28 }
 0x234   : > { %v2126_v63 = vadd.f32 %v2017_v48, %v1762_v61  ;;  %v6236_v48 = vpack.c.bf16 %v1338_v4, %v1336_v49  ;;  %v1818_v61 = vpack.c.bf16 %v414_v44, %v413_v42  ;;  %v1339_v42 = vrot.slane %v251_v20, 1 }
 0x235   : > { %v2383_v56 = vpop.f32.mrf.mxu0  ;;  %v1340_v44 = vrot.slane %v252_v23, 1 }
 0x236   : > { %v6225_v12 = vadd.f32 %v2381_v16, %v2126_v63 }
 0x238   : > { %7445 = vst [vmem:[#allocation110_spill] sm:$0xff] %v6225_v12 }
 0x239   : > { %v1655_v3 = vpop.f32.mrf.mxu2 }
 0x23a   : > { %v2019_v25 = vpop.f32.mrf.mxu3  ;;  %v1763_v43 = vadd.f32 %v1655_v3, %v1035_v24  ;;  %v1037_v16 = vpop.f32.mrf.mxu1  ;;  %v1342_v24 = vrot.slane %v253_v13, 1 }
 0x23b   : > { %v1038_v3 = vadd.f32 %v1037_v16, %v5593_v6  ;;  %v1341_v6 = vsel %vm1203_vm2, %v1339_v42, %v1340_v44  ;;  %v416_v16 = vld [vmem:[%s5287_s11 + $0x8b8] sm:$0xff] }
 0x23c   : > { %v2127_v14 = vadd.f32 %v2019_v25, %v1763_v43  ;;  %v1343_v43 = vsel %vm1203_vm2, %v1340_v44, %v1342_v24 }
 0x23d   : > { %v2386_v27 = vpop.f32.mrf.mxu0  ;;  %4591 = vmatmul.msk.bf16.gmra.mxu1 %vm569_vm1, %v6234_v47 }
 0x23e   : > { %4623 = vmatmul.msk.bf16.gmra.mxu2 %vm569_vm1, %v6236_v48  ;;  %v6243_v28 = vadd.f32 %v2383_v56, %v2127_v14  ;;  %v485_v14 = vld [vmem:[%s5287_s11 + $0xbd0] sm:$0xff] }
 0x23f   : > { %4655 = vmatmul.msk.bf16.gmra.mxu3 %vm569_vm1, %v1818_v61  ;;  %v417_v61 = vld [vmem:[%s5287_s11 + $0x8c0] sm:$0xff] }
 0x240   : > { %7446 = vst [vmem:[#allocation111_spill] sm:$0xff] %v6243_v28  ;;  %4687 = vmatmul.msk.bf16.gmra.mxu0 %vm569_vm1, %v2182_v50  ;;  %v486_v28 = vld [vmem:[%s5287_s11 + $0xbd8] sm:$0xff] }
 0x241   : > { %v1658_v41 = vpop.f32.mrf.mxu2  ;;  %v2183_v42 = vpack.c.bf16 %v486_v28, %v485_v14  ;;  %v255_v28 = vld [vmem:[%s5287_s11 + $0x2a8] sm:$0xff] }
 0x242   : > { %v2022_v63 = vpop.f32.mrf.mxu3  ;;  %v1764_v49 = vadd.f32 %v1658_v41, %v1038_v3  ;;  %v1039_v4 = vpop.f32.mrf.mxu1  ;;  %v6259_v41 = vpack.c.bf16 %v252_v23, %v251_v20  ;;  %v254_v20 = vld [vmem:[%s5287_s11 + $0x2a0] sm:$0xff]  ;;  %v256_v23 = vld [vmem:[%s5287_s11 + $0x2b0] sm:$0x1] }
 0x243   : > { %v1040_v50 = vadd.f32 %v1039_v4, %v5607_v18 }
 0x244   : > { %v2128_v56 = vadd.f32 %v2022_v63, %v1764_v49  ;;  %v6261_v63 = vpack.c.bf16 %v1343_v43, %v1341_v6  ;;  %v1819_v49 = vpack.c.bf16 %v417_v61, %v416_v16  ;;  %v1344_v16 = vrot.slane %v254_v20, 1 }
 0x245   : > { %v2388_v31 = vpop.f32.mrf.mxu0  ;;  %v1345_v61 = vrot.slane %v255_v28, 1 }
 0x246   : > { %v6250_v25 = vadd.f32 %v2386_v27, %v2128_v56 }
 0x248   : > { %7447 = vst [vmem:[#allocation112_spill] sm:$0xff] %v6250_v25 }
 0x249   : > { %v1660_v12 = vpop.f32.mrf.mxu2 }
 0x24a   : > { %v2024_v3 = vpop.f32.mrf.mxu3  ;;  %v1765_v13 = vadd.f32 %v1660_v12, %v1040_v50  ;;  %v1042_v27 = vpop.f32.mrf.mxu1  ;;  %v1347_v50 = vrot.slane %v256_v23, 1 }
 0x24b   : > { %v1043_v12 = vadd.f32 %v1042_v27, %v5628_v32  ;;  %v1346_v32 = vsel %vm1203_vm2, %v1344_v16, %v1345_v61  ;;  %v419_v27 = vld [vmem:[%s5287_s11 + $0x8d0] sm:$0xff] }
 0x24c   : > { %v2129_v44 = vadd.f32 %v2024_v3, %v1765_v13  ;;  %v1348_v13 = vsel %vm1203_vm2, %v1345_v61, %v1347_v50 }
 0x24d   : > { %v2391_v24 = vpop.f32.mrf.mxu0  ;;  %4592 = vmatmul.msk.bf16.gmra.mxu1 %vm569_vm1, %v6259_v41 }
 0x24e   : > { %4624 = vmatmul.msk.bf16.gmra.mxu2 %vm569_vm1, %v6261_v63  ;;  %v6268_v18 = vadd.f32 %v2388_v31, %v2129_v44  ;;  %v487_v44 = vld [vmem:[%s5287_s11 + $0xbe8] sm:$0xff] }
 0x24f   : > { %4656 = vmatmul.msk.bf16.gmra.mxu3 %vm569_vm1, %v1819_v49  ;;  %v420_v49 = vld [vmem:[%s5287_s11 + $0x8d8] sm:$0xff] }
 0x250   : > { %7448 = vst [vmem:[#allocation113_spill] sm:$0xff] %v6268_v18  ;;  %4688 = vmatmul.msk.bf16.gmra.mxu0 %vm569_vm1, %v2183_v42  ;;  %v488_v18 = vld [vmem:[%s5287_s11 + $0xbf0] sm:$0xff] }
 0x251   : > { %v1663_v4 = vpop.f32.mrf.mxu2  ;;  %v2184_v16 = vpack.c.bf16 %v488_v18, %v487_v44  ;;  %v258_v18 = vld [vmem:[%s5287_s11 + $0x2c0] sm:$0xff] }
 0x252   : > { %v2027_v56 = vpop.f32.mrf.mxu3  ;;  %v1766_v6 = vadd.f32 %v1663_v4, %v1043_v12  ;;  %v1044_v43 = vpop.f32.mrf.mxu1  ;;  %v6284_v4 = vpack.c.bf16 %v255_v28, %v254_v20  ;;  %v257_v20 = vld [vmem:[%s5287_s11 + $0x2b8] sm:$0xff]  ;;  %v259_v28 = vld [vmem:[%s5287_s11 + $0x2c8] sm:$0x1] }
 0x253   : > { %v1045_v42 = vadd.f32 %v1044_v43, %v5642_v29 }
 0x254   : > { %v2130_v31 = vadd.f32 %v2027_v56, %v1766_v6  ;;  %7450 = vst [vmem:[#allocation115_spill] sm:$0xff] %v6284_v4  ;;  %v6286_v56 = vpack.c.bf16 %v1348_v13, %v1346_v32  ;;  %v1820_v6 = vpack.c.bf16 %v420_v49, %v419_v27  ;;  %v1349_v27 = vrot.slane %v257_v20, 1 }
 0x255   : > { %v2393_v14 = vpop.f32.mrf.mxu0  ;;  %v1350_v49 = vrot.slane %v258_v18, 1 }
 0x256   : > { %v6275_v3 = vadd.f32 %v2391_v24, %v2130_v31  ;;  %7451 = vst [vmem:[#allocation116_spill] sm:$0xff] %v6286_v56 }
 0x258   : > { %7449 = vst [vmem:[#allocation114_spill] sm:$0xff] %v6275_v3 }
 0x259   : > { %v1665_v25 = vpop.f32.mrf.mxu2 }
 0x25a   : > { %v2029_v12 = vpop.f32.mrf.mxu3  ;;  %v1767_v23 = vadd.f32 %v1665_v25, %v1045_v42  ;;  %v1047_v24 = vpop.f32.mrf.mxu1  ;;  %v1352_v42 = vrot.slane %v259_v28, 1 }
 0x25b   : > { %v1048_v25 = vadd.f32 %v1047_v24, %v5663_v17  ;;  %v1351_v17 = vsel %vm1203_vm2, %v1349_v27, %v1350_v49  ;;  %v422_v24 = vld [vmem:[%s5287_s11 + $0x8e8] sm:$0xff] }
 0x25c   : > { %v2131_v61 = vadd.f32 %v2029_v12, %v1767_v23  ;;  %v1353_v23 = vsel %vm1203_vm2, %v1350_v49, %v1352_v42 }
 0x25d   : > { %v2396_v50 = vpop.f32.mrf.mxu0  ;;  %4593 = vmatmul.msk.bf16.gmra.mxu1 %vm569_vm1, %v6284_v4  ;;  %v340_v4 = vld [vmem:[%s5287_s11 + $0x658] sm:$0x1] }
 0x25e   : > { %4625 = vmatmul.msk.bf16.gmra.mxu2 %vm569_vm1, %v6286_v56  ;;  %v6293_v29 = vadd.f32 %v2393_v14, %v2131_v61  ;;  %v489_v61 = vld [vmem:[%s5287_s11 + $0xc00] sm:$0xff]  ;;  %v494_v56 = vld [vmem:[%s5287_s11 + $0xc38] sm:$0xff] }
 0x25f   : > { %4657 = vmatmul.msk.bf16.gmra.mxu3 %vm569_vm1, %v1820_v6  ;;  %v423_v6 = vld [vmem:[%s5287_s11 + $0x8f0] sm:$0xff] }
 0x260   : > { %7452 = vst [vmem:[#allocation117_spill] sm:$0xff] %v6293_v29  ;;  %4689 = vmatmul.msk.bf16.gmra.mxu0 %vm569_vm1, %v2184_v16  ;;  %v490_v29 = vld [vmem:[%s5287_s11 + $0xc08] sm:$0xff] }
 0x261   : > { %v1668_v43 = vpop.f32.mrf.mxu2  ;;  %v2185_v27 = vpack.c.bf16 %v490_v29, %v489_v61  ;;  %v261_v29 = vld [vmem:[%s5287_s11 + $0x2d8] sm:$0xff] }
 0x262   : > { %v2032_v31 = vpop.f32.mrf.mxu3  ;;  %v1768_v32 = vadd.f32 %v1668_v43, %v1048_v25  ;;  %v1049_v13 = vpop.f32.mrf.mxu1  ;;  %v6309_v43 = vpack.c.bf16 %v258_v18, %v257_v20  ;;  %v260_v18 = vld [vmem:[%s5287_s11 + $0x2d0] sm:$0xff] }
 0x263   : > { %v1050_v16 = vadd.f32 %v1049_v13, %v5677_v15  ;;  %v262_v13 = vld [vmem:[%s5287_s11 + $0x2e0] sm:$0x1] }
 0x264   : > { %v2132_v14 = vadd.f32 %v2032_v31, %v1768_v32  ;;  %7454 = vst [vmem:[#allocation119_spill] sm:$0xff] %v6309_v43  ;;  %v6311_v31 = vpack.c.bf16 %v1353_v23, %v1351_v17  ;;  %v1821_v32 = vpack.c.bf16 %v423_v6, %v422_v24  ;;  %v1354_v6 = vrot.slane %v260_v18, 1 }
 0x265   : > { %v2398_v44 = vpop.f32.mrf.mxu0  ;;  %v1357_v61 = vrot.slane %v262_v13, 1 }
 0x266   : > { %v6300_v12 = vadd.f32 %v2396_v50, %v2132_v14  ;;  %7455 = vst [vmem:[#allocation120_spill] sm:$0xff] %v6311_v31 }
 0x268   : > { %7453 = vst [vmem:[#allocation118_spill] sm:$0xff] %v6300_v12  ;;  %v491_v12 = vld [vmem:[%s5287_s11 + $0xc18] sm:$0xff] }
 0x269   : > { %v1670_v3 = vpop.f32.mrf.mxu2 }
 0x26a   : > { %v2034_v25 = vpop.f32.mrf.mxu3  ;;  %v1769_v28 = vadd.f32 %v1670_v3, %v1050_v16  ;;  %v1052_v50 = vpop.f32.mrf.mxu1  ;;  %v7457_v3 = vld [vmem:[#allocation58_spill] sm:$0xff]  ;;  %v1355_v16 = vrot.slane %v261_v29, 1 }
 0x26b   : > { %v1053_v20 = vadd.f32 %v1052_v50, %v7457_v3  ;;  %v7459_v3 = vld [vmem:[#allocation60_spill] sm:$0xff] }
 0x26c   : > { %v2133_v49 = vadd.f32 %v2034_v25, %v1769_v28  ;;  %v1356_v50 = vsel %vm1203_vm2, %v1354_v6, %v1355_v16 }
 0x26d   : > { %v2401_v42 = vpop.f32.mrf.mxu0  ;;  %4594 = vmatmul.msk.bf16.gmra.mxu1 %vm569_vm1, %v6309_v43 }
 0x26e   : > { %4626 = vmatmul.msk.bf16.gmra.mxu2 %vm569_vm1, %v6311_v31  ;;  %v6318_v15 = vadd.f32 %v2398_v44, %v2133_v49  ;;  %v426_v49 = vld [vmem:[%s5287_s11 + $0x908] sm:$0xff]  ;;  %v492_v31 = vld [vmem:[%s5287_s11 + $0xc20] sm:$0xff] }
 0x26f   : > { %4658 = vmatmul.msk.bf16.gmra.mxu3 %vm569_vm1, %v1821_v32  ;;  %v1358_v32 = vsel %vm1203_vm2, %v1355_v16, %v1357_v61  ;;  %v2186_v6 = vpack.c.bf16 %v492_v31, %v491_v12  ;;  %v264_v12 = vld [vmem:[%s5287_s11 + $0x2f0] sm:$0xff]  ;;  %v265_v31 = vld [vmem:[%s5287_s11 + $0x2f8] sm:$0x1] }
 0x270   : > { %7456 = vst [vmem:[#allocation121_spill] sm:$0xff] %v6318_v15  ;;  %4690 = vmatmul.msk.bf16.gmra.mxu0 %vm569_vm1, %v2185_v27  ;;  %v425_v27 = vld [vmem:[%s5287_s11 + $0x900] sm:$0xff] }
 0x271   : > { %v1673_v14 = vpop.f32.mrf.mxu2 }
 0x272   : > { %v2037_v17 = vpop.f32.mrf.mxu3  ;;  %v1770_v23 = vadd.f32 %v1673_v14, %v1053_v20  ;;  %v1054_v24 = vpop.f32.mrf.mxu1  ;;  %v6334_v14 = vpack.c.bf16 %v261_v29, %v260_v18  ;;  %v263_v18 = vld [vmem:[%s5287_s11 + $0x2e8] sm:$0xff] }
 0x273   : > { %v1055_v15 = vadd.f32 %v1054_v24, %v7459_v3 }
 0x274   : > { %v2134_v44 = vadd.f32 %v2037_v17, %v1770_v23  ;;  %7460 = vst [vmem:[#allocation60_spill] sm:$0xff] %v6334_v14  ;;  %v6336_v17 = vpack.c.bf16 %v1358_v32, %v1356_v50  ;;  %v1822_v23 = vpack.c.bf16 %v426_v49, %v425_v27  ;;  %v1359_v27 = vrot.slane %v263_v18, 1 }
 0x275   : > { %v2403_v25 = vpop.f32.mrf.mxu0  ;;  %v1362_v49 = vrot.slane %v265_v31, 1 }
 0x276   : > { %v6325_v28 = vadd.f32 %v2401_v42, %v2134_v44  ;;  %7461 = vst [vmem:[#allocation122_spill] sm:$0xff] %v6336_v17 }
 0x278   : > { %7458 = vst [vmem:[#allocation58_spill] sm:$0xff] %v6325_v28  ;;  %v7465_v28 = vld [vmem:[#allocation66_spill] sm:$0xff] }
 0x279   : > { %v1675_v43 = vpop.f32.mrf.mxu2 }
 0x27a   : > { %v2039_v20 = vpop.f32.mrf.mxu3  ;;  %v1771_v13 = vadd.f32 %v1675_v43, %v1055_v15  ;;  %v1057_v42 = vpop.f32.mrf.mxu1  ;;  %v7463_v43 = vld [vmem:[#allocation64_spill] sm:$0xff] }
 0x27b   : > { %v1058_v15 = vadd.f32 %v1057_v42, %v7463_v43  ;;  %v5064_v42 = vld [vmem:[%s5287_s11 + $0x648] sm:$0xff] }
 0x27c   : > { %v2135_v16 = vadd.f32 %v2039_v20, %v1771_v13 }
 0x27d   : > { %v2406_v61 = vpop.f32.mrf.mxu0  ;;  %4595 = vmatmul.msk.bf16.gmra.mxu1 %vm569_vm1, %v6334_v14  ;;  %v493_v14 = vld [vmem:[%s5287_s11 + $0xc30] sm:$0xff] }
 0x27e   : > { %4627 = vmatmul.msk.bf16.gmra.mxu2 %vm569_vm1, %v6336_v17  ;;  %v6343_v24 = vadd.f32 %v2403_v25, %v2135_v16  ;;  %v1360_v25 = vrot.slane %v264_v12, 1 }
 0x27f   : > { %4659 = vmatmul.msk.bf16.gmra.mxu3 %vm569_vm1, %v1822_v23  ;;  %v2621_v23 = vrot.slane %v5064_v42, 1 }
 0x280   : > { %7462 = vst [vmem:[#allocation123_spill] sm:$0xff] %v6343_v24  ;;  %4691 = vmatmul.msk.bf16.gmra.mxu0 %vm569_vm1, %v2186_v6  ;;  %v5065_v6 = vld [vmem:[%s5287_s11 + $0x650] sm:$0xff]  ;;  %v1361_v43 = vsel %vm1203_vm2, %v1359_v27, %v1360_v25  ;;  %v1363_v24 = vsel %vm1203_vm2, %v1360_v25, %v1362_v49  ;;  %v2187_v27 = vpack.c.bf16 %v494_v56, %v493_v14  ;;  %v7469_v56 = vld [vmem:[#allocation70_spill] sm:$0xff] }
 0x281   : > { %v1678_v29 = vpop.f32.mrf.mxu2  ;;  %v2622_v16 = vrot.slane %v5065_v6, 1 }
 0x282   : > { %v2042_v44 = vpop.f32.mrf.mxu3  ;;  %v1772_v50 = vadd.f32 %v1678_v29, %v1058_v15  ;;  %v1059_v32 = vpop.f32.mrf.mxu1  ;;  %v428_v15 = vld [vmem:[%s5287_s11 + $0x918] sm:$0xff]  ;;  %v429_v29 = vld [vmem:[%s5287_s11 + $0x920] sm:$0xff] }
 0x283   : > { %v1060_v17 = vadd.f32 %v1059_v32, %v7465_v28  ;;  %v1823_v6 = vpack.c.bf16 %v429_v29, %v428_v15  ;;  %v6367_v25 = vsel %vm1203_vm2, %v2621_v23, %v2622_v16  ;;  %v5066_v29 = vld [vmem:[%s5287_s11 + $0x660] sm:$0xff] }
 0x284   : > { %v2136_v3 = vadd.f32 %v2042_v44, %v1772_v50  ;;  %v6362_v50 = vpack.c.bf16 %v264_v12, %v263_v18 }
 0x285   : > { %v2408_v20 = vpop.f32.mrf.mxu0 }
 0x286   : > { %v6350_v13 = vadd.f32 %v2406_v61, %v2136_v3  ;;  %7466 = vst [vmem:[#allocation66_spill] sm:$0xff] %v6362_v50  ;;  %v2624_v61 = vrot.slane %v340_v4, 1 }
 0x288   : > { %7464 = vst [vmem:[#allocation64_spill] sm:$0xff] %v6350_v13  ;;  %v6364_v13 = vpack.c.bf16 %v1363_v24, %v1361_v43  ;;  %v6370_v49 = vsel %vm1203_vm2, %v2622_v16, %v2624_v61 }
 0x289   : > { %v1680_v31 = vpop.f32.mrf.mxu2  ;;  %v2841_v18 = vpack.c.bf16 %v6370_v49, %v6367_v25 }
 0x28a   : > { %v2044_v44 = vpop.f32.mrf.mxu3  ;;  %v1773_v3 = vadd.f32 %v1680_v31, %v1060_v17  ;;  %v1062_v42 = vpop.f32.mrf.mxu1  ;;  %7467 = vst [vmem:[#allocation124_spill] sm:$0xff] %v6364_v13  ;;  %v2626_v31 = vrot.slane %v5066_v29, 1  ;;  %v7475_v29 = vld [vmem:[#allocation40_spill] sm:$0xff] }
 0x28b   : > { %v1063_v14 = vadd.f32 %v1062_v42, %v7469_v56 }
 0x28c   : > { %v2137_v28 = vadd.f32 %v2044_v44, %v1773_v3  ;;  %v5067_v44 = vld [vmem:[%s5287_s11 + $0x668] sm:$0xff]  ;;  %v7471_v3 = vld [vmem:[#allocation72_spill] sm:$0xff] }
 0x28d   : > { %v2411_v32 = vpop.f32.mrf.mxu0  ;;  %4596 = vmatmul.msk.bf16.gmra.mxu1 %vm569_vm1, %v6362_v50  ;;  %v2627_v61 = vrot.slane %v5067_v44, 1 }
 0x28e   : > { %4628 = vmatmul.msk.bf16.gmra.mxu2 %vm569_vm1, %v6364_v13  ;;  %v6379_v4 = vadd.f32 %v2408_v20, %v2137_v28  ;;  %v343_v20 = vld [vmem:[%s5287_s11 + $0x670] sm:$0x1] }
 0x28f   : > { %4660 = vmatmul.msk.bf16.gmra.mxu3 %vm569_vm1, %v1823_v6  ;;  %v6390_v56 = vsel %vm1203_vm2, %v2626_v31, %v2627_v61  ;;  %v7476_v31 = vld [vmem:[#allocation11_spill] sm:$0xff] }
 0x290   : > { %7468 = vst [vmem:[#allocation125_spill] sm:$0xff] %v6379_v4  ;;  %4692 = vmatmul.msk.bf16.gmra.mxu0 %vm569_vm1, %v2187_v27  ;;  %v2629_v27 = vrot.slane %v343_v20, 1 }
 0x291   : > { %v1683_v17 = vpop.f32.mrf.mxu2 }
 0x292   : > { %v2047_v24 = vpop.f32.mrf.mxu3  ;;  %v1774_v12 = vadd.f32 %v1683_v17, %v1063_v14  ;;  %v1064_v23 = vpop.f32.mrf.mxu1  ;;  %v6393_v14 = vsel %vm1203_vm2, %v2627_v61, %v2629_v27  ;;  %v7478_v61 = vld [vmem:[#allocation41_spill] sm:$0xff] }
 0x293   : > { %v1065_v6 = vadd.f32 %v1064_v23, %v7471_v3  ;;  %v7473_v23 = vld [vmem:[#allocation32_spill] sm:$0xff]  ;;  %v7479_v3 = vld [vmem:[#allocation38_spill] sm:$0xff] }
 0x294   : > { %v2138_v16 = vadd.f32 %v2047_v24, %v1774_v12  ;;  %v2842_v24 = vpack.c.bf16 %v6393_v14, %v6390_v56  ;;  %v7472_v12 = vld [vmem:[#allocation33_spill] sm:$0xff] }
 0x295   : > { %v2413_v43 = vpop.f32.mrf.mxu0 }
 0x296   : > { %v6383_v15 = vadd.f32 %v2411_v32, %v2138_v16  ;;  %v7474_v16 = vpack.c.bf16 %v7472_v12, %v7473_v23  ;;  %v5068_v12 = vld [vmem:[%s5287_s11 + $0x678] sm:$0xff] }
 0x297   : > { %v2631_v23 = vrot.slane %v5068_v12, 1 }
 0x298   : > { %7470 = vst [vmem:[#allocation70_spill] sm:$0xff] %v6383_v15 }
 0x299   : > { %v1685_v25 = vpop.f32.mrf.mxu2 }
 0x29a   : > { %v2049_v49 = vpop.f32.mrf.mxu3  ;;  %v1775_v28 = vadd.f32 %v1685_v25, %v1065_v6  ;;  %v1067_v42 = vpop.f32.mrf.mxu1 }
 0x29b   : > { %v1068_v6 = vadd.f32 %v1067_v42, %v7479_v3 }
 0x29c   : > { %v2139_v32 = vadd.f32 %v2049_v49, %v1775_v28 }
 0x29d   : > { %v2416_v17 = vpop.f32.mrf.mxu0  ;;  %4693 = vmatmul.msk.bf16.vlgmr.msra.gmra.mxu1 %vm569_vm1, %v7474_v16  ;;  %v5069_v16 = vld [vmem:[%s5287_s11 + $0x680] sm:$0xff] }
 0x29e   : > { %4725 = vmatmul.msk.bf16.vlgmr.msra.gmra.mxu2 %vm569_vm1, %v7475_v29  ;;  %v6405_v44 = vadd.f32 %v2413_v43, %v2139_v32  ;;  %v2632_v29 = vrot.slane %v5069_v16, 1  ;;  %v346_v32 = vld [vmem:[%s5287_s11 + $0x688] sm:$0x1] }
 0x29f   : > { %4757 = vmatmul.msk.bf16.vlgmr.msra.gmra.mxu3 %vm569_vm1, %v7476_v31  ;;  %v7481_v31 = vld [vmem:[#allocation39_spill] sm:$0xff] }
 0x2a0   : > { %7477 = vst [vmem:[#allocation72_spill] sm:$0xff] %v6405_v44  ;;  %4789 = vmatmul.msk.bf16.vlgmr.msra.gmra.mxu0 %vm569_vm1, %v7478_v61  ;;  %v2634_v61 = vrot.slane %v346_v32, 1  ;;  %v6417_v3 = vsel %vm1203_vm2, %v2631_v23, %v2632_v29  ;;  %v5070_v32 = vld [vmem:[%s5287_s11 + $0x690] sm:$0xff] }
 0x2a1   : > { %v1688_v20 = vpop.f32.mrf.mxu2 }
 0x2a2   : > { %v2052_v25 = vpop.f32.mrf.mxu3  ;;  %v1776_v49 = vadd.f32 %v1688_v20, %v1068_v6  ;;  %v1069_v27 = vpop.f32.mrf.mxu1  ;;  %v6420_v6 = vsel %vm1203_vm2, %v2632_v29, %v2634_v61  ;;  %v2636_v61 = vrot.slane %v5070_v32, 1  ;;  %v7492_v32 = vld [vmem:[#allocation49_spill] sm:$0xff] }
 0x2a3   : > { %v1070_v43 = vadd.f32 %v1069_v27, %v7481_v31 }
 0x2a4   : > { %v2140_v28 = vadd.f32 %v2052_v25, %v1776_v49  ;;  %v2843_v25 = vpack.c.bf16 %v6420_v6, %v6417_v3  ;;  %v7482_v49 = vld [vmem:[#allocation44_spill] sm:$0xff] }
 0x2a5   : > { %v2418_v56 = vpop.f32.mrf.mxu0  ;;  %v5071_v3 = vld [vmem:[%s5287_s11 + $0x698] sm:$0xff] }
 0x2a6   : > { %v6410_v14 = vadd.f32 %v2416_v17, %v2140_v28  ;;  %v7485_v28 = vld [vmem:[#allocation45_spill] sm:$0xff]  ;;  %v2637_v6 = vrot.slane %v5071_v3, 1 }
 0x2a8   : > { %7480 = vst [vmem:[#allocation33_spill] sm:$0xff] %v6410_v14 }
 0x2a9   : > { %v1690_v44 = vpop.f32.mrf.mxu2 }
 0x2aa   : > { %v2054_v15 = vpop.f32.mrf.mxu3  ;;  %v1777_v4 = vadd.f32 %v1690_v44, %v1070_v43  ;;  %v1072_v42 = vpop.f32.mrf.mxu1  ;;  %v7483_v44 = vld [vmem:[#allocation15_spill] sm:$0xff] }
 0x2ac   : > { %v2141_v17 = vadd.f32 %v2054_v15, %v1777_v4  ;;  %v7486_v4 = vld [vmem:[#allocation42_spill] sm:$0xff] }
 0x2ad   : > { %v2421_v20 = vpop.f32.mrf.mxu0  ;;  %4694 = vmatmul.msk.bf16.gmra.mxu1 %vm569_vm1, %v2841_v18  ;;  %v1073_v15 = vadd.f32 %v1072_v42, %v7486_v4  ;;  %v6441_v4 = vsel %vm1203_vm2, %v2636_v61, %v2637_v6 }
 0x2ae   : > { %4726 = vmatmul.msk.bf16.gmra.mxu2 %vm569_vm1, %v7482_v49  ;;  %v6429_v27 = vadd.f32 %v2418_v56, %v2141_v17  ;;  %v7488_v49 = vld [vmem:[#allocation43_spill] sm:$0xff]  ;;  %v349_v17 = vld [vmem:[%s5287_s11 + $0x6a0] sm:$0x1] }
 0x2af   : > { %4758 = vmatmul.msk.bf16.gmra.mxu3 %vm569_vm1, %v7483_v44 }
 0x2b0   : > { %7484 = vst [vmem:[#allocation32_spill] sm:$0xff] %v6429_v27  ;;  %4790 = vmatmul.msk.bf16.gmra.mxu0 %vm569_vm1, %v7485_v28  ;;  %v2639_v28 = vrot.slane %v349_v17, 1 }
 0x2b1   : > { %v1693_v12 = vpop.f32.mrf.mxu2 }
 0x2b2   : > { %v2057_v23 = vpop.f32.mrf.mxu3  ;;  %v1778_v16 = vadd.f32 %v1693_v12, %v1073_v15  ;;  %v1074_v29 = vpop.f32.mrf.mxu1  ;;  %v6444_v15 = vsel %vm1203_vm2, %v2637_v6, %v2639_v28 }
 0x2b3   : > { %v1075_v56 = vadd.f32 %v1074_v29, %v7488_v49  ;;  %v7490_v29 = vld [vmem:[#allocation19_spill] sm:$0xff] }
 0x2b4   : > { %v2142_v31 = vadd.f32 %v2057_v23, %v1778_v16  ;;  %v2844_v23 = vpack.c.bf16 %v6444_v15, %v6441_v4  ;;  %v7489_v16 = vld [vmem:[#allocation48_spill] sm:$0xff]  ;;  %v5073_v4 = vld [vmem:[%s5287_s11 + $0x6b0] sm:$0xff] }
 0x2b5   : > { %v2423_v18 = vpop.f32.mrf.mxu0  ;;  %v2642_v15 = vrot.slane %v5073_v4, 1 }
 0x2b6   : > { %v6434_v43 = vadd.f32 %v2421_v20, %v2142_v31 }
 0x2b8   : > { %7487 = vst [vmem:[#allocation40_spill] sm:$0xff] %v6434_v43 }
 0x2b9   : > { %v1695_v44 = vpop.f32.mrf.mxu2 }
 0x2ba   : > { %v2059_v27 = vpop.f32.mrf.mxu3  ;;  %v1779_v14 = vadd.f32 %v1695_v44, %v1075_v56  ;;  %v1077_v42 = vpop.f32.mrf.mxu1  ;;  %v5072_v44 = vld [vmem:[%s5287_s11 + $0x6a8] sm:$0xff] }
 0x2bb   : > { %v2641_v28 = vrot.slane %v5072_v44, 1  ;;  %v7499_v44 = vld [vmem:[#allocation53_spill] sm:$0xff] }
 0x2bc   : > { %v2143_v20 = vadd.f32 %v2059_v27, %v1779_v14  ;;  %v7493_v14 = vld [vmem:[#allocation46_spill] sm:$0xff] }
 0x2bd   : > { %v2426_v12 = vpop.f32.mrf.mxu0  ;;  %4695 = vmatmul.msk.bf16.gmra.mxu1 %vm569_vm1, %v2842_v24  ;;  %v1078_v27 = vadd.f32 %v1077_v42, %v7493_v14  ;;  %v6465_v14 = vsel %vm1203_vm2, %v2641_v28, %v2642_v15 }
 0x2be   : > { %4727 = vmatmul.msk.bf16.gmra.mxu2 %vm569_vm1, %v7489_v16  ;;  %v6453_v31 = vadd.f32 %v2423_v18, %v2143_v20  ;;  %v7495_v16 = vld [vmem:[#allocation47_spill] sm:$0xff]  ;;  %v352_v20 = vld [vmem:[%s5287_s11 + $0x6b8] sm:$0x1] }
 0x2bf   : > { %4759 = vmatmul.msk.bf16.gmra.mxu3 %vm569_vm1, %v7490_v29 }
 0x2c0   : > { %7491 = vst [vmem:[#allocation11_spill] sm:$0xff] %v6453_v31  ;;  %4791 = vmatmul.msk.bf16.gmra.mxu0 %vm569_vm1, %v7492_v32  ;;  %v2644_v32 = vrot.slane %v352_v20, 1 }
 0x2c1   : > { %v1698_v61 = vpop.f32.mrf.mxu2 }
 0x2c2   : > { %v2062_v3 = vpop.f32.mrf.mxu3  ;;  %v1780_v6 = vadd.f32 %v1698_v61, %v1078_v27  ;;  %v1079_v49 = vpop.f32.mrf.mxu1  ;;  %v6468_v27 = vsel %vm1203_vm2, %v2642_v15, %v2644_v32 }
 0x2c3   : > { %v1080_v18 = vadd.f32 %v1079_v49, %v7495_v16  ;;  %v7497_v49 = vld [vmem:[#allocation23_spill] sm:$0xff] }
 0x2c4   : > { %v2144_v56 = vadd.f32 %v2062_v3, %v1780_v6  ;;  %v2845_v3 = vpack.c.bf16 %v6468_v27, %v6465_v14  ;;  %v7496_v6 = vld [vmem:[#allocation52_spill] sm:$0xff]  ;;  %v5075_v14 = vld [vmem:[%s5287_s11 + $0x6c8] sm:$0xff] }
 0x2c5   : > { %v2428_v24 = vpop.f32.mrf.mxu0  ;;  %v2647_v27 = vrot.slane %v5075_v14, 1 }
 0x2c6   : > { %v6458_v17 = vadd.f32 %v2426_v12, %v2144_v56 }
 0x2c8   : > { %7494 = vst [vmem:[#allocation41_spill] sm:$0xff] %v6458_v17 }
 0x2c9   : > { %v1700_v29 = vpop.f32.mrf.mxu2 }
 0x2ca   : > { %v2064_v31 = vpop.f32.mrf.mxu3  ;;  %v1781_v43 = vadd.f32 %v1700_v29, %v1080_v18  ;;  %v1082_v42 = vpop.f32.mrf.mxu1  ;;  %v5074_v29 = vld [vmem:[%s5287_s11 + $0x6c0] sm:$0xff] }
 0x2cb   : > { %v2646_v32 = vrot.slane %v5074_v29, 1  ;;  %v7506_v29 = vld [vmem:[#allocation57_spill] sm:$0xff] }
 0x2cc   : > { %v2145_v12 = vadd.f32 %v2064_v31, %v1781_v43  ;;  %v7500_v43 = vld [vmem:[#allocation50_spill] sm:$0xff] }
 0x2cd   : > { %v2431_v61 = vpop.f32.mrf.mxu0  ;;  %4696 = vmatmul.msk.bf16.gmra.mxu1 %vm569_vm1, %v2843_v25  ;;  %v1083_v31 = vadd.f32 %v1082_v42, %v7500_v43  ;;  %v6489_v43 = vsel %vm1203_vm2, %v2646_v32, %v2647_v27 }
 0x2ce   : > { %4728 = vmatmul.msk.bf16.gmra.mxu2 %vm569_vm1, %v7496_v6  ;;  %v6477_v56 = vadd.f32 %v2428_v24, %v2145_v12  ;;  %v7502_v6 = vld [vmem:[#allocation51_spill] sm:$0xff] }
 0x2cf   : > { %4760 = vmatmul.msk.bf16.gmra.mxu3 %vm569_vm1, %v7497_v49  ;;  %v355_v12 = vld [vmem:[%s5287_s11 + $0x6d0] sm:$0x1] }
 0x2d0   : > { %7498 = vst [vmem:[#allocation38_spill] sm:$0xff] %v6477_v56  ;;  %4792 = vmatmul.msk.bf16.gmra.mxu0 %vm569_vm1, %v7499_v44  ;;  %v2649_v44 = vrot.slane %v355_v12, 1 }
 0x2d1   : > { %v1703_v28 = vpop.f32.mrf.mxu2 }
 0x2d2   : > { %v2067_v4 = vpop.f32.mrf.mxu3  ;;  %v1782_v15 = vadd.f32 %v1703_v28, %v1083_v31  ;;  %v1084_v16 = vpop.f32.mrf.mxu1  ;;  %v6492_v31 = vsel %vm1203_vm2, %v2647_v27, %v2649_v44 }
 0x2d3   : > { %v1085_v24 = vadd.f32 %v1084_v16, %v7502_v6  ;;  %v7504_v16 = vld [vmem:[#allocation27_spill] sm:$0xff] }
 0x2d4   : > { %v2146_v18 = vadd.f32 %v2067_v4, %v1782_v15  ;;  %v2846_v4 = vpack.c.bf16 %v6492_v31, %v6489_v43  ;;  %v7503_v15 = vld [vmem:[#allocation56_spill] sm:$0xff]  ;;  %v5077_v43 = vld [vmem:[%s5287_s11 + $0x6e0] sm:$0xff] }
 0x2d5   : > { %v2433_v25 = vpop.f32.mrf.mxu0  ;;  %v2652_v31 = vrot.slane %v5077_v43, 1 }
 0x2d6   : > { %v6482_v20 = vadd.f32 %v2431_v61, %v2146_v18 }
 0x2d8   : > { %7501 = vst [vmem:[#allocation39_spill] sm:$0xff] %v6482_v20 }
 0x2d9   : > { %v1705_v49 = vpop.f32.mrf.mxu2 }
 0x2da   : > { %v2069_v56 = vpop.f32.mrf.mxu3  ;;  %v1783_v17 = vadd.f32 %v1705_v49, %v1085_v24  ;;  %v1087_v42 = vpop.f32.mrf.mxu1  ;;  %v5076_v49 = vld [vmem:[%s5287_s11 + $0x6d8] sm:$0xff] }
 0x2db   : > { %v2651_v44 = vrot.slane %v5076_v49, 1  ;;  %v7513_v49 = vld [vmem:[#allocation63_spill] sm:$0xff] }
 0x2dc   : > { %v2147_v61 = vadd.f32 %v2069_v56, %v1783_v17  ;;  %v7507_v17 = vld [vmem:[#allocation54_spill] sm:$0xff] }
 0x2dd   : > { %v2436_v28 = vpop.f32.mrf.mxu0  ;;  %4697 = vmatmul.msk.bf16.gmra.mxu1 %vm569_vm1, %v2844_v23  ;;  %v1088_v56 = vadd.f32 %v1087_v42, %v7507_v17  ;;  %v6513_v17 = vsel %vm1203_vm2, %v2651_v44, %v2652_v31 }
 0x2de   : > { %4729 = vmatmul.msk.bf16.gmra.mxu2 %vm569_vm1, %v7503_v15  ;;  %v6501_v18 = vadd.f32 %v2433_v25, %v2147_v61  ;;  %v7509_v15 = vld [vmem:[#allocation55_spill] sm:$0xff]  ;;  %v358_v61 = vld [vmem:[%s5287_s11 + $0x6e8] sm:$0x1] }
 0x2df   : > { %4761 = vmatmul.msk.bf16.gmra.mxu3 %vm569_vm1, %v7504_v16 }
 0x2e0   : > { %7505 = vst [vmem:[#allocation44_spill] sm:$0xff] %v6501_v18  ;;  %4793 = vmatmul.msk.bf16.gmra.mxu0 %vm569_vm1, %v7506_v29  ;;  %v2654_v29 = vrot.slane %v358_v61, 1 }
 0x2e1   : > { %v1708_v32 = vpop.f32.mrf.mxu2 }
 0x2e2   : > { %v2072_v14 = vpop.f32.mrf.mxu3  ;;  %v1784_v27 = vadd.f32 %v1708_v32, %v1088_v56  ;;  %v1089_v6 = vpop.f32.mrf.mxu1  ;;  %v6516_v56 = vsel %vm1203_vm2, %v2652_v31, %v2654_v29 }
 0x2e3   : > { %v1090_v25 = vadd.f32 %v1089_v6, %v7509_v15  ;;  %v7511_v6 = vld [vmem:[#allocation31_spill] sm:$0xff] }
 0x2e4   : > { %v2148_v24 = vadd.f32 %v2072_v14, %v1784_v27  ;;  %v2847_v14 = vpack.c.bf16 %v6516_v56, %v6513_v17  ;;  %v7510_v27 = vld [vmem:[#allocation62_spill] sm:$0xff]  ;;  %v5079_v17 = vld [vmem:[%s5287_s11 + $0x6f8] sm:$0xff] }
 0x2e5   : > { %v2438_v23 = vpop.f32.mrf.mxu0  ;;  %v2657_v56 = vrot.slane %v5079_v17, 1 }
 0x2e6   : > { %v6506_v12 = vadd.f32 %v2436_v28, %v2148_v24 }
 0x2e8   : > { %7508 = vst [vmem:[#allocation15_spill] sm:$0xff] %v6506_v12 }
 0x2e9   : > { %v1710_v16 = vpop.f32.mrf.mxu2 }
 0x2ea   : > { %v2074_v18 = vpop.f32.mrf.mxu3  ;;  %v1785_v20 = vadd.f32 %v1710_v16, %v1090_v25  ;;  %v1092_v42 = vpop.f32.mrf.mxu1  ;;  %v5078_v16 = vld [vmem:[%s5287_s11 + $0x6f0] sm:$0xff] }
 0x2eb   : > { %v2656_v29 = vrot.slane %v5078_v16, 1  ;;  %v7520_v16 = vld [vmem:[#allocation69_spill] sm:$0xff] }
 0x2ec   : > { %v2149_v28 = vadd.f32 %v2074_v18, %v1785_v20  ;;  %v7514_v20 = vld [vmem:[#allocation59_spill] sm:$0xff] }
 0x2ed   : > { %v2441_v32 = vpop.f32.mrf.mxu0  ;;  %4698 = vmatmul.msk.bf16.gmra.mxu1 %vm569_vm1, %v2845_v3  ;;  %v1093_v18 = vadd.f32 %v1092_v42, %v7514_v20  ;;  %v6537_v20 = vsel %vm1203_vm2, %v2656_v29, %v2657_v56 }
 0x2ee   : > { %4730 = vmatmul.msk.bf16.gmra.mxu2 %vm569_vm1, %v7510_v27  ;;  %v6525_v24 = vadd.f32 %v2438_v23, %v2149_v28  ;;  %v7516_v27 = vld [vmem:[#allocation61_spill] sm:$0xff] }
 0x2ef   : > { %4762 = vmatmul.msk.bf16.gmra.mxu3 %vm569_vm1, %v7511_v6  ;;  %v361_v28 = vld [vmem:[%s5287_s11 + $0x700] sm:$0x1] }
 0x2f0   : > { %7512 = vst [vmem:[#allocation45_spill] sm:$0xff] %v6525_v24  ;;  %4794 = vmatmul.msk.bf16.gmra.mxu0 %vm569_vm1, %v7513_v49  ;;  %v2659_v49 = vrot.slane %v361_v28, 1 }
 0x2f1   : > { %v1713_v44 = vpop.f32.mrf.mxu2 }
 0x2f2   : > { %v2077_v43 = vpop.f32.mrf.mxu3  ;;  %v1786_v31 = vadd.f32 %v1713_v44, %v1093_v18  ;;  %v1094_v15 = vpop.f32.mrf.mxu1  ;;  %v6540_v18 = vsel %vm1203_vm2, %v2657_v56, %v2659_v49 }
 0x2f3   : > { %v1095_v23 = vadd.f32 %v1094_v15, %v7516_v27  ;;  %v7518_v15 = vld [vmem:[#allocation37_spill] sm:$0xff] }
 0x2f4   : > { %v2150_v25 = vadd.f32 %v2077_v43, %v1786_v31  ;;  %v2848_v43 = vpack.c.bf16 %v6540_v18, %v6537_v20  ;;  %v7517_v31 = vld [vmem:[#allocation68_spill] sm:$0xff]  ;;  %v5081_v20 = vld [vmem:[%s5287_s11 + $0x710] sm:$0xff] }
 0x2f5   : > { %v2443_v3 = vpop.f32.mrf.mxu0  ;;  %v2662_v18 = vrot.slane %v5081_v20, 1 }
 0x2f6   : > { %v6530_v61 = vadd.f32 %v2441_v32, %v2150_v25 }
 0x2f8   : > { %7515 = vst [vmem:[#allocation42_spill] sm:$0xff] %v6530_v61 }
 0x2f9   : > { %v1715_v6 = vpop.f32.mrf.mxu2 }
 0x2fa   : > { %v2079_v24 = vpop.f32.mrf.mxu3  ;;  %v1787_v12 = vadd.f32 %v1715_v6, %v1095_v23  ;;  %v1097_v42 = vpop.f32.mrf.mxu1  ;;  %v5080_v6 = vld [vmem:[%s5287_s11 + $0x708] sm:$0xff] }
 0x2fb   : > { %v2661_v49 = vrot.slane %v5080_v6, 1  ;;  %v7527_v6 = vld [vmem:[#allocation75_spill] sm:$0xff] }
 0x2fc   : > { %v2151_v32 = vadd.f32 %v2079_v24, %v1787_v12  ;;  %v7521_v12 = vld [vmem:[#allocation65_spill] sm:$0xff] }
 0x2fd   : > { %v2446_v44 = vpop.f32.mrf.mxu0  ;;  %4699 = vmatmul.msk.bf16.gmra.mxu1 %vm569_vm1, %v2846_v4  ;;  %v1098_v24 = vadd.f32 %v1097_v42, %v7521_v12  ;;  %v6561_v12 = vsel %vm1203_vm2, %v2661_v49, %v2662_v18 }
 0x2fe   : > { %4731 = vmatmul.msk.bf16.gmra.mxu2 %vm569_vm1, %v7517_v31  ;;  %v6549_v25 = vadd.f32 %v2443_v3, %v2151_v32  ;;  %v7523_v31 = vld [vmem:[#allocation67_spill] sm:$0xff]  ;;  %v364_v32 = vld [vmem:[%s5287_s11 + $0x718] sm:$0x1] }
 0x2ff   : > { %4763 = vmatmul.msk.bf16.gmra.mxu3 %vm569_vm1, %v7518_v15 }
 0x300   : > { %7519 = vst [vmem:[#allocation43_spill] sm:$0xff] %v6549_v25  ;;  %4795 = vmatmul.msk.bf16.gmra.mxu0 %vm569_vm1, %v7520_v16  ;;  %v2664_v16 = vrot.slane %v364_v32, 1 }
 0x301   : > { %v1718_v29 = vpop.f32.mrf.mxu2 }
 0x302   : > { %v2082_v17 = vpop.f32.mrf.mxu3  ;;  %v1788_v56 = vadd.f32 %v1718_v29, %v1098_v24  ;;  %v1099_v27 = vpop.f32.mrf.mxu1  ;;  %v6564_v24 = vsel %vm1203_vm2, %v2662_v18, %v2664_v16 }
 0x303   : > { %v1100_v3 = vadd.f32 %v1099_v27, %v7523_v31  ;;  %v7525_v27 = vld [vmem:[#allocation5_spill] sm:$0xff] }
 0x304   : > { %v2152_v23 = vadd.f32 %v2082_v17, %v1788_v56  ;;  %v2849_v17 = vpack.c.bf16 %v6564_v24, %v6561_v12  ;;  %v7524_v56 = vld [vmem:[#allocation74_spill] sm:$0xff] }
 0x305   : > { %v2448_v4 = vpop.f32.mrf.mxu0  ;;  %v5083_v12 = vld [vmem:[%s5287_s11 + $0x728] sm:$0xff] }
 0x306   : > { %v6554_v28 = vadd.f32 %v2446_v44, %v2152_v23  ;;  %v2667_v24 = vrot.slane %v5083_v12, 1 }
 0x308   : > { %7522 = vst [vmem:[#allocation48_spill] sm:$0xff] %v6554_v28 }
 0x309   : > { %v1720_v15 = vpop.f32.mrf.mxu2 }
 0x30a   : > { %v2084_v25 = vpop.f32.mrf.mxu3  ;;  %v1789_v61 = vadd.f32 %v1720_v15, %v1100_v3  ;;  %v1102_v42 = vpop.f32.mrf.mxu1  ;;  %v5082_v15 = vld [vmem:[%s5287_s11 + $0x720] sm:$0xff] }
 0x30b   : > { %v2666_v16 = vrot.slane %v5082_v15, 1 }
 0x30c   : > { %v2153_v44 = vadd.f32 %v2084_v25, %v1789_v61  ;;  %v7528_v61 = vld [vmem:[#allocation71_spill] sm:$0xff] }
 0x30d   : > { %v2451_v29 = vpop.f32.mrf.mxu0  ;;  %4700 = vmatmul.msk.bf16.gmra.mxu1 %vm569_vm1, %v2847_v14  ;;  %v1103_v25 = vadd.f32 %v1102_v42, %v7528_v61  ;;  %v6585_v61 = vsel %vm1203_vm2, %v2666_v16, %v2667_v24 }
 0x30e   : > { %4732 = vmatmul.msk.bf16.gmra.mxu2 %vm569_vm1, %v7524_v56  ;;  %v6573_v23 = vadd.f32 %v2448_v4, %v2153_v44  ;;  %v7530_v56 = vld [vmem:[#allocation73_spill] sm:$0xff]  ;;  %v367_v44 = vld [vmem:[%s5287_s11 + $0x730] sm:$0x1] }
 0x30f   : > { %4764 = vmatmul.msk.bf16.gmra.mxu3 %vm569_vm1, %v7525_v27 }
 0x310   : > { %7526 = vst [vmem:[#allocation19_spill] sm:$0xff] %v6573_v23  ;;  %4796 = vmatmul.msk.bf16.gmra.mxu0 %vm569_vm1, %v7527_v6  ;;  %v2669_v6 = vrot.slane %v367_v44, 1  ;;  %v5085_v44 = vld [vmem:[%s5287_s11 + $0x740] sm:$0xff] }
 0x311   : > { %v1723_v49 = vpop.f32.mrf.mxu2 }
 0x312   : > { %v2087_v20 = vpop.f32.mrf.mxu3  ;;  %v1790_v18 = vadd.f32 %v1723_v49, %v1103_v25  ;;  %v1104_v31 = vpop.f32.mrf.mxu1  ;;  %v6588_v25 = vsel %vm1203_vm2, %v2667_v24, %v2669_v6  ;;  %v7534_v6 = vld [vmem:[#allocation77_spill] sm:$0xff] }
 0x313   : > { %v1105_v4 = vadd.f32 %v1104_v31, %v7530_v56 }
 0x314   : > { %v2154_v3 = vadd.f32 %v2087_v20, %v1790_v18  ;;  %v7531_v18 = vld [vmem:[#allocation8_spill] sm:$0xff] }
 0x315   : > { %v2453_v14 = vpop.f32.mrf.mxu0 }
 0x316   : > { %v6578_v32 = vadd.f32 %v2451_v29, %v2154_v3 }
 0x318   : > { %7529 = vst [vmem:[#allocation49_spill] sm:$0xff] %v6578_v32  ;;  %v7537_v32 = vld [vmem:[#allocation79_spill] sm:$0xff] }
 0x319   : > { %v1725_v27 = vpop.f32.mrf.mxu2 }
 0x31a   : > { %v2089_v23 = vpop.f32.mrf.mxu3  ;;  %v1791_v28 = vadd.f32 %v1725_v27, %v1105_v4  ;;  %v2980_v42 = vpop.f32.mrf.mxu1  ;;  %v2672_v27 = vrot.slane %v5085_v44, 1 }
 0x31c   : > { %v2155_v29 = vadd.f32 %v2089_v23, %v1791_v28  ;;  %v7533_v28 = vld [vmem:[#allocation76_spill] sm:$0xff] }
 0x31d   : > { %v3710_v49 = vpop.f32.mrf.mxu0  ;;  %4701 = vmatmul.msk.bf16.gmra.mxu1 %vm569_vm1, %v2848_v43  ;;  %v3140_v23 = vadd.f32 %v2980_v42, %v7533_v28 }
 0x31e   : > { %4733 = vmatmul.msk.bf16.gmra.mxu2 %vm569_vm1, %v5809_v45  ;;  %v6597_v31 = vadd.f32 %v2453_v14, %v2155_v29  ;;  %v6605_v45 = vld [vmem:[%s7279_s2] ss:$0 sm:$0xff]  ;;  %v5084_v14 = vld [vmem:[%s5287_s11 + $0x738] sm:$0xff]  ;;  %v370_v29 = vld [vmem:[%s5287_s11 + $0x748] sm:$0x1] }
 0x31f   : > { %4765 = vmatmul.msk.bf16.gmra.mxu3 %vm569_vm1, %v7531_v18  ;;  %v2671_v4 = vrot.slane %v5084_v14, 1 }
 0x320   : > { %7532 = vst [vmem:[#allocation46_spill] sm:$0xff] %v6597_v31  ;;  %4797 = vmatmul.msk.bf16.gmra.mxu0 %vm569_vm1, %v5811_v53  ;;  %v5087_v31 = vld [vmem:[%s5287_s11 + $0x758] sm:$0xff] }
 0x321   : > { %v3220_v3 = vpop.f32.mrf.mxu2  ;;  %v6613_v20 = vsel %vm1203_vm2, %v2671_v4, %v2672_v27 }
 0x322   : > { %v3460_v15 = vpop.f32.mrf.mxu3  ;;  %v3380_v16 = vadd.f32 %v3220_v3, %v3140_v23  ;;  %v2982_v12 = vpop.f32.mrf.mxu1  ;;  %v2674_v23 = vrot.slane %v370_v29, 1 }
 0x323   : > { %v3141_v42 = vadd.f32 %v2982_v12, %v7534_v6  ;;  %v7535_v6 = vld [vmem:[#allocation12_spill] sm:$0xff] }
 0x324   : > { %v3620_v43 = vadd.f32 %v3460_v15, %v3380_v16 }
 0x325   : > { %v3712_v24 = vpop.f32.mrf.mxu0 }
 0x326   : > { %v3870_v56 = vadd.f32 %v3710_v49, %v3620_v43  ;;  %v6616_v49 = vsel %vm1203_vm2, %v2672_v27, %v2674_v23  ;;  %v7536_v27 = vld [vmem:[#allocation78_spill] sm:$0xff] }
 0x328   : > { %v3937_v53 = vadd.f32 %v6605_v45, %v3870_v56  ;;  %v5086_v56 = vld [vmem:[%s5287_s11 + $0x750] sm:$0xff] }
 0x329   : > { %v3222_v18 = vpop.f32.mrf.mxu2 }
 0x32a   : > { %v3462_v28 = vpop.f32.mrf.mxu3  ;;  %v4001_v3 = vadd.f32 3.0, %v3937_v53  ;;  %v3381_v15 = vadd.f32 %v3222_v18, %v3141_v42  ;;  %v2985_v16 = vpop.f32.mrf.mxu1 }
 0x32b   : > { %v3142_v42 = vadd.f32 %v2985_v16, %v7536_v27  ;;  %v2677_v16 = vrot.slane %v5087_v31, 1 }
 0x32c   : > { %v3621_v43 = vadd.f32 %v3462_v28, %v3381_v15  ;;  %v4065_v12 = vmax.f32 %v4001_v3, 0.0 }
 0x32d   : > { %v3715_v14 = vpop.f32.mrf.mxu0  ;;  %4702 = vmatmul.msk.bf16.gmra.mxu1 %vm569_vm1, %v2849_v17 }
 0x32e   : > { %v3871_v44 = vadd.f32 %v3712_v24, %v3621_v43  ;;  %4734 = vmatmul.msk.bf16.gmra.mxu2 %vm569_vm1, %v5834_v2  ;;  %v4129_v18 = vmin.f32 %v4065_v12, 6.0 }
 0x32f   : > { %4766 = vmatmul.msk.bf16.gmra.mxu3 %vm569_vm1, %v7535_v6 }
 0x330   : > { %4798 = vmatmul.msk.bf16.gmra.mxu0 %vm569_vm1, %v5836_v57  ;;  %v3938_v4 = vadd.f32 %v6605_v45, %v3871_v44  ;;  %v4193_v43 = vmul.f32 %v4129_v18, %v3937_v53  ;;  %v2676_v44 = vrot.slane %v5086_v56, 1 }
 0x331   : > { %v3225_v29 = vpop.f32.mrf.mxu2 }
 0x332   : > { %v3465_v17 = vpop.f32.mrf.mxu3  ;;  %v4002_v24 = vadd.f32 3.0, %v3938_v4  ;;  %v3382_v28 = vadd.f32 %v3225_v29, %v3142_v42  ;;  %v2987_v23 = vpop.f32.mrf.mxu1  ;;  %v373_v29 = vld [vmem:[%s5287_s11 + $0x760] sm:$0x1]  ;;  %v6638_v56 = vsel %vm1203_vm2, %v2676_v44, %v2677_v16 }
 0x333   : > { %v3143_v42 = vadd.f32 %v2987_v23, %v7537_v32  ;;  %v7538_v23 = vpack.c.bf16 %v6588_v25, %v6585_v61  ;;  %v7540_v25 = vld [vmem:[#allocation80_spill] sm:$0xff] }
 0x334   : > { %v4066_v2 = vmax.f32 %v4002_v24, 0.0  ;;  %v3622_v3 = vadd.f32 %v3465_v17, %v3382_v28  ;;  %v2679_v17 = vrot.slane %v373_v29, 1  ;;  %v4257_v28 = vmul.f32 0.16666667, %v4193_v43 }
 0x335   : > { %v3717_v15 = vpop.f32.mrf.mxu0 }
 0x336   : > { %v4130_v57 = vmin.f32 %v4066_v2, 6.0  ;;  %v3872_v6 = vadd.f32 %v3715_v14, %v3622_v3  ;;  %v6641_v31 = vsel %vm1203_vm2, %v2677_v16, %v2679_v17 }
 0x337   : > { %v2852_v32 = vpack.c.bf16 %v6641_v31, %v6638_v56 }
 0x338   : > { %v4194_v27 = vmul.f32 %v4130_v57, %v3938_v4  ;;  %v3939_v12 = vadd.f32 %v6605_v45, %v3872_v6 }
 0x339   : > { %v3227_v13 = vpop.f32.mrf.mxu2 }
 0x33a   : > { %v3467_v24 = vpop.f32.mrf.mxu3  ;;  %v4258_v50 = vmul.f32 0.16666667, %v4194_v27  ;;  %v4003_v53 = vadd.f32 3.0, %v3939_v12  ;;  %v3383_v18 = vadd.f32 %v3227_v13, %v3143_v42  ;;  %v2990_v14 = vpop.f32.mrf.mxu1 }
 0x33b   : > { %v3144_v57 = vadd.f32 %v2990_v14, %v7540_v25 }
 0x33c   : > { %v4830_v4 = vpack.c.bf16 %v4258_v50, %v4257_v28  ;;  %v3623_v2 = vadd.f32 %v3467_v24, %v3383_v18  ;;  %v4067_v13 = vmax.f32 %v4003_v53, 0.0  ;;  %v7539_v50 = vld [vmem:[#allocation16_spill] sm:$0xff]  ;;  %v5088_v18 = vld [vmem:[%s5287_s11 + $0x768] sm:$0xff] }
 0x33d   : > { %v3720_v3 = vpop.f32.mrf.mxu0  ;;  %4703 = vmatmul.msk.bf16.gmra.mxu1 %vm569_vm1, %v7538_v23 }
 0x33e   : > { %4831 = vst [vmem:[%s6649_s6] sm:$0xff] %v4830_v4   ;;  %v3873_v43 = vadd.f32 %v3717_v15, %v3623_v2  ;;  %4735 = vmatmul.msk.bf16.gmra.mxu2 %vm569_vm1, %v5859_v34  ;;  %v4131_v16 = vmin.f32 %v4067_v13, 6.0  ;;  %v5089_v4 = vld [vmem:[%s5287_s11 + $0x770] sm:$0xff]  ;;  %v376_v13 = vld [vmem:[%s5287_s11 + $0x778] sm:$0x1] }
 0x33f   : > { %4767 = vmatmul.msk.bf16.gmra.mxu3 %vm569_vm1, %v7539_v50  ;;  %v2682_v2 = vrot.slane %v5089_v4, 1 }
 0x340   : > { %4799 = vmatmul.msk.bf16.gmra.mxu0 %vm569_vm1, %v5861_v52  ;;  %v3940_v61 = vadd.f32 %v6605_v45, %v3873_v43  ;;  %v4195_v17 = vmul.f32 %v4131_v16, %v3939_v12  ;;  %v2681_v52 = vrot.slane %v5088_v18, 1  ;;  %v7541_v43 = vld [vmem:[#allocation81_spill] sm:$0xff] }
 0x341   : > { %v3230_v6 = vpop.f32.mrf.mxu2 }
 0x342   : > { %v3470_v44 = vpop.f32.mrf.mxu3  ;;  %v4004_v27 = vadd.f32 3.0, %v3940_v61  ;;  %v3384_v15 = vadd.f32 %v3230_v6, %v3144_v57  ;;  %v2992_v42 = vpop.f32.mrf.mxu1  ;;  %v2684_v6 = vrot.slane %v376_v13, 1 }
 0x343   : > { %v3145_v50 = vadd.f32 %v2992_v42, %v7541_v43 }
 0x344   : > { %v4068_v34 = vmax.f32 %v4004_v27, 0.0  ;;  %v3624_v29 = vadd.f32 %v3470_v44, %v3384_v15  ;;  %v4259_v27 = vmul.f32 0.16666667, %v4195_v17 }
 0x345   : > { %v3722_v24 = vpop.f32.mrf.mxu0 }
 0x346   : > { %v4132_v28 = vmin.f32 %v4068_v34, 6.0  ;;  %v3874_v53 = vadd.f32 %v3720_v3, %v3624_v29  ;;  %v6666_v3 = vsel %vm1203_vm2, %v2681_v52, %v2682_v2  ;;  %v6669_v34 = vsel %vm1203_vm2, %v2682_v2, %v2684_v6  ;;  %v7543_v52 = vld [vmem:[#allocation20_spill] sm:$0xff]  ;;  %v7544_v2 = vld [vmem:[#allocation82_spill] sm:$0xff] }
 0x347   : > { %v2853_v42 = vpack.c.bf16 %v6669_v34, %v6666_v3 }
 0x348   : > { %v4196_v23 = vmul.f32 %v4132_v28, %v3940_v61  ;;  %v3941_v14 = vadd.f32 %v6605_v45, %v3874_v53  ;;  %v7542_v53 = vpack.c.bf16 %v6616_v49, %v6613_v20 }
 0x349   : > { %v3232_v25 = vpop.f32.mrf.mxu2 }
 0x34a   : > { %v3472_v57 = vpop.f32.mrf.mxu3  ;;  %v4260_v44 = vmul.f32 0.16666667, %v4196_v23  ;;  %v4005_v15 = vadd.f32 3.0, %v3941_v14  ;;  %v3385_v12 = vadd.f32 %v3232_v25, %v3145_v50  ;;  %v2995_v16 = vpop.f32.mrf.mxu1 }
 0x34b   : > { %v3146_v20 = vadd.f32 %v2995_v16, %v7544_v2 }
 0x34c   : > { %v4835_v61 = vpack.c.bf16 %v4260_v44, %v4259_v27  ;;  %v3625_v29 = vadd.f32 %v3472_v57, %v3385_v12  ;;  %v4069_v17 = vmax.f32 %v4005_v15, 0.0  ;;  %v5090_v15 = vld [vmem:[%s5287_s11 + $0x780] sm:$0xff]  ;;  %v5091_v12 = vld [vmem:[%s5287_s11 + $0x788] sm:$0xff] }
 0x34d   : > { %v3725_v28 = vpop.f32.mrf.mxu0  ;;  %4704 = vmatmul.msk.bf16.gmra.mxu1 %vm569_vm1, %v7542_v53  ;;  %v7545_v53 = vld [vmem:[#allocation83_spill] sm:$0xff] }
 0x34e   : > { %4987 = vst [vmem:[%s6649_s6 + $0x8] sm:$0xff] %v4835_v61   ;;  %v3875_v18 = vadd.f32 %v3722_v24, %v3625_v29  ;;  %4736 = vmatmul.msk.bf16.gmra.mxu2 %vm569_vm1, %v5884_v54  ;;  %v4133_v43 = vmin.f32 %v4069_v17, 6.0  ;;  %v2687_v61 = vrot.slane %v5091_v12, 1  ;;  %v379_v17 = vld [vmem:[%s5287_s11 + $0x790] sm:$0x1] }
 0x34f   : > { %4768 = vmatmul.msk.bf16.gmra.mxu3 %vm569_vm1, %v7543_v52 }
 0x350   : > { %4800 = vmatmul.msk.bf16.gmra.mxu0 %vm569_vm1, %v5886_v5  ;;  %v3942_v4 = vadd.f32 %v6605_v45, %v3875_v18  ;;  %v4197_v6 = vmul.f32 %v4133_v43, %v3941_v14  ;;  %v2686_v5 = vrot.slane %v5090_v15, 1 }
 0x351   : > { %v3235_v49 = vpop.f32.mrf.mxu2 }
 0x352   : > { %v3475_v23 = vpop.f32.mrf.mxu3  ;;  %v4006_v50 = vadd.f32 3.0, %v3942_v4  ;;  %v3386_v24 = vadd.f32 %v3235_v49, %v3146_v20  ;;  %v2997_v13 = vpop.f32.mrf.mxu1  ;;  %v2689_v20 = vrot.slane %v379_v17, 1  ;;  %v4261_v49 = vmul.f32 0.16666667, %v4197_v6 }
 0x353   : > { %v3147_v18 = vadd.f32 %v2997_v13, %v7545_v53 }
 0x354   : > { %v4070_v54 = vmax.f32 %v4006_v50, 0.0  ;;  %v3626_v25 = vadd.f32 %v3475_v23, %v3386_v24  ;;  %v6695_v24 = vsel %vm1203_vm2, %v2687_v61, %v2689_v20  ;;  %v5092_v20 = vld [vmem:[%s5287_s11 + $0x798] sm:$0xff] }
 0x355   : > { %v3727_v57 = vpop.f32.mrf.mxu0 }
 0x356   : > { %v4134_v27 = vmin.f32 %v4070_v54, 6.0  ;;  %v3876_v44 = vadd.f32 %v3725_v28, %v3626_v25  ;;  %v6692_v28 = vsel %vm1203_vm2, %v2686_v5, %v2687_v61  ;;  %v7547_v5 = vld [vmem:[#allocation84_spill] sm:$0xff] }
 0x357   : > { %v2854_v13 = vpack.c.bf16 %v6695_v24, %v6692_v28 }
 0x358   : > { %v4198_v29 = vmul.f32 %v4134_v27, %v3942_v4  ;;  %v3943_v16 = vadd.f32 %v6605_v45, %v3876_v44  ;;  %v7546_v44 = vld [vmem:[#allocation24_spill] sm:$0xff] }
 0x359   : > { %v3237_v52 = vpop.f32.mrf.mxu2 }
 0x35a   : > { %v3477_v2 = vpop.f32.mrf.mxu3  ;;  %v4262_v23 = vmul.f32 0.16666667, %v4198_v29  ;;  %v4007_v50 = vadd.f32 3.0, %v3943_v16  ;;  %v3387_v14 = vadd.f32 %v3237_v52, %v3147_v18  ;;  %v3000_v43 = vpop.f32.mrf.mxu1 }
 0x35b   : > { %v3148_v56 = vadd.f32 %v3000_v43, %v7547_v5  ;;  %v7548_v43 = vld [vmem:[#allocation85_spill] sm:$0xff] }
 0x35c   : > { %v4840_v4 = vpack.c.bf16 %v4262_v23, %v4261_v49  ;;  %v3627_v54 = vadd.f32 %v3477_v2, %v3387_v14  ;;  %v4071_v6 = vmax.f32 %v4007_v50, 0.0  ;;  %v5093_v49 = vld [vmem:[%s5287_s11 + $0x7a0] sm:$0xff] }
 0x35d   : > { %v3730_v25 = vpop.f32.mrf.mxu0  ;;  %4705 = vmatmul.msk.bf16.gmra.mxu1 %vm569_vm1, %v2852_v32  ;;  %v2692_v23 = vrot.slane %v5093_v49, 1 }
 0x35e   : > { %4988 = vst [vmem:[%s6649_s6 + $0x10] sm:$0xff] %v4840_v4   ;;  %v3877_v27 = vadd.f32 %v3727_v57, %v3627_v54  ;;  %4737 = vmatmul.msk.bf16.gmra.mxu2 %vm569_vm1, %v5909_v7  ;;  %v4135_v12 = vmin.f32 %v4071_v6, 6.0  ;;  %v382_v54 = vld [vmem:[%s5287_s11 + $0x7a8] sm:$0x1] }
 0x35f   : > { %4769 = vmatmul.msk.bf16.gmra.mxu3 %vm569_vm1, %v7546_v44  ;;  %v2694_v44 = vrot.slane %v382_v54, 1 }
 0x360   : > { %4801 = vmatmul.msk.bf16.gmra.mxu0 %vm569_vm1, %v5911_v39  ;;  %v3944_v15 = vadd.f32 %v6605_v45, %v3877_v27  ;;  %v4199_v17 = vmul.f32 %v4135_v12, %v3943_v16  ;;  %v2691_v39 = vrot.slane %v5092_v20, 1 }
 0x361   : > { %v3240_v31 = vpop.f32.mrf.mxu2  ;;  %v6721_v12 = vsel %vm1203_vm2, %v2692_v23, %v2694_v44 }
 0x362   : > { %v3480_v32 = vpop.f32.mrf.mxu3  ;;  %v4008_v61 = vadd.f32 3.0, %v3944_v15  ;;  %v3388_v57 = vadd.f32 %v3240_v31, %v3148_v56  ;;  %v3002_v29 = vpop.f32.mrf.mxu1  ;;  %v4263_v5 = vmul.f32 0.16666667, %v4199_v17  ;;  %v7549_v17 = vld [vmem:[#allocation28_spill] sm:$0xff] }
 0x363   : > { %v3149_v4 = vadd.f32 %v3002_v29, %v7548_v43 }
 0x364   : > { %v4072_v7 = vmax.f32 %v4008_v61, 0.0  ;;  %v3628_v53 = vadd.f32 %v3480_v32, %v3388_v57 }
 0x365   : > { %v3732_v18 = vpop.f32.mrf.mxu0 }
 0x366   : > { %v4136_v52 = vmin.f32 %v4072_v7, 6.0  ;;  %v3878_v2 = vadd.f32 %v3730_v25, %v3628_v53  ;;  %v6718_v25 = vsel %vm1203_vm2, %v2691_v39, %v2692_v23 }
 0x367   : > { %v2855_v29 = vpack.c.bf16 %v6721_v12, %v6718_v25 }
 0x368   : > { %v4200_v50 = vmul.f32 %v4136_v52, %v3944_v15  ;;  %v3945_v14 = vadd.f32 %v6605_v45, %v3878_v2  ;;  %v7550_v2 = vld [vmem:[#allocation86_spill] sm:$0xff] }
 0x369   : > { %v3242_v6 = vpop.f32.mrf.mxu2 }
 0x36a   : > { %v3482_v27 = vpop.f32.mrf.mxu3  ;;  %v4264_v56 = vmul.f32 0.16666667, %v4200_v50  ;;  %v4009_v31 = vadd.f32 3.0, %v3945_v14  ;;  %v3389_v16 = vadd.f32 %v3242_v6, %v3149_v4  ;;  %v3005_v32 = vpop.f32.mrf.mxu1  ;;  %v5094_v6 = vld [vmem:[%s5287_s11 + $0x7b0] sm:$0xff] }
 0x36b   : > { %v3150_v3 = vadd.f32 %v3005_v32, %v7550_v2  ;;  %v385_v32 = vld [vmem:[%s5287_s11 + $0x7c0] sm:$0x1] }
 0x36c   : > { %v4845_v15 = vpack.c.bf16 %v4264_v56, %v4263_v5  ;;  %v3629_v61 = vadd.f32 %v3482_v27, %v3389_v16  ;;  %v4073_v7 = vmax.f32 %v4009_v31, 0.0  ;;  %v5095_v27 = vld [vmem:[%s5287_s11 + $0x7b8] sm:$0xff]  ;;  %v7551_v31 = vld [vmem:[#allocation87_spill] sm:$0xff] }
 0x36d   : > { %v3735_v57 = vpop.f32.mrf.mxu0  ;;  %4706 = vmatmul.msk.bf16.gmra.mxu1 %vm569_vm1, %v2853_v42  ;;  %v2697_v44 = vrot.slane %v5095_v27, 1 }
 0x36e   : > { %4989 = vst [vmem:[%s6649_s6 + $0x18] sm:$0xff] %v4845_v15   ;;  %v3879_v53 = vadd.f32 %v3732_v18, %v3629_v61  ;;  %4738 = vmatmul.msk.bf16.gmra.mxu2 %vm569_vm1, %v5934_v33  ;;  %v4137_v20 = vmin.f32 %v4073_v7, 6.0  ;;  %v2699_v7 = vrot.slane %v385_v32, 1  ;;  %v5097_v32 = vld [vmem:[%s5287_s11 + $0x7d0] sm:$0xff] }
 0x36f   : > { %4770 = vmatmul.msk.bf16.gmra.mxu3 %vm569_vm1, %v7549_v17 }
 0x370   : > { %4802 = vmatmul.msk.bf16.gmra.mxu0 %vm569_vm1, %v5936_v51  ;;  %v3946_v52 = vadd.f32 %v6605_v45, %v3879_v53  ;;  %v4201_v43 = vmul.f32 %v4137_v20, %v3945_v14  ;;  %v2696_v51 = vrot.slane %v5094_v6, 1 }
 0x371   : > { %v3245_v34 = vpop.f32.mrf.mxu2 }
 0x372   : > { %v3485_v42 = vpop.f32.mrf.mxu3  ;;  %v4010_v39 = vadd.f32 3.0, %v3946_v52  ;;  %v3390_v18 = vadd.f32 %v3245_v34, %v3150_v3  ;;  %v3007_v49 = vpop.f32.mrf.mxu1  ;;  %v4265_v53 = vmul.f32 0.16666667, %v4201_v43  ;;  %v6747_v34 = vsel %vm1203_vm2, %v2697_v44, %v2699_v7  ;;  %v7553_v43 = vld [vmem:[#allocation88_spill] sm:$0xff] }
 0x373   : > { %v3151_v16 = vadd.f32 %v3007_v49, %v7551_v31 }
 0x374   : > { %v4074_v33 = vmax.f32 %v4010_v39, 0.0  ;;  %v3630_v23 = vadd.f32 %v3485_v42, %v3390_v18 }
 0x375   : > { %v3737_v50 = vpop.f32.mrf.mxu0 }
 0x376   : > { %v4138_v4 = vmin.f32 %v4074_v33, 6.0  ;;  %v3880_v54 = vadd.f32 %v3735_v57, %v3630_v23  ;;  %v6744_v57 = vsel %vm1203_vm2, %v2696_v51, %v2697_v44  ;;  %v7552_v33 = vld [vmem:[#allocation34_spill] sm:$0xff] }
 0x377   : > { %v2856_v39 = vpack.c.bf16 %v6747_v34, %v6744_v57 }
 0x378   : > { %v4202_v5 = vmul.f32 %v4138_v4, %v3946_v52  ;;  %v3947_v56 = vadd.f32 %v6605_v45, %v3880_v54 }
 0x379   : > { %v3247_v15 = vpop.f32.mrf.mxu2 }
 0x37a   : > { %v3487_v61 = vpop.f32.mrf.mxu3  ;;  %v4266_v17 = vmul.f32 0.16666667, %v4202_v5  ;;  %v4011_v2 = vadd.f32 3.0, %v3947_v56  ;;  %v3391_v14 = vadd.f32 %v3247_v15, %v3151_v16  ;;  %v3010_v3 = vpop.f32.mrf.mxu1  ;;  %v5096_v16 = vld [vmem:[%s5287_s11 + $0x7c8] sm:$0xff]  ;;  %v2702_v15 = vrot.slane %v5097_v32, 1 }
 0x37b   : > { %v3152_v28 = vadd.f32 %v3010_v3, %v7553_v43 }
 0x37c   : > { %v4850_v52 = vpack.c.bf16 %v4266_v17, %v4265_v53  ;;  %v3631_v42 = vadd.f32 %v3487_v61, %v3391_v14  ;;  %v4075_v18 = vmax.f32 %v4011_v2, 0.0  ;;  %v7554_v53 = vld [vmem:[#allocation89_spill] sm:$0xff]  ;;  %v388_v2 = vld [vmem:[%s5287_s11 + $0x7d8] sm:$0x1] }
 0x37d   : > { %v3740_v20 = vpop.f32.mrf.mxu0  ;;  %4707 = vmatmul.msk.bf16.gmra.mxu1 %vm569_vm1, %v2854_v13 }
 0x37e   : > { %4990 = vst [vmem:[%s6649_s6 + $0x20] sm:$0xff] %v4850_v52   ;;  %v3881_v49 = vadd.f32 %v3737_v50, %v3631_v42  ;;  %4739 = vmatmul.msk.bf16.gmra.mxu2 %vm569_vm1, %v5959_v1  ;;  %v4139_v4 = vmin.f32 %v4075_v18, 6.0  ;;  %v2704_v52 = vrot.slane %v388_v2, 1 }
 0x37f   : > { %4771 = vmatmul.msk.bf16.gmra.mxu3 %vm569_vm1, %v7552_v33 }
 0x380   : > { %4803 = vmatmul.msk.bf16.gmra.mxu0 %vm569_vm1, %v5961_v37  ;;  %v3948_v23 = vadd.f32 %v6605_v45, %v3881_v49  ;;  %v4203_v44 = vmul.f32 %v4139_v4, %v3947_v56  ;;  %v2701_v37 = vrot.slane %v5096_v16, 1  ;;  %v6773_v43 = vsel %vm1203_vm2, %v2702_v15, %v2704_v52 }
 0x381   : > { %v3250_v24 = vpop.f32.mrf.mxu2 }
 0x382   : > { %v3490_v13 = vpop.f32.mrf.mxu3  ;;  %v4012_v54 = vadd.f32 3.0, %v3948_v23  ;;  %v3392_v50 = vadd.f32 %v3250_v24, %v3152_v28  ;;  %v3012_v6 = vpop.f32.mrf.mxu1  ;;  %v4267_v42 = vmul.f32 0.16666667, %v4203_v44 }
 0x383   : > { %v3153_v17 = vadd.f32 %v3012_v6, %v7554_v53  ;;  %v5099_v53 = vld [vmem:[%s5287_s11 + $0x7e8] sm:$0xff] }
 0x384   : > { %v4076_v1 = vmax.f32 %v4012_v54, 0.0  ;;  %v3632_v51 = vadd.f32 %v3490_v13, %v3392_v50  ;;  %v7555_v50 = vld [vmem:[#allocation6_spill] sm:$0xff] }
 0x385   : > { %v3742_v27 = vpop.f32.mrf.mxu0 }
 0x386   : > { %v4140_v5 = vmin.f32 %v4076_v1, 6.0  ;;  %v3882_v31 = vadd.f32 %v3740_v20, %v3632_v51  ;;  %v6770_v20 = vsel %vm1203_vm2, %v2701_v37, %v2702_v15  ;;  %v7556_v1 = vld [vmem:[#allocation90_spill] sm:$0xff] }
 0x387   : > { %v2857_v13 = vpack.c.bf16 %v6773_v43, %v6770_v20 }
 0x388   : > { %v4204_v61 = vmul.f32 %v4140_v5, %v3948_v23  ;;  %v3949_v7 = vadd.f32 %v6605_v45, %v3882_v31 }
 0x389   : > { %v3252_v14 = vpop.f32.mrf.mxu2 }
 0x38a   : > { %v3492_v3 = vpop.f32.mrf.mxu3  ;;  %v4268_v18 = vmul.f32 0.16666667, %v4204_v61  ;;  %v4013_v49 = vadd.f32 3.0, %v3949_v7  ;;  %v3393_v56 = vadd.f32 %v3252_v14, %v3153_v17  ;;  %v3015_v33 = vpop.f32.mrf.mxu1  ;;  %v5098_v61 = vld [vmem:[%s5287_s11 + $0x7e0] sm:$0xff]  ;;  %v2707_v17 = vrot.slane %v5099_v53, 1  ;;  %v5100_v53 = vld [vmem:[%s5287_s11 + $0x7f8] sm:$0xff] }
 0x38b   : > { %v3154_v25 = vadd.f32 %v3015_v33, %v7556_v1 }
 0x38c   : > { %v4855_v23 = vpack.c.bf16 %v4268_v18, %v4267_v42  ;;  %v3633_v28 = vadd.f32 %v3492_v3, %v3393_v56  ;;  %v4077_v4 = vmax.f32 %v4013_v49, 0.0  ;;  %v7557_v3 = vld [vmem:[#allocation91_spill] sm:$0xff] }
 0x38d   : > { %v3745_v24 = vpop.f32.mrf.mxu0  ;;  %4708 = vmatmul.msk.bf16.gmra.mxu1 %vm569_vm1, %v2855_v29  ;;  %v391_v42 = vld [vmem:[%s5287_s11 + $0x7f0] sm:$0x1] }
 0x38e   : > { %4991 = vst [vmem:[%s6649_s6 + $0x28] sm:$0xff] %v4855_v23   ;;  %v3883_v54 = vadd.f32 %v3742_v27, %v3633_v28  ;;  %4740 = vmatmul.msk.bf16.gmra.mxu2 %vm569_vm1, %v5984_v0  ;;  %v4141_v51 = vmin.f32 %v4077_v4, 6.0  ;;  %v2709_v56 = vrot.slane %v391_v42, 1  ;;  %v7560_v42 = vld [vmem:[#allocation93_spill] sm:$0xff] }
 0x38f   : > { %4772 = vmatmul.msk.bf16.gmra.mxu3 %vm569_vm1, %v7555_v50 }
 0x390   : > { %4804 = vmatmul.msk.bf16.gmra.mxu0 %vm569_vm1, %v5986_v58  ;;  %v3950_v6 = vadd.f32 %v6605_v45, %v3883_v54  ;;  %v4205_v37 = vmul.f32 %v4141_v51, %v3949_v7  ;;  %v2706_v58 = vrot.slane %v5098_v61, 1  ;;  %v6799_v54 = vsel %vm1203_vm2, %v2707_v17, %v2709_v56  ;;  %v7558_v51 = vld [vmem:[#allocation9_spill] sm:$0xff] }
 0x391   : > { %v3255_v12 = vpop.f32.mrf.mxu2 }
 0x392   : > { %v3495_v29 = vpop.f32.mrf.mxu3  ;;  %v4014_v44 = vadd.f32 3.0, %v3950_v6  ;;  %v3394_v27 = vadd.f32 %v3255_v12, %v3154_v25  ;;  %v3017_v5 = vpop.f32.mrf.mxu1  ;;  %v4269_v33 = vmul.f32 0.16666667, %v4205_v37 }
 0x393   : > { %v3155_v52 = vadd.f32 %v3017_v5, %v7557_v3 }
 0x394   : > { %v4078_v0 = vmax.f32 %v4014_v44, 0.0  ;;  %v3634_v31 = vadd.f32 %v3495_v29, %v3394_v27  ;;  %v7559_v27 = vld [vmem:[#allocation92_spill] sm:$0xff] }
 0x395   : > { %v3747_v16 = vpop.f32.mrf.mxu0 }
 0x396   : > { %v4142_v32 = vmin.f32 %v4078_v0, 6.0  ;;  %v3884_v15 = vadd.f32 %v3745_v24, %v3634_v31  ;;  %v6796_v24 = vsel %vm1203_vm2, %v2706_v58, %v2707_v17  ;;  %v5101_v17 = vld [vmem:[%s5287_s11 + $0x800] sm:$0xff] }
 0x397   : > { %v2858_v25 = vpack.c.bf16 %v6799_v54, %v6796_v24 }
 0x398   : > { %v4206_v2 = vmul.f32 %v4142_v32, %v3950_v6  ;;  %v3951_v14 = vadd.f32 %v6605_v45, %v3884_v15 }
 0x399   : > { %v3257_v18 = vpop.f32.mrf.mxu2 }
 0x39a   : > { %v3497_v49 = vpop.f32.mrf.mxu3  ;;  %v4270_v23 = vmul.f32 0.16666667, %v4206_v2  ;;  %v4015_v28 = vadd.f32 3.0, %v3951_v14  ;;  %v3395_v7 = vadd.f32 %v3257_v18, %v3155_v52  ;;  %v3020_v4 = vpop.f32.mrf.mxu1  ;;  %v2712_v2 = vrot.slane %v5101_v17, 1 }
 0x39b   : > { %v3156_v57 = vadd.f32 %v3020_v4, %v7559_v27 }
 0x39c   : > { %v4860_v50 = vpack.c.bf16 %v4270_v23, %v4269_v33  ;;  %v3635_v6 = vadd.f32 %v3497_v49, %v3395_v7  ;;  %v4079_v12 = vmax.f32 %v4015_v28, 0.0  ;;  %v394_v49 = vld [vmem:[%s5287_s11 + $0x808] sm:$0x1] }
 0x39d   : > { %v3750_v1 = vpop.f32.mrf.mxu0  ;;  %4709 = vmatmul.msk.bf16.gmra.mxu1 %vm569_vm1, %v2856_v39  ;;  %v2714_v23 = vrot.slane %v394_v49, 1  ;;  %v397_v49 = vld [vmem:[%s5287_s11 + $0x820] sm:$0x1] }
 0x39e   : > { %4992 = vst [vmem:[%s6649_s6 + $0x30] sm:$0xff] %v4860_v50   ;;  %v3885_v29 = vadd.f32 %v3747_v16, %v3635_v6  ;;  %4741 = vmatmul.msk.bf16.gmra.mxu2 %vm569_vm1, %v6009_v19  ;;  %v4143_v5 = vmin.f32 %v4079_v12, 6.0 }
 0x39f   : > { %4773 = vmatmul.msk.bf16.gmra.mxu3 %vm569_vm1, %v7558_v51 }
 0x3a0   : > { %4805 = vmatmul.msk.bf16.gmra.mxu0 %vm569_vm1, %v6011_v40  ;;  %v3952_v44 = vadd.f32 %v6605_v45, %v3885_v29  ;;  %v4207_v15 = vmul.f32 %v4143_v5, %v3951_v14  ;;  %v2711_v40 = vrot.slane %v5100_v53, 1  ;;  %v7562_v5 = vld [vmem:[#allocation94_spill] sm:$0xff]  ;;  %v5102_v53 = vld [vmem:[%s5287_s11 + $0x810] sm:$0xff] }
 0x3a1   : > { %v3260_v34 = vpop.f32.mrf.mxu2 }
 0x3a2   : > { %v3500_v39 = vpop.f32.mrf.mxu3  ;;  %v4016_v0 = vadd.f32 3.0, %v3952_v44  ;;  %v3396_v31 = vadd.f32 %v3260_v34, %v3156_v57  ;;  %v3022_v16 = vpop.f32.mrf.mxu1  ;;  %v4271_v28 = vmul.f32 0.16666667, %v4207_v15  ;;  %v6822_v6 = vsel %vm1203_vm2, %v2711_v40, %v2712_v2  ;;  %v7561_v34 = vld [vmem:[#allocation13_spill] sm:$0xff]  ;;  %v5103_v40 = vld [vmem:[%s5287_s11 + $0x818] sm:$0xff] }
 0x3a3   : > { %v3157_v18 = vadd.f32 %v3022_v16, %v7560_v42  ;;  %v2717_v17 = vrot.slane %v5103_v40, 1  ;;  %v7563_v42 = vld [vmem:[#allocation95_spill] sm:$0xff] }
 0x3a4   : > { %v4080_v19 = vmax.f32 %v4016_v0, 0.0  ;;  %v3636_v37 = vadd.f32 %v3500_v39, %v3396_v31 }
 0x3a5   : > { %v3752_v32 = vpop.f32.mrf.mxu0 }
 0x3a6   : > { %v4144_v61 = vmin.f32 %v4080_v19, 6.0  ;;  %v3886_v58 = vadd.f32 %v3750_v1, %v3636_v37  ;;  %v6825_v1 = vsel %vm1203_vm2, %v2712_v2, %v2714_v23  ;;  %v2719_v23 = vrot.slane %v397_v49, 1 }
 0x3a8   : > { %v4208_v3 = vmul.f32 %v4144_v61, %v3952_v44  ;;  %v3953_v52 = vadd.f32 %v6605_v45, %v3886_v58  ;;  %v2859_v44 = vpack.c.bf16 %v6825_v1, %v6822_v6 }
 0x3a9   : > { %v3262_v56 = vpop.f32.mrf.mxu2 }
 0x3aa   : > { %v3502_v33 = vpop.f32.mrf.mxu3  ;;  %v4272_v7 = vmul.f32 0.16666667, %v4208_v3  ;;  %v4017_v4 = vadd.f32 3.0, %v3953_v52  ;;  %v3397_v14 = vadd.f32 %v3262_v56, %v3157_v18  ;;  %v3025_v50 = vpop.f32.mrf.mxu1 }
 0x3ab   : > { %v3158_v20 = vadd.f32 %v3025_v50, %v7562_v5  ;;  %v7564_v5 = vld [vmem:[#allocation17_spill] sm:$0xff] }
 0x3ac   : > { %v4865_v12 = vpack.c.bf16 %v4272_v7, %v4271_v28  ;;  %v3637_v29 = vadd.f32 %v3502_v33, %v3397_v14  ;;  %v4081_v27 = vmax.f32 %v4017_v4, 0.0 }
 0x3ad   : > { %v3755_v51 = vpop.f32.mrf.mxu0  ;;  %4710 = vmatmul.msk.bf16.gmra.mxu1 %vm569_vm1, %v2857_v13 }
 0x3ae   : > { %4993 = vst [vmem:[%s6649_s6 + $0x38] sm:$0xff] %v4865_v12   ;;  %v3887_v57 = vadd.f32 %v3752_v32, %v3637_v29  ;;  %4742 = vmatmul.msk.bf16.gmra.mxu2 %vm569_vm1, %v6034_v55  ;;  %v4145_v0 = vmin.f32 %v4081_v27, 6.0  ;;  %v6851_v12 = vsel %vm1203_vm2, %v2717_v17, %v2719_v23 }
 0x3af   : > { %4774 = vmatmul.msk.bf16.gmra.mxu3 %vm569_vm1, %v7561_v34 }
 0x3b0   : > { %4806 = vmatmul.msk.bf16.gmra.mxu0 %vm569_vm1, %v6036_v62  ;;  %v3954_v39 = vadd.f32 %v6605_v45, %v3887_v57  ;;  %v4209_v15 = vmul.f32 %v4145_v0, %v3953_v52  ;;  %v2716_v62 = vrot.slane %v5102_v53, 1 }
 0x3b1   : > { %v3265_v43 = vpop.f32.mrf.mxu2 }
 0x3b2   : > { %v3505_v13 = vpop.f32.mrf.mxu3  ;;  %v4018_v31 = vadd.f32 3.0, %v3954_v39  ;;  %v3398_v16 = vadd.f32 %v3265_v43, %v3158_v20  ;;  %v3027_v19 = vpop.f32.mrf.mxu1  ;;  %v4273_v28 = vmul.f32 0.16666667, %v4209_v15  ;;  %v6848_v50 = vsel %vm1203_vm2, %v2716_v62, %v2717_v17  ;;  %v7565_v43 = vld [vmem:[#allocation96_spill] sm:$0xff]  ;;  %v7566_v17 = vld [vmem:[#allocation97_spill] sm:$0xff] }
 0x3b3   : > { %v3159_v18 = vadd.f32 %v3027_v19, %v7563_v42  ;;  %v2860_v57 = vpack.c.bf16 %v6851_v12, %v6848_v50  ;;  %v400_v42 = vld [vmem:[%s5287_s11 + $0x838] sm:$0x1] }
 0x3b4   : > { %v4082_v55 = vmax.f32 %v4018_v31, 0.0  ;;  %v3638_v37 = vadd.f32 %v3505_v13, %v3398_v16 }
 0x3b5   : > { %v3757_v32 = vpop.f32.mrf.mxu0 }
 0x3b6   : > { %v4146_v61 = vmin.f32 %v4082_v55, 6.0  ;;  %v3888_v58 = vadd.f32 %v3755_v51, %v3638_v37 }
 0x3b8   : > { %v4210_v2 = vmul.f32 %v4146_v61, %v3954_v39  ;;  %v3955_v3 = vadd.f32 %v6605_v45, %v3888_v58  ;;  %v5104_v61 = vld [vmem:[%s5287_s11 + $0x828] sm:$0xff]  ;;  %v5105_v58 = vld [vmem:[%s5287_s11 + $0x830] sm:$0xff] }
 0x3b9   : > { %v3267_v56 = vpop.f32.mrf.mxu2  ;;  %v2722_v53 = vrot.slane %v5105_v58, 1 }
 0x3ba   : > { %v3507_v33 = vpop.f32.mrf.mxu3  ;;  %v4274_v7 = vmul.f32 0.16666667, %v4210_v2  ;;  %v4019_v4 = vadd.f32 3.0, %v3955_v3  ;;  %v3399_v52 = vadd.f32 %v3267_v56, %v3159_v18  ;;  %v3030_v14 = vpop.f32.mrf.mxu1  ;;  %v2724_v56 = vrot.slane %v400_v42, 1 }
 0x3bb   : > { %v3160_v24 = vadd.f32 %v3030_v14, %v7565_v43  ;;  %v7568_v43 = vld [vmem:[#allocation98_spill] sm:$0xff] }
 0x3bc   : > { %v4870_v29 = vpack.c.bf16 %v4274_v7, %v4273_v28  ;;  %v3639_v51 = vadd.f32 %v3507_v33, %v3399_v52  ;;  %v4083_v34 = vmax.f32 %v4019_v4, 0.0  ;;  %v6877_v52 = vsel %vm1203_vm2, %v2722_v53, %v2724_v56 }
 0x3bd   : > { %v3760_v27 = vpop.f32.mrf.mxu0  ;;  %4711 = vmatmul.msk.bf16.gmra.mxu1 %vm569_vm1, %v2858_v25 }
 0x3be   : > { %4994 = vst [vmem:[%s6649_s6 + $0x40] sm:$0xff] %v4870_v29   ;;  %v3889_v39 = vadd.f32 %v3757_v32, %v3639_v51  ;;  %4743 = vmatmul.msk.bf16.gmra.mxu2 %vm569_vm1, %v6059_v30  ;;  %v4147_v13 = vmin.f32 %v4083_v34, 6.0 }
 0x3bf   : > { %4775 = vmatmul.msk.bf16.gmra.mxu3 %vm569_vm1, %v7564_v5  ;;  %v7567_v5 = vld [vmem:[#allocation21_spill] sm:$0xff] }
 0x3c0   : > { %4807 = vmatmul.msk.bf16.gmra.mxu0 %vm569_vm1, %v6061_v21  ;;  %v3956_v20 = vadd.f32 %v6605_v45, %v3889_v39  ;;  %v4211_v37 = vmul.f32 %v4147_v13, %v3955_v3  ;;  %v2721_v21 = vrot.slane %v5104_v61, 1 }
 0x3c1   : > { %v3270_v54 = vpop.f32.mrf.mxu2 }
 0x3c2   : > { %v3510_v25 = vpop.f32.mrf.mxu3  ;;  %v4020_v0 = vadd.f32 3.0, %v3956_v20  ;;  %v3400_v31 = vadd.f32 %v3270_v54, %v3160_v24  ;;  %v3032_v16 = vpop.f32.mrf.mxu1  ;;  %v4275_v33 = vmul.f32 0.16666667, %v4211_v37  ;;  %v6874_v4 = vsel %vm1203_vm2, %v2721_v21, %v2722_v53  ;;  %v5107_v37 = vld [vmem:[%s5287_s11 + $0x848] sm:$0xff]  ;;  %v7569_v21 = vld [vmem:[#allocation99_spill] sm:$0xff] }
 0x3c3   : > { %v3161_v2 = vadd.f32 %v3032_v16, %v7566_v17  ;;  %v403_v53 = vld [vmem:[%s5287_s11 + $0x850] sm:$0x1] }
 0x3c4   : > { %v4084_v30 = vmax.f32 %v4020_v0, 0.0  ;;  %v3640_v19 = vadd.f32 %v3510_v25, %v3400_v31 }
 0x3c5   : > { %v3762_v55 = vpop.f32.mrf.mxu0 }
 0x3c6   : > { %v4148_v32 = vmin.f32 %v4084_v30, 6.0  ;;  %v3890_v15 = vadd.f32 %v3760_v27, %v3640_v19  ;;  %v2861_v27 = vpack.c.bf16 %v6877_v52, %v6874_v4  ;;  %v7574_v52 = vld [vmem:[#allocation102_spill] sm:$0xff] }
 0x3c8   : > { %v4212_v62 = vmul.f32 %v4148_v32, %v3956_v20  ;;  %v3957_v40 = vadd.f32 %v6605_v45, %v3890_v15  ;;  %v2727_v32 = vrot.slane %v5107_v37, 1 }
 0x3c9   : > { %v3272_v18 = vpop.f32.mrf.mxu2 }
 0x3ca   : > { %v3512_v49 = vpop.f32.mrf.mxu3  ;;  %v4276_v23 = vmul.f32 0.16666667, %v4212_v62  ;;  %v4021_v28 = vadd.f32 3.0, %v3957_v40  ;;  %v3401_v3 = vadd.f32 %v3272_v18, %v3161_v2  ;;  %v3035_v7 = vpop.f32.mrf.mxu1  ;;  %v2729_v2 = vrot.slane %v403_v53, 1 }
 0x3cb   : > { %v3162_v6 = vadd.f32 %v3035_v7, %v7568_v43 }
 0x3cc   : > { %v4875_v14 = vpack.c.bf16 %v4276_v23, %v4275_v33  ;;  %v3641_v29 = vadd.f32 %v3512_v49, %v3401_v3  ;;  %v4085_v34 = vmax.f32 %v4021_v28, 0.0  ;;  %v6903_v23 = vsel %vm1203_vm2, %v2727_v32, %v2729_v2 }
 0x3cd   : > { %v3765_v51 = vpop.f32.mrf.mxu0  ;;  %4712 = vmatmul.msk.bf16.gmra.mxu1 %vm569_vm1, %v2859_v44 }
 0x3ce   : > { %4995 = vst [vmem:[%s6649_s6 + $0x48] sm:$0xff] %v4875_v14   ;;  %v3891_v39 = vadd.f32 %v3762_v55, %v3641_v29  ;;  %4744 = vmatmul.msk.bf16.gmra.mxu2 %vm569_vm1, %v6084_v10  ;;  %v4149_v24 = vmin.f32 %v4085_v34, 6.0  ;;  %v5106_v55 = vld [vmem:[%s5287_s11 + $0x840] sm:$0xff] }
 0x3cf   : > { %4776 = vmatmul.msk.bf16.gmra.mxu3 %vm569_vm1, %v7567_v5  ;;  %v7570_v34 = vld [vmem:[#allocation25_spill] sm:$0xff]  ;;  %v7571_v5 = vld [vmem:[#allocation100_spill] sm:$0xff] }
 0x3d0   : > { %4808 = vmatmul.msk.bf16.gmra.mxu0 %vm569_vm1, %v6086_v60  ;;  %v3958_v20 = vadd.f32 %v6605_v45, %v3891_v39  ;;  %v4213_v16 = vmul.f32 %v4149_v24, %v3957_v40  ;;  %v2726_v60 = vrot.slane %v5106_v55, 1 }
 0x3d1   : > { %v3275_v1 = vpop.f32.mrf.mxu2 }
 0x3d2   : > { %v3515_v44 = vpop.f32.mrf.mxu3  ;;  %v4022_v54 = vadd.f32 3.0, %v3958_v20  ;;  %v3402_v25 = vadd.f32 %v3275_v1, %v3162_v6  ;;  %v3037_v13 = vpop.f32.mrf.mxu1  ;;  %v4277_v42 = vmul.f32 0.16666667, %v4213_v16  ;;  %v6900_v33 = vsel %vm1203_vm2, %v2726_v60, %v2727_v32  ;;  %v406_v60 = vld [vmem:[%s5287_s11 + $0x868] sm:$0x1] }
 0x3d3   : > { %v3163_v58 = vadd.f32 %v3037_v13, %v7569_v21  ;;  %v2862_v14 = vpack.c.bf16 %v6903_v23, %v6900_v33 }
 0x3d4   : > { %v4086_v10 = vmax.f32 %v4022_v54, 0.0  ;;  %v3642_v0 = vadd.f32 %v3515_v44, %v3402_v25 }
 0x3d5   : > { %v3767_v31 = vpop.f32.mrf.mxu0 }
 0x3d6   : > { %v4150_v30 = vmin.f32 %v4086_v10, 6.0  ;;  %v3892_v19 = vadd.f32 %v3765_v51, %v3642_v0  ;;  %v5108_v10 = vld [vmem:[%s5287_s11 + $0x858] sm:$0xff]  ;;  %v5109_v0 = vld [vmem:[%s5287_s11 + $0x860] sm:$0xff] }
 0x3d8   : > { %v4214_v15 = vmul.f32 %v4150_v30, %v3958_v20  ;;  %v3959_v61 = vadd.f32 %v6605_v45, %v3892_v19  ;;  %v7572_v19 = vld [vmem:[#allocation101_spill] sm:$0xff] }
 0x3d9   : > { %v3277_v62 = vpop.f32.mrf.mxu2 }
 0x3da   : > { %v3517_v17 = vpop.f32.mrf.mxu3  ;;  %v4278_v18 = vmul.f32 0.16666667, %v4214_v15  ;;  %v4023_v49 = vadd.f32 3.0, %v3959_v61  ;;  %v3403_v40 = vadd.f32 %v3277_v62, %v3163_v58  ;;  %v3040_v56 = vpop.f32.mrf.mxu1  ;;  %v2734_v15 = vrot.slane %v406_v60, 1 }
 0x3db   : > { %v3164_v50 = vadd.f32 %v3040_v56, %v7571_v5 }
 0x3dc   : > { %v4880_v28 = vpack.c.bf16 %v4278_v18, %v4277_v42  ;;  %v3643_v3 = vadd.f32 %v3517_v17, %v3403_v40  ;;  %v4087_v29 = vmax.f32 %v4023_v49, 0.0 }
 0x3dd   : > { %v3770_v7 = vpop.f32.mrf.mxu0  ;;  %4713 = vmatmul.msk.bf16.gmra.mxu1 %vm569_vm1, %v2860_v57 }
 0x3de   : > { %4996 = vst [vmem:[%s6649_s6 + $0x50] sm:$0xff] %v4880_v28   ;;  %v3893_v51 = vadd.f32 %v3767_v31, %v3643_v3  ;;  %4745 = vmatmul.msk.bf16.gmra.mxu2 %vm569_vm1, %v6109_v36  ;;  %v4151_v20 = vmin.f32 %v4087_v29, 6.0  ;;  %v2732_v31 = vrot.slane %v5109_v0, 1  ;;  %v7573_v28 = vld [vmem:[#allocation29_spill] sm:$0xff] }
 0x3df   : > { %4777 = vmatmul.msk.bf16.gmra.mxu3 %vm569_vm1, %v7570_v34  ;;  %v6947_v3 = vld [vmem:[%s7279_s2] ss:$0 sm:$0xff] }
 0x3e0   : > { %4809 = vmatmul.msk.bf16.gmra.mxu0 %vm569_vm1, %v6111_v9  ;;  %v3960_v39 = vadd.f32 %v6605_v45, %v3893_v51  ;;  %v4215_v54 = vmul.f32 %v4151_v20, %v3959_v61  ;;  %v2731_v9 = vrot.slane %v5108_v10, 1  ;;  %v6929_v2 = vsel %vm1203_vm2, %v2732_v31, %v2734_v15 }
 0x3e1   : > { %v3280_v12 = vpop.f32.mrf.mxu2 }
 0x3e2   : > { %v3520_v57 = vpop.f32.mrf.mxu3  ;;  %v4024_v43 = vadd.f32 3.0, %v3960_v39  ;;  %v3404_v6 = vadd.f32 %v3280_v12, %v3164_v50  ;;  %v3042_v1 = vpop.f32.mrf.mxu1  ;;  %v4279_v21 = vmul.f32 0.16666667, %v4215_v54  ;;  %v6926_v17 = vsel %vm1203_vm2, %v2731_v9, %v2732_v31  ;;  %v7575_v54 = vld [vmem:[#allocation103_spill] sm:$0xff] }
 0x3e3   : > { %v3165_v55 = vadd.f32 %v3042_v1, %v7572_v19  ;;  %v2863_v49 = vpack.c.bf16 %v6929_v2, %v6926_v17  ;;  %v5112_v1 = vld [vmem:[%s5287_s11 + $0x878] sm:$0xff] }
 0x3e4   : > { %v4088_v36 = vmax.f32 %v4024_v43, 0.0  ;;  %v3644_v44 = vadd.f32 %v3520_v57, %v3404_v6  ;;  %v5111_v43 = vld [vmem:[%s5287_s11 + $0x870] sm:$0xff] }
 0x3e5   : > { %v3772_v24 = vpop.f32.mrf.mxu0  ;;  %v2736_v6 = vrot.slane %v5111_v43, 1 }
 0x3e6   : > { %v4152_v25 = vmin.f32 %v4088_v36, 6.0  ;;  %v3894_v13 = vadd.f32 %v3770_v7, %v3644_v44  ;;  %v2737_v36 = vrot.slane %v5112_v1, 1 }
 0x3e8   : > { %v4216_v16 = vmul.f32 %v4152_v25, %v3960_v39  ;;  %v3961_v30 = vadd.f32 %v6605_v45, %v3894_v13  ;;  %v409_v13 = vld [vmem:[%s5287_s11 + $0x880] sm:$0x1]  ;;  %v6957_v60 = vsel %vm1203_vm2, %v2736_v6, %v2737_v36 }
 0x3e9   : > { %v3282_v37 = vpop.f32.mrf.mxu2  ;;  %v2739_v0 = vrot.slane %v409_v13, 1 }
 0x3ea   : > { %v3522_v32 = vpop.f32.mrf.mxu3  ;;  %v4280_v58 = vmul.f32 0.16666667, %v4216_v16  ;;  %v4025_v53 = vadd.f32 3.0, %v3961_v30  ;;  %v3405_v61 = vadd.f32 %v3282_v37, %v3165_v55  ;;  %v3045_v62 = vpop.f32.mrf.mxu1 }
 0x3eb   : > { %v6960_v37 = vsel %vm1203_vm2, %v2737_v36, %v2739_v0 }
 0x3ec   : > { %v4885_v42 = vpack.c.bf16 %v4280_v58, %v4279_v21  ;;  %v3645_v45 = vadd.f32 %v3522_v32, %v3405_v61  ;;  %v4089_v40 = vmax.f32 %v4025_v53, 0.0  ;;  %v2864_v58 = vpack.c.bf16 %v6960_v37, %v6957_v60 }
 0x3ed   : > { %v3775_v18 = vpop.f32.mrf.mxu0  ;;  %4714 = vmatmul.msk.bf16.gmra.mxu1 %vm569_vm1, %v2861_v27  ;;  %v3166_v27 = vadd.f32 %v3045_v62, %v7574_v52  ;;  %v7576_v62 = vld [vmem:[#allocation35_spill] sm:$0xff] }
 0x3ee   : > { %4997 = vst [vmem:[%s6649_s6 + $0x58] sm:$0xff] %v4885_v42   ;;  %v3895_v56 = vadd.f32 %v3772_v24, %v3645_v45  ;;  %4746 = vmatmul.msk.bf16.gmra.mxu2 %vm569_vm1, %v6134_v11  ;;  %v4153_v11 = vmin.f32 %v4089_v40, 6.0  ;;  %v7577_v45 = vld [vmem:[#allocation104_spill] sm:$0xff] }
 0x3ef   : > { %4778 = vmatmul.msk.bf16.gmra.mxu3 %vm569_vm1, %v7573_v28 }
 0x3f0   : > { %4810 = vmatmul.msk.bf16.gmra.mxu0 %vm569_vm1, %v6136_v22  ;;  %v3962_v4 = vadd.f32 %v6947_v3, %v3895_v56  ;;  %v4217_v12 = vmul.f32 %v4153_v11, %v3961_v30  ;;  %v5113_v11 = vld [vmem:[%s5287_s11 + $0x888] sm:$0xff] }
 0x3f1   : > { %v3285_v7 = vpop.f32.mrf.mxu2 }
 0x3f2   : > { %v3525_v29 = vpop.f32.mrf.mxu3  ;;  %v4026_v51 = vadd.f32 3.0, %v3962_v4  ;;  %v3406_v34 = vadd.f32 %v3285_v7, %v3166_v27  ;;  %v3047_v39 = vpop.f32.mrf.mxu1  ;;  %v4281_v31 = vmul.f32 0.16666667, %v4217_v12  ;;  %v412_v12 = vld [vmem:[%s5287_s11 + $0x898] sm:$0x1] }
 0x3f3   : > { %v3167_v25 = vadd.f32 %v3047_v39, %v7575_v54  ;;  %v2744_v43 = vrot.slane %v412_v12, 1 }
 0x3f4   : > { %v4090_v5 = vmax.f32 %v4026_v51, 0.0  ;;  %v3646_v22 = vadd.f32 %v3525_v29, %v3406_v34  ;;  %v5114_v51 = vld [vmem:[%s5287_s11 + $0x890] sm:$0xff] }
 0x3f5   : > { %v3777_v50 = vpop.f32.mrf.mxu0  ;;  %v2742_v34 = vrot.slane %v5114_v51, 1 }
 0x3f6   : > { %v4154_v57 = vmin.f32 %v4090_v5, 6.0  ;;  %v3896_v20 = vadd.f32 %v3775_v18, %v3646_v22  ;;  %v7578_v22 = vld [vmem:[#allocation105_spill] sm:$0xff] }
 0x3f8   : > { %v4218_v44 = vmul.f32 %v4154_v57, %v3962_v4  ;;  %v3963_v24 = vadd.f32 %v6947_v3, %v3896_v20 }
 0x3f9   : > { %v3287_v10 = vpop.f32.mrf.mxu2 }
 0x3fa   : > { %v3527_v9 = vpop.f32.mrf.mxu3  ;;  %v4282_v16 = vmul.f32 0.16666667, %v4218_v44  ;;  %v4027_v19 = vadd.f32 3.0, %v3963_v24  ;;  %v3407_v30 = vadd.f32 %v3287_v10, %v3167_v25  ;;  %v3050_v55 = vpop.f32.mrf.mxu1  ;;  %v6986_v25 = vsel %vm1203_vm2, %v2742_v34, %v2744_v43 }
 0x3fb   : > { %v3168_v33 = vadd.f32 %v3050_v55, %v7577_v45  ;;  %v7580_v55 = vld [vmem:[#allocation106_spill] sm:$0xff] }
 0x3fc   : > { %v4890_v32 = vpack.c.bf16 %v4282_v16, %v4281_v31  ;;  %v3647_v15 = vadd.f32 %v3527_v9, %v3407_v30  ;;  %v4091_v53 = vmax.f32 %v4027_v19, 0.0  ;;  %v7579_v19 = vld [vmem:[#allocation7_spill] sm:$0xff] }
 0x3fd   : > { %v3780_v21 = vpop.f32.mrf.mxu0  ;;  %4715 = vmatmul.msk.bf16.gmra.mxu1 %vm569_vm1, %v2862_v14 }
 0x3fe   : > { %4998 = vst [vmem:[%s6649_s6 + $0x60] sm:$0xff] %v4890_v32   ;;  %v3897_v61 = vadd.f32 %v3777_v50, %v3647_v15  ;;  %4747 = vmatmul.msk.bf16.gmra.mxu2 %vm569_vm1, %v6159_v38  ;;  %v4155_v18 = vmin.f32 %v4091_v53, 6.0 }
 0x3ff   : > { %4779 = vmatmul.msk.bf16.gmra.mxu3 %vm569_vm1, %v7576_v62 }
 0x400   : > { %4811 = vmatmul.msk.bf16.gmra.mxu0 %vm569_vm1, %v6161_v35  ;;  %v3964_v42 = vadd.f32 %v6947_v3, %v3897_v61  ;;  %v4219_v27 = vmul.f32 %v4155_v18, %v3963_v24  ;;  %v2741_v35 = vrot.slane %v5113_v11, 1 }
 0x401   : > { %v3290_v23 = vpop.f32.mrf.mxu2 }
 0x402   : > { %v3530_v14 = vpop.f32.mrf.mxu3  ;;  %v4028_v40 = vadd.f32 3.0, %v3964_v42  ;;  %v3408_v56 = vadd.f32 %v3290_v23, %v3168_v33  ;;  %v3052_v28 = vpop.f32.mrf.mxu1  ;;  %v4283_v6 = vmul.f32 0.16666667, %v4219_v27  ;;  %v6983_v54 = vsel %vm1203_vm2, %v2741_v35, %v2742_v34  ;;  %v5115_v23 = vld [vmem:[%s5287_s11 + $0x8a0] sm:$0xff] }
 0x403   : > { %v3169_v50 = vadd.f32 %v3052_v28, %v7578_v22  ;;  %v2865_v0 = vpack.c.bf16 %v6986_v25, %v6983_v54  ;;  %v7581_v28 = vld [vmem:[#allocation107_spill] sm:$0xff] }
 0x404   : > { %v4092_v38 = vmax.f32 %v4028_v40, 0.0  ;;  %v3648_v4 = vadd.f32 %v3530_v14, %v3408_v56  ;;  %v5116_v14 = vld [vmem:[%s5287_s11 + $0x8a8] sm:$0xff] }
 0x405   : > { %v3782_v52 = vpop.f32.mrf.mxu0  ;;  %v2747_v18 = vrot.slane %v5116_v14, 1 }
 0x406   : > { %v4156_v7 = vmin.f32 %v4092_v38, 6.0  ;;  %v3898_v29 = vadd.f32 %v3780_v21, %v3648_v4  ;;  %v415_v4 = vld [vmem:[%s5287_s11 + $0x8b0] sm:$0x1] }
 0x408   : > { %v4220_v39 = vmul.f32 %v4156_v7, %v3964_v42  ;;  %v3965_v5 = vadd.f32 %v6947_v3, %v3898_v29  ;;  %v2749_v7 = vrot.slane %v415_v4, 1 }
 0x409   : > { %v3292_v57 = vpop.f32.mrf.mxu2 }
 0x40a   : > { %v3532_v20 = vpop.f32.mrf.mxu3  ;;  %v4284_v1 = vmul.f32 0.16666667, %v4220_v39  ;;  %v4029_v36 = vadd.f32 3.0, %v3965_v5  ;;  %v3409_v44 = vadd.f32 %v3292_v57, %v3169_v50  ;;  %v3055_v24 = vpop.f32.mrf.mxu1 }
 0x40b   : > { %v3170_v17 = vadd.f32 %v3055_v24, %v7580_v55  ;;  %v5117_v55 = vld [vmem:[%s5287_s11 + $0x8b8] sm:$0xff] }
 0x40c   : > { %v4895_v13 = vpack.c.bf16 %v4284_v1, %v4283_v6  ;;  %v3649_v10 = vadd.f32 %v3532_v20, %v3409_v44  ;;  %v4093_v31 = vmax.f32 %v4029_v36, 0.0  ;;  %v7582_v6 = vld [vmem:[#allocation10_spill] sm:$0xff]  ;;  %v7583_v36 = vld [vmem:[#allocation108_spill] sm:$0xff] }
 0x40d   : > { %v3785_v9 = vpop.f32.mrf.mxu0  ;;  %4716 = vmatmul.msk.bf16.gmra.mxu1 %vm569_vm1, %v2863_v49 }
 0x40e   : > { %4999 = vst [vmem:[%s6649_s6 + $0x68] sm:$0xff] %v4895_v13   ;;  %v3899_v16 = vadd.f32 %v3782_v52, %v3649_v10  ;;  %4748 = vmatmul.msk.bf16.gmra.mxu2 %vm569_vm1, %v6184_v59  ;;  %v4157_v32 = vmin.f32 %v4093_v31, 6.0 }
 0x40f   : > { %4780 = vmatmul.msk.bf16.gmra.mxu3 %vm569_vm1, %v7579_v19 }
 0x410   : > { %4812 = vmatmul.msk.bf16.gmra.mxu0 %vm569_vm1, %v6186_v46  ;;  %v3966_v30 = vadd.f32 %v6947_v3, %v3899_v16  ;;  %v4221_v42 = vmul.f32 %v4157_v32, %v3965_v5  ;;  %v2746_v46 = vrot.slane %v5115_v23, 1  ;;  %v7012_v5 = vsel %vm1203_vm2, %v2747_v18, %v2749_v7 }
 0x411   : > { %v3295_v2 = vpop.f32.mrf.mxu2 }
 0x412   : > { %v3535_v49 = vpop.f32.mrf.mxu3  ;;  %v4030_v15 = vadd.f32 3.0, %v3966_v30  ;;  %v3410_v21 = vadd.f32 %v3295_v2, %v3170_v17  ;;  %v3057_v53 = vpop.f32.mrf.mxu1  ;;  %v4285_v29 = vmul.f32 0.16666667, %v4221_v42  ;;  %v7009_v39 = vsel %vm1203_vm2, %v2746_v46, %v2747_v18  ;;  %v5118_v17 = vld [vmem:[%s5287_s11 + $0x8c0] sm:$0xff] }
 0x413   : > { %v3171_v38 = vadd.f32 %v3057_v53, %v7581_v28  ;;  %v2866_v57 = vpack.c.bf16 %v7012_v5, %v7009_v39  ;;  %v2752_v2 = vrot.slane %v5118_v17, 1  ;;  %v418_v53 = vld [vmem:[%s5287_s11 + $0x8c8] sm:$0x1] }
 0x414   : > { %v4094_v59 = vmax.f32 %v4030_v15, 0.0  ;;  %v3650_v61 = vadd.f32 %v3535_v49, %v3410_v21  ;;  %v7584_v15 = vld [vmem:[#allocation109_spill] sm:$0xff] }
 0x415   : > { %v3787_v62 = vpop.f32.mrf.mxu0 }
 0x416   : > { %v4158_v45 = vmin.f32 %v4094_v59, 6.0  ;;  %v3900_v33 = vadd.f32 %v3785_v9, %v3650_v61 }
 0x418   : > { %v4222_v40 = vmul.f32 %v4158_v45, %v3966_v30  ;;  %v3967_v56 = vadd.f32 %v6947_v3, %v3900_v33 }
 0x419   : > { %v3297_v52 = vpop.f32.mrf.mxu2 }
 0x41a   : > { %v3537_v27 = vpop.f32.mrf.mxu3  ;;  %v4286_v11 = vmul.f32 0.16666667, %v4222_v40  ;;  %v4031_v35 = vadd.f32 3.0, %v3967_v56  ;;  %v3411_v51 = vadd.f32 %v3297_v52, %v3171_v38  ;;  %v3060_v34 = vpop.f32.mrf.mxu1 }
 0x41b   : > { %v3172_v60 = vadd.f32 %v3060_v34, %v7583_v36 }
 0x41c   : > { %v4900_v22 = vpack.c.bf16 %v4286_v11, %v4285_v29  ;;  %v3651_v50 = vadd.f32 %v3537_v27, %v3411_v51  ;;  %v4095_v20 = vmax.f32 %v4031_v35, 0.0  ;;  %v7585_v27 = vld [vmem:[#allocation14_spill] sm:$0xff] }
 0x41d   : > { %v3790_v12 = vpop.f32.mrf.mxu0  ;;  %4717 = vmatmul.msk.bf16.gmra.mxu1 %vm569_vm1, %v2864_v58  ;;  %v7586_v29 = vld [vmem:[#allocation110_spill] sm:$0xff] }
 0x41e   : > { %5000 = vst [vmem:[%s6649_s6 + $0x70] sm:$0xff] %v4900_v22   ;;  %v3901_v43 = vadd.f32 %v3787_v62, %v3651_v50  ;;  %4749 = vmatmul.msk.bf16.gmra.mxu2 %vm569_vm1, %v6209_v8  ;;  %v4159_v44 = vmin.f32 %v4095_v20, 6.0  ;;  %v2754_v62 = vrot.slane %v418_v53, 1  ;;  %v7588_v53 = vld [vmem:[#allocation18_spill] sm:$0xff] }
 0x41f   : > { %4781 = vmatmul.msk.bf16.gmra.mxu3 %vm569_vm1, %v7582_v6  ;;  %v5119_v6 = vld [vmem:[%s5287_s11 + $0x8d0] sm:$0xff] }
 0x420   : > { %4813 = vmatmul.msk.bf16.gmra.mxu0 %vm569_vm1, %v6211_v26  ;;  %v3968_v1 = vadd.f32 %v6947_v3, %v3901_v43  ;;  %v4223_v16 = vmul.f32 %v4159_v44, %v3967_v56  ;;  %v2751_v26 = vrot.slane %v5117_v55, 1  ;;  %v7038_v18 = vsel %vm1203_vm2, %v2752_v2, %v2754_v62 }
 0x421   : > { %v3300_v37 = vpop.f32.mrf.mxu2 }
 0x422   : > { %v3540_v58 = vpop.f32.mrf.mxu3  ;;  %v4032_v24 = vadd.f32 3.0, %v3968_v1  ;;  %v3412_v13 = vadd.f32 %v3300_v37, %v3172_v60  ;;  %v3062_v10 = vpop.f32.mrf.mxu1  ;;  %v4287_v42 = vmul.f32 0.16666667, %v4223_v16  ;;  %v7035_v14 = vsel %vm1203_vm2, %v2751_v26, %v2752_v2 }
 0x423   : > { %v3173_v21 = vadd.f32 %v3062_v10, %v7584_v15  ;;  %v2867_v38 = vpack.c.bf16 %v7038_v18, %v7035_v14 }
 0x424   : > { %v4096_v8 = vmax.f32 %v4032_v24, 0.0  ;;  %v3652_v9 = vadd.f32 %v3540_v58, %v3412_v13  ;;  %v7587_v58 = vld [vmem:[#allocation111_spill] sm:$0xff]  ;;  %v421_v24 = vld [vmem:[%s5287_s11 + $0x8e0] sm:$0x1] }
 0x425   : > { %v3792_v31 = vpop.f32.mrf.mxu0 }
 0x426   : > { %v4160_v19 = vmin.f32 %v4096_v8, 6.0  ;;  %v3902_v30 = vadd.f32 %v3790_v12, %v3652_v9  ;;  %v2759_v8 = vrot.slane %v421_v24, 1  ;;  %v7593_v24 = vld [vmem:[#allocation116_spill] sm:$0xff] }
 0x428   : > { %v4224_v49 = vmul.f32 %v4160_v19, %v3968_v1  ;;  %v3969_v32 = vadd.f32 %v6947_v3, %v3902_v30  ;;  %v5120_v1 = vld [vmem:[%s5287_s11 + $0x8d8] sm:$0xff] }
 0x429   : > { %v3302_v59 = vpop.f32.mrf.mxu2  ;;  %v2757_v36 = vrot.slane %v5120_v1, 1 }
 0x42a   : > { %v3542_v61 = vpop.f32.mrf.mxu3  ;;  %v4288_v45 = vmul.f32 0.16666667, %v4224_v49  ;;  %v4033_v33 = vadd.f32 3.0, %v3969_v32  ;;  %v3413_v23 = vadd.f32 %v3302_v59, %v3173_v21  ;;  %v3065_v46 = vpop.f32.mrf.mxu1 }
 0x42b   : > { %v3174_v54 = vadd.f32 %v3065_v46, %v7586_v29  ;;  %v7064_v26 = vsel %vm1203_vm2, %v2757_v36, %v2759_v8 }
 0x42c   : > { %v4905_v40 = vpack.c.bf16 %v4288_v45, %v4287_v42  ;;  %v3653_v56 = vadd.f32 %v3542_v61, %v3413_v23  ;;  %v4097_v4 = vmax.f32 %v4033_v33, 0.0  ;;  %v7589_v61 = vld [vmem:[#allocation112_spill] sm:$0xff] }
 0x42d   : > { %v3795_v28 = vpop.f32.mrf.mxu0  ;;  %4718 = vmatmul.msk.bf16.gmra.mxu1 %vm569_vm1, %v2865_v0 }
 0x42e   : > { %5001 = vst [vmem:[%s6649_s6 + $0x78] sm:$0xff] %v4905_v40   ;;  %v3903_v52 = vadd.f32 %v3792_v31, %v3653_v56  ;;  %4750 = vmatmul.msk.bf16.gmra.mxu2 %vm569_vm1, %v6234_v47  ;;  %v4161_v11 = vmin.f32 %v4097_v4, 6.0  ;;  %v5121_v4 = vld [vmem:[%s5287_s11 + $0x8e8] sm:$0xff] }
 0x42f   : > { %4782 = vmatmul.msk.bf16.gmra.mxu3 %vm569_vm1, %v7585_v27 }
 0x430   : > { %4814 = vmatmul.msk.bf16.gmra.mxu0 %vm569_vm1, %v6236_v48  ;;  %v3970_v7 = vadd.f32 %v6947_v3, %v3903_v52  ;;  %v4225_v12 = vmul.f32 %v4161_v11, %v3969_v32  ;;  %v2756_v48 = vrot.slane %v5119_v6, 1  ;;  %v5122_v52 = vld [vmem:[%s5287_s11 + $0x8f0] sm:$0xff] }
 0x431   : > { %v3305_v25 = vpop.f32.mrf.mxu2  ;;  %v2762_v27 = vrot.slane %v5122_v52, 1 }
 0x432   : > { %v3545_v0 = vpop.f32.mrf.mxu3  ;;  %v4034_v35 = vadd.f32 3.0, %v3970_v7  ;;  %v3414_v51 = vadd.f32 %v3305_v25, %v3174_v54  ;;  %v3067_v34 = vpop.f32.mrf.mxu1  ;;  %v4289_v9 = vmul.f32 0.16666667, %v4225_v12  ;;  %v7061_v55 = vsel %vm1203_vm2, %v2756_v48, %v2757_v36  ;;  %v7590_v54 = vld [vmem:[#allocation113_spill] sm:$0xff] }
 0x433   : > { %v3175_v44 = vadd.f32 %v3067_v34, %v7587_v58  ;;  %v2868_v32 = vpack.c.bf16 %v7064_v26, %v7061_v55  ;;  %v7591_v58 = vld [vmem:[#allocation115_spill] sm:$0xff] }
 0x434   : > { %v4098_v47 = vmax.f32 %v4034_v35, 0.0  ;;  %v3654_v22 = vadd.f32 %v3545_v0, %v3414_v51  ;;  %v424_v0 = vld [vmem:[%s5287_s11 + $0x8f8] sm:$0x1] }
 0x435   : > { %v3797_v50 = vpop.f32.mrf.mxu0  ;;  %v2764_v51 = vrot.slane %v424_v0, 1  ;;  %v7596_v0 = vld [vmem:[#allocation119_spill] sm:$0xff] }
 0x436   : > { %v4162_v20 = vmin.f32 %v4098_v47, 6.0  ;;  %v3904_v43 = vadd.f32 %v3795_v28, %v3654_v22 }
 0x438   : > { %v4226_v60 = vmul.f32 %v4162_v20, %v3970_v7  ;;  %v3971_v37 = vadd.f32 %v6947_v3, %v3904_v43  ;;  %v7090_v43 = vsel %vm1203_vm2, %v2762_v27, %v2764_v51 }
 0x439   : > { %v3307_v13 = vpop.f32.mrf.mxu2 }
 0x43a   : > { %v3547_v10 = vpop.f32.mrf.mxu3  ;;  %v4290_v31 = vmul.f32 0.16666667, %v4226_v60  ;;  %v4035_v16 = vadd.f32 3.0, %v3971_v37  ;;  %v3415_v19 = vadd.f32 %v3307_v13, %v3175_v44  ;;  %v3070_v30 = vpop.f32.mrf.mxu1  ;;  %v7592_v44 = vld [vmem:[#allocation22_spill] sm:$0xff] }
 0x43b   : > { %v3176_v39 = vadd.f32 %v3070_v30, %v7589_v61 }
 0x43c   : > { %v4910_v17 = vpack.c.bf16 %v4290_v31, %v4289_v9  ;;  %v3655_v2 = vadd.f32 %v3547_v10, %v3415_v19  ;;  %v4099_v15 = vmax.f32 %v4035_v16, 0.0  ;;  %v7594_v10 = vld [vmem:[#allocation114_spill] sm:$0xff] }
 0x43d   : > { %v3800_v49 = vpop.f32.mrf.mxu0  ;;  %4719 = vmatmul.msk.bf16.gmra.mxu1 %vm569_vm1, %v2866_v57 }
 0x43e   : > { %5002 = vst [vmem:[%s6649_s6 + $0x80] sm:$0xff] %v4910_v17   ;;  %v3905_v21 = vadd.f32 %v3797_v50, %v3655_v2  ;;  %4751 = vmatmul.msk.bf16.gmra.mxu2 %vm569_vm1, %v6259_v41  ;;  %v4163_v62 = vmin.f32 %v4099_v15, 6.0 }
 0x43f   : > { %4783 = vmatmul.msk.bf16.gmra.mxu3 %vm569_vm1, %v7588_v53 }
 0x440   : > { %4815 = vmatmul.msk.bf16.gmra.mxu0 %vm569_vm1, %v6261_v63  ;;  %v3972_v59 = vadd.f32 %v6947_v3, %v3905_v21  ;;  %v4227_v40 = vmul.f32 %v4163_v62, %v3971_v37  ;;  %v2761_v63 = vrot.slane %v5121_v4, 1  ;;  %v5123_v21 = vld [vmem:[%s5287_s11 + $0x900] sm:$0xff] }
 0x441   : > { %v3310_v5 = vpop.f32.mrf.mxu2  ;;  %v2766_v53 = vrot.slane %v5123_v21, 1 }
 0x442   : > { %v3550_v57 = vpop.f32.mrf.mxu3  ;;  %v4036_v42 = vadd.f32 3.0, %v3972_v59  ;;  %v3416_v45 = vadd.f32 %v3310_v5, %v3176_v39  ;;  %v3072_v33 = vpop.f32.mrf.mxu1  ;;  %v4291_v34 = vmul.f32 0.16666667, %v4227_v40  ;;  %v7087_v20 = vsel %vm1203_vm2, %v2761_v63, %v2762_v27 }
 0x443   : > { %v3177_v25 = vadd.f32 %v3072_v33, %v7590_v54  ;;  %v2869_v36 = vpack.c.bf16 %v7090_v43, %v7087_v20 }
 0x444   : > { %v4100_v41 = vmax.f32 %v4036_v42, 0.0  ;;  %v3656_v23 = vadd.f32 %v3550_v57, %v3416_v45  ;;  %v7595_v57 = vld [vmem:[#allocation117_spill] sm:$0xff]  ;;  %v427_v42 = vld [vmem:[%s5287_s11 + $0x910] sm:$0x1] }
 0x445   : > { %v3802_v46 = vpop.f32.mrf.mxu0 }
 0x446   : > { %v4164_v56 = vmin.f32 %v4100_v41, 6.0  ;;  %v3906_v28 = vadd.f32 %v3800_v49, %v3656_v23  ;;  %v2769_v41 = vrot.slane %v427_v42, 1  ;;  %v7601_v42 = vld [vmem:[#allocation60_spill] sm:$0xff] }
 0x448   : > { %v4228_v7 = vmul.f32 %v4164_v56, %v3972_v59  ;;  %v3973_v29 = vadd.f32 %v6947_v3, %v3906_v28  ;;  %v5124_v59 = vld [vmem:[%s5287_s11 + $0x908] sm:$0xff] }
 0x449   : > { %v3312_v11 = vpop.f32.mrf.mxu2  ;;  %v2767_v61 = vrot.slane %v5124_v59, 1 }
 0x44a   : > { %v3552_v35 = vpop.f32.mrf.mxu3  ;;  %v4292_v47 = vmul.f32 0.16666667, %v4228_v7  ;;  %v4037_v22 = vadd.f32 3.0, %v3973_v29  ;;  %v3417_v50 = vadd.f32 %v3312_v11, %v3177_v25  ;;  %v3075_v12 = vpop.f32.mrf.mxu1  ;;  %v7597_v11 = vld [vmem:[#allocation26_spill] sm:$0xff] }
 0x44b   : > { %v3178_v14 = vadd.f32 %v3075_v12, %v7594_v10  ;;  %v7113_v4 = vsel %vm1203_vm2, %v2766_v53, %v2767_v61  ;;  %v7116_v63 = vsel %vm1203_vm2, %v2767_v61, %v2769_v41 }
 0x44c   : > { %v4915_v6 = vpack.c.bf16 %v4292_v47, %v4291_v34  ;;  %v3657_v48 = vadd.f32 %v3552_v35, %v3417_v50  ;;  %v4101_v60 = vmax.f32 %v4037_v22, 0.0  ;;  %v7598_v35 = vld [vmem:[#allocation120_spill] sm:$0xff]  ;;  %v7599_v34 = vld [vmem:[#allocation118_spill] sm:$0xff] }
 0x44d   : > { %v3805_v1 = vpop.f32.mrf.mxu0  ;;  %4720 = vmatmul.msk.bf16.gmra.mxu1 %vm569_vm1, %v2867_v38 }
 0x44e   : > { %5003 = vst [vmem:[%s6649_s6 + $0x88] sm:$0xff] %v4915_v6   ;;  %v3907_v37 = vadd.f32 %v3802_v46, %v3657_v48  ;;  %4752 = vmatmul.msk.bf16.gmra.mxu2 %vm569_vm1, %v7591_v58  ;;  %v4165_v8 = vmin.f32 %v4101_v60, 6.0 }
 0x44f   : > { %4784 = vmatmul.msk.bf16.gmra.mxu3 %vm569_vm1, %v7592_v44  ;;  %v5125_v44 = vld [vmem:[%s5287_s11 + $0x918] sm:$0xff] }
 0x450   : > { %4816 = vmatmul.msk.bf16.gmra.mxu0 %vm569_vm1, %v7593_v24  ;;  %v3974_v13 = vadd.f32 %v6947_v3, %v3907_v37  ;;  %v4229_v2 = vmul.f32 %v4165_v8, %v3973_v29  ;;  %v2870_v29 = vpack.c.bf16 %v7116_v63, %v7113_v4  ;;  %v2771_v24 = vrot.slane %v5125_v44, 1  ;;  %v7607_v44 = vld [vmem:[#allocation36_spill] sm:$0xff]  ;;  %v267_v4 = vld [vmem:[%s5287_s11 + $0x308] sm:$0xff] }
 0x451   : > { %v3315_v18 = vpop.f32.mrf.mxu2 }
 0x452   : > { %v3555_v38 = vpop.f32.mrf.mxu3  ;;  %v4038_v9 = vadd.f32 3.0, %v3974_v13  ;;  %v3418_v31 = vadd.f32 %v3315_v18, %v3178_v14  ;;  %v3077_v16 = vpop.f32.mrf.mxu1  ;;  %v4293_v23 = vmul.f32 0.16666667, %v4229_v2 }
 0x453   : > { %v3179_v62 = vadd.f32 %v3077_v16, %v7595_v57 }
 0x454   : > { %v4102_v19 = vmax.f32 %v4038_v9, 0.0  ;;  %v3658_v30 = vadd.f32 %v3555_v38, %v3418_v31  ;;  %v7600_v38 = vld [vmem:[#allocation121_spill] sm:$0xff]  ;;  %v430_v9 = vld [vmem:[%s5287_s11 + $0x928] sm:$0x1] }
 0x455   : > { %v3807_v17 = vpop.f32.mrf.mxu0 }
 0x456   : > { %v4166_v49 = vmin.f32 %v4102_v19, 6.0  ;;  %v3908_v15 = vadd.f32 %v3805_v1, %v3658_v30  ;;  %v2774_v19 = vrot.slane %v430_v9, 1 }
 0x458   : > { %v4230_v39 = vmul.f32 %v4166_v49, %v3974_v13  ;;  %v3975_v5 = vadd.f32 %v6947_v3, %v3908_v15  ;;  %v5126_v13 = vld [vmem:[%s5287_s11 + $0x920] sm:$0xff] }
 0x459   : > { %v3317_v45 = vpop.f32.mrf.mxu2  ;;  %v2772_v10 = vrot.slane %v5126_v13, 1 }
 0x45a   : > { %v3557_v33 = vpop.f32.mrf.mxu3  ;;  %v4294_v46 = vmul.f32 0.16666667, %v4230_v39  ;;  %v4039_v40 = vadd.f32 3.0, %v3975_v5  ;;  %v3419_v56 = vadd.f32 %v3317_v45, %v3179_v62  ;;  %v3080_v28 = vpop.f32.mrf.mxu1  ;;  %v7602_v45 = vld [vmem:[#allocation30_spill] sm:$0xff] }
 0x45b   : > { %v3180_v55 = vadd.f32 %v3080_v28, %v7599_v34  ;;  %v7139_v21 = vsel %vm1203_vm2, %v2771_v24, %v2772_v10  ;;  %v7142_v53 = vsel %vm1203_vm2, %v2772_v10, %v2774_v19  ;;  %v7608_v24 = vld [vmem:[#allocation124_spill] sm:$0xff] }
 0x45c   : > { %v4920_v52 = vpack.c.bf16 %v4294_v46, %v4293_v23  ;;  %v3659_v27 = vadd.f32 %v3557_v33, %v3419_v56  ;;  %v4103_v54 = vmax.f32 %v4039_v40, 0.0  ;;  %v7603_v33 = vld [vmem:[#allocation122_spill] sm:$0xff]  ;;  %v7609_v10 = vld [vmem:[#allocation64_spill] sm:$0xff] }
 0x45d   : > { %v3810_v7 = vpop.f32.mrf.mxu0  ;;  %4721 = vmatmul.msk.bf16.gmra.mxu1 %vm569_vm1, %v2868_v32  ;;  %v7604_v23 = vld [vmem:[#allocation58_spill] sm:$0xff] }
 0x45e   : > { %5004 = vst [vmem:[%s6649_s6 + $0x90] sm:$0xff] %v4920_v52   ;;  %v3909_v25 = vadd.f32 %v3807_v17, %v3659_v27  ;;  %4753 = vmatmul.msk.bf16.gmra.mxu2 %vm569_vm1, %v7596_v0  ;;  %v4167_v47 = vmin.f32 %v4103_v54, 6.0 }
 0x45f   : > { %4785 = vmatmul.msk.bf16.gmra.mxu3 %vm569_vm1, %v7597_v11 }
 0x460   : > { %4817 = vmatmul.msk.bf16.gmra.mxu0 %vm569_vm1, %v7598_v35  ;;  %v3976_v51 = vadd.f32 %v6947_v3, %v3909_v25  ;;  %v4231_v60 = vmul.f32 %v4167_v47, %v3975_v5  ;;  %v2871_v5 = vpack.c.bf16 %v7142_v53, %v7139_v21 }
 0x461   : > { %v3320_v26 = vpop.f32.mrf.mxu2 }
 0x462   : > { %v3560_v32 = vpop.f32.mrf.mxu3  ;;  %v4040_v22 = vadd.f32 3.0, %v3976_v51  ;;  %v3420_v50 = vadd.f32 %v3320_v26, %v3180_v55  ;;  %v3082_v12 = vpop.f32.mrf.mxu1  ;;  %v4295_v30 = vmul.f32 0.16666667, %v4231_v60 }
 0x463   : > { %v3181_v8 = vadd.f32 %v3082_v12, %v7600_v38  ;;  %v268_v38 = vld [vmem:[%s5287_s11 + $0x310] sm:$0x1] }
 0x464   : > { %v4104_v6 = vmax.f32 %v4040_v22, 0.0  ;;  %v3660_v48 = vadd.f32 %v3560_v32, %v3420_v50 }
 0x465   : > { %v3812_v1 = vpop.f32.mrf.mxu0 }
 0x466   : > { %v4168_v37 = vmin.f32 %v4104_v6, 6.0  ;;  %v3910_v58 = vadd.f32 %v3810_v7, %v3660_v48 }
 0x468   : > { %v4232_v14 = vmul.f32 %v4168_v37, %v3976_v51  ;;  %v3977_v18 = vadd.f32 %v6947_v3, %v3910_v58  ;;  %v7605_v51 = vld [vmem:[#allocation123_spill] sm:$0xff]  ;;  %v7606_v58 = vld [vmem:[#allocation66_spill] sm:$0xff] }
 0x469   : > { %v3322_v31 = vpop.f32.mrf.mxu2 }
 0x46a   : > { %v3562_v16 = vpop.f32.mrf.mxu3  ;;  %v4296_v17 = vmul.f32 0.16666667, %v4232_v14  ;;  %v4041_v2 = vadd.f32 3.0, %v3977_v18  ;;  %v3421_v49 = vadd.f32 %v3322_v31, %v3181_v8  ;;  %v3085_v15 = vpop.f32.mrf.mxu1 }
 0x46b   : > { %v3182_v46 = vadd.f32 %v3085_v15, %v7604_v23  ;;  %v3690_v15 = vrot.slane %v268_v38, 1 }
 0x46c   : > { %v4925_v59 = vpack.c.bf16 %v4296_v17, %v4295_v30  ;;  %v3661_v61 = vadd.f32 %v3562_v16, %v3421_v49  ;;  %v4105_v57 = vmax.f32 %v4041_v2, 0.0  ;;  %v3688_v30 = vrot.slane %v267_v4, 1 }
 0x46d   : > { %v3815_v39 = vpop.f32.mrf.mxu0  ;;  %4722 = vmatmul.msk.bf16.gmra.mxu1 %vm569_vm1, %v2869_v36 }
 0x46e   : > { %5005 = vst [vmem:[%s6649_s6 + $0x98] sm:$0xff] %v4925_v59   ;;  %v3911_v62 = vadd.f32 %v3812_v1, %v3661_v61  ;;  %4754 = vmatmul.msk.bf16.gmra.mxu2 %vm569_vm1, %v7601_v42  ;;  %v4169_v43 = vmin.f32 %v4105_v57, 6.0  ;;  %v333_v57 = vld [vmem:[%s5287_s11 + $0x618] sm:$0xff] }
 0x46f   : > { %4786 = vmatmul.msk.bf16.gmra.mxu3 %vm569_vm1, %v7602_v45 }
 0x470   : > { %4818 = vmatmul.msk.bf16.gmra.mxu0 %vm569_vm1, %v7603_v33  ;;  %v3978_v41 = vadd.f32 %v6947_v3, %v3911_v62  ;;  %v4233_v54 = vmul.f32 %v4169_v43, %v3977_v18  ;;  %v266_v18 = vld [vmem:[%s5287_s11 + $0x300] sm:$0xff] }
 0x471   : > { %v3325_v40 = vpop.f32.mrf.mxu2  ;;  %v3687_v19 = vrot.slane %v266_v18, 1  ;;  %v334_v62 = vld [vmem:[%s5287_s11 + $0x620] sm:$0xff]  ;;  %v3204_v43 = vpack.c.bf16 %v267_v4, %v266_v18  ;;  %s4826_s11 = sshll.u32 %s5235_s16, 8 }
 0x472   : > { %v3565_v20 = vpop.f32.mrf.mxu3  ;;  %v4042_v36 = vadd.f32 3.0, %v3978_v41  ;;  %v3422_v56 = vadd.f32 %v3325_v40, %v3182_v46  ;;  %v3087_v28 = vpop.f32.mrf.mxu1  ;;  %v4297_v32 = vmul.f32 0.16666667, %v4233_v54  ;;  %v3691_v46 = vsel %vm1203_vm2, %v3688_v30, %v3690_v15  ;;  %s4461_s20 = scalar_lea.hbm %s7280_s3, %s4826_s11 }
 0x473   : > { %v3183_v34 = vadd.f32 %v3087_v28, %v7605_v51  ;;  %v3689_v42 = vsel %vm1203_vm2, %v3687_v19, %v3688_v30  ;;  %v7613_v30 = vld [vmem:[#allocation33_spill] sm:$0xff]  ;;  %s4464_s25 = sshll.u32 %s4461_s20, 4  ;;  %s4465_s25 = int_to_ptr.hbm [resolvable:$true] %s4464_s25 }
 0x474   : > { %v4106_v52 = vmax.f32 %v4042_v36, 0.0  ;;  %v3662_v27 = vadd.f32 %v3565_v20, %v3422_v56  ;;  %v3444_v36 = vpack.c.bf16 %v334_v62, %v333_v57  ;;  %v3694_v54 = vpack.c.bf16 %v3691_v46, %v3689_v42  ;;  %s5142_s16 = sshra.s32 %s4465_s25, 4  ;;  %s5143_s16 = int_to_ptr.hbm [resolvable:$true] %s5142_s16 }
 0x475   : > { %v3817_v7 = vpop.f32.mrf.mxu0  ;;  %s5144_s27 = scalar_lea.hbm %s5143_s16, 256  ;;  %p5149_p0 = scmp.lt.s32.totalorder %s5143_s16, %s7280_s3 }
 0x476   : > { %v4170_v25 = vmin.f32 %v4106_v52, 6.0  ;;  %v3912_v0 = vadd.f32 %v3815_v39, %v3662_v27  ;;  %p5145_p11 = scmp.ne.s32.totalorder %s5143_s16, %s5144_s27  ;;  %p5150_p1 = scmp.lt.s32.totalorder %s5148_s30, %s5144_s27 }
 0x478   : > { %v4234_v11 = vmul.f32 %v4170_v25, %v3978_v41  ;;  %v3979_v35 = vadd.f32 %v6947_v3, %v3912_v0  ;;  %v7610_v41 = vld [vmem:[#allocation125_spill] sm:$0xff]  ;;  %p5146_p12 = pnand %p5145_p11, %p5252_p5  ;;  %p5151_p2 = por %p5150_p1, %p5149_p0 }
 0x479   : > { %v3327_v55 = vpop.f32.mrf.mxu2 }
 0x47a   : > { %v3567_v26 = vpop.f32.mrf.mxu3  ;;  %v4298_v47 = vmul.f32 0.16666667, %v4234_v11  ;;  %v4043_v22 = vadd.f32 3.0, %v3979_v35  ;;  %v3423_v50 = vadd.f32 %v3327_v55, %v3183_v34  ;;  %v3090_v12 = vpop.f32.mrf.mxu1  ;;  %v7611_v55 = vld [vmem:[#allocation70_spill] sm:$0xff]  ;;  %p5147_p13 = pneg %p5146_p12 }
 0x47b   : > { %v3184_v14 = vadd.f32 %v3090_v12, %v7609_v10 }
 0x47c   : > { %v4930_v6 = vpack.c.bf16 %v4298_v47, %v4297_v32  ;;  %v3663_v48 = vadd.f32 %v3567_v26, %v3423_v50  ;;  %v4107_v60 = vmax.f32 %v4043_v22, 0.0  ;;  %p5152_p3 = pnand %p5151_p2, %p5147_p13 }
 0x47d   : > { %v3820_v1 = vpop.f32.mrf.mxu0  ;;  %4723 = vmatmul.msk.bf16.gmra.mxu1 %vm569_vm1, %v2870_v29 }
 0x47e   : > { %5006 = vst [vmem:[%s6649_s6 + $0xa0] sm:$0xff] %v4930_v6   ;;  %v3913_v37 = vadd.f32 %v3817_v7, %v3663_v48  ;;  %4755 = vmatmul.msk.bf16.gmra.mxu2 %vm569_vm1, %v7606_v58  ;;  %v4171_v8 = vmin.f32 %v4107_v60, 6.0 }
 0x47f   : > { %4787 = vmatmul.msk.bf16.gmra.mxu3 %vm569_vm1, %v7607_v44  ;;  %v7612_v44 = vld [vmem:[#allocation72_spill] sm:$0xff] }
 0x480   : > { %4819 = vmatmul.msk.bf16.gmra.mxu0 %vm569_vm1, %v7608_v24  ;;  %v3980_v13 = vadd.f32 %v6947_v3, %v3913_v37  ;;  %v4235_v59 = vmul.f32 %v4171_v8, %v3979_v35 }
 0x481   : > { %v3330_v63 = vpop.f32.mrf.mxu2 }
 0x482   : > { %v3570_v29 = vpop.f32.mrf.mxu3  ;;  %v4044_v9 = vadd.f32 3.0, %v3980_v13  ;;  %v3424_v31 = vadd.f32 %v3330_v63, %v3184_v14  ;;  %v3092_v16 = vpop.f32.mrf.mxu1  ;;  %v4299_v56 = vmul.f32 0.16666667, %v4235_v59 }
 0x483   : > { %v3185_v23 = vadd.f32 %v3092_v16, %v7610_v41 }
 0x484   : > { %v4108_v17 = vmax.f32 %v4044_v9, 0.0  ;;  %v3664_v2 = vadd.f32 %v3570_v29, %v3424_v31 }
 0x485   : > { %v3822_v49 = vpop.f32.mrf.mxu0 }
 0x486   : > { %v4172_v61 = vmin.f32 %v4108_v17, 6.0  ;;  %v3914_v39 = vadd.f32 %v3820_v1, %v3664_v2 }
 0x488   : > { %v4236_v45 = vmul.f32 %v4172_v61, %v3980_v13  ;;  %v3981_v33 = vadd.f32 %v6947_v3, %v3914_v39 }
 0x489   : > { %v3332_v40 = vpop.f32.mrf.mxu2 }
 0x48a   : > { %v3572_v20 = vpop.f32.mrf.mxu3  ;;  %v4300_v28 = vmul.f32 0.16666667, %v4236_v45  ;;  %v4045_v52 = vadd.f32 3.0, %v3981_v33  ;;  %v3425_v27 = vadd.f32 %v3332_v40, %v3185_v23  ;;  %v3095_v7 = vpop.f32.mrf.mxu1  ;;  %v7614_v40 = vld [vmem:[#allocation32_spill] sm:$0xff] }
 0x48b   : > { %v3186_v26 = vadd.f32 %v3095_v7, %v7611_v55 }
 0x48c   : > { %v4935_v25 = vpack.c.bf16 %v4300_v28, %v4299_v56  ;;  %v3665_v0 = vadd.f32 %v3572_v20, %v3425_v27  ;;  %v4109_v35 = vmax.f32 %v4045_v52, 0.0 }
 0x48d   : > { %v3825_v11 = vpop.f32.mrf.mxu0  ;;  %4724 = vmatmul.msk.bf16.gmra.mxu1 %vm569_vm1, %v2871_v5 }
 0x48e   : > { %5007 = vst [vmem:[%s6649_s6 + $0xa8] sm:$0xff] %v4935_v25   ;;  %v3915_v51 = vadd.f32 %v3822_v49, %v3665_v0  ;;  %4756 = vmatmul.msk.bf16.gmra.mxu2 %vm569_vm1, %v3204_v43  ;;  %v4173_v22 = vmin.f32 %v4109_v35, 6.0 }
 0x48f   : > { %4788 = vmatmul.msk.bf16.gmra.mxu3 %vm569_vm1, %v3444_v36 }
 0x490   : > { %4820 = vmatmul.msk.bf16.gmra.mxu0 %vm569_vm1, %v3694_v54  ;;  %v3982_v34 = vadd.f32 %v6947_v3, %v3915_v51  ;;  %v4237_v48 = vmul.f32 %v4173_v22, %v3981_v33 }
 0x491   : > { %v3335_v32 = vpop.f32.mrf.mxu2 }
 0x492   : > { %v3575_v47 = vpop.f32.mrf.mxu3  ;;  %v4046_v50 = vadd.f32 3.0, %v3982_v34  ;;  %v3426_v21 = vadd.f32 %v3335_v32, %v3186_v26  ;;  %v3097_v53 = vpop.f32.mrf.mxu1  ;;  %v4301_v14 = vmul.f32 0.16666667, %v4237_v48 }
 0x493   : > { %v3187_v24 = vadd.f32 %v3097_v53, %v7612_v44 }
 0x494   : > { %v4110_v5 = vmax.f32 %v4046_v50, 0.0  ;;  %v3666_v12 = vadd.f32 %v3575_v47, %v3426_v21 }
 0x495   : > { %v3827_v6 = vpop.f32.mrf.mxu0 }
 0x496   : > { %v4174_v1 = vmin.f32 %v4110_v5, 6.0  ;;  %v3916_v60 = vadd.f32 %v3825_v11, %v3666_v12 }
 0x498   : > { %v4238_v37 = vmul.f32 %v4174_v1, %v3982_v34  ;;  %v3983_v58 = vadd.f32 %v6947_v3, %v3916_v60  ;;  %v7615_v34 = vld [vmem:[#allocation40_spill] sm:$0xff] }
 0x499   : > { %v3337_v13 = vpop.f32.mrf.mxu2 }
 0x49a   : > { %v3577_v10 = vpop.f32.mrf.mxu3  ;;  %v4302_v18 = vmul.f32 0.16666667, %v4238_v37  ;;  %v4047_v4 = vadd.f32 3.0, %v3983_v58  ;;  %v3427_v63 = vadd.f32 %v3337_v13, %v3187_v24  ;;  %v3100_v29 = vpop.f32.mrf.mxu1 }
 0x49b   : > { %v3188_v17 = vadd.f32 %v3100_v29, %v7613_v30 }
 0x49c   : > { %v4940_v38 = vpack.c.bf16 %v4302_v18, %v4301_v14  ;;  %v3667_v8 = vadd.f32 %v3577_v10, %v3427_v63  ;;  %v4111_v31 = vmax.f32 %v4047_v4, 0.0 }
 0x49d   : > { %v3830_v9 = vpop.f32.mrf.mxu0 }
 0x49e   : > { %5008 = vst [vmem:[%s6649_s6 + $0xb0] sm:$0xff] %v4940_v38   ;;  %v3917_v16 = vadd.f32 %v3827_v6, %v3667_v8  ;;  %v4175_v15 = vmin.f32 %v4111_v31, 6.0 }
 0x4a0   : > { %v3984_v19 = vadd.f32 %v6947_v3, %v3917_v16  ;;  %v4239_v45 = vmul.f32 %v4175_v15, %v3983_v58  ;;  %v7616_v58 = vld [vmem:[#allocation11_spill] sm:$0xff] }
 0x4a1   : > { %v3340_v2 = vpop.f32.mrf.mxu2 }
 0x4a2   : > { %v3580_v49 = vpop.f32.mrf.mxu3  ;;  %v4048_v59 = vadd.f32 3.0, %v3984_v19  ;;  %v3428_v61 = vadd.f32 %v3340_v2, %v3188_v17  ;;  %v3102_v39 = vpop.f32.mrf.mxu1  ;;  %v4303_v56 = vmul.f32 0.16666667, %v4239_v45 }
 0x4a3   : > { %v3189_v20 = vadd.f32 %v3102_v39, %v7614_v40 }
 0x4a4   : > { %v4112_v57 = vmax.f32 %v4048_v59, 0.0  ;;  %v3668_v62 = vadd.f32 %v3580_v49, %v3428_v61 }
 0x4a5   : > { %v3832_v42 = vpop.f32.mrf.mxu0 }
 0x4a6   : > { %v4176_v33 = vmin.f32 %v4112_v57, 6.0  ;;  %v3918_v41 = vadd.f32 %v3830_v9, %v3668_v62 }
 0x4a8   : > { %v4240_v23 = vmul.f32 %v4176_v33, %v3984_v19  ;;  %v3985_v46 = vadd.f32 %v6947_v3, %v3918_v41  ;;  %v7617_v19 = vld [vmem:[#allocation41_spill] sm:$0xff] }
 0x4a9   : > { %v3342_v43 = vpop.f32.mrf.mxu2 }
 0x4aa   : > { %v3582_v36 = vpop.f32.mrf.mxu3  ;;  %v4304_v28 = vmul.f32 0.16666667, %v4240_v23  ;;  %v4049_v52 = vadd.f32 3.0, %v3985_v46  ;;  %v3429_v27 = vadd.f32 %v3342_v43, %v3189_v20  ;;  %v3105_v7 = vpop.f32.mrf.mxu1 }
 0x4ab   : > { %v3190_v55 = vadd.f32 %v3105_v7, %v7615_v34 }
 0x4ac   : > { %v4945_v54 = vpack.c.bf16 %v4304_v28, %v4303_v56  ;;  %v3669_v25 = vadd.f32 %v3582_v36, %v3429_v27  ;;  %v4113_v11 = vmax.f32 %v4049_v52, 0.0 }
 0x4ad   : > { %v3835_v0 = vpop.f32.mrf.mxu0 }
 0x4ae   : > { %5009 = vst [vmem:[%s6649_s6 + $0xb8] sm:$0xff] %v4945_v54   ;;  %v3919_v35 = vadd.f32 %v3832_v42, %v3669_v25  ;;  %v4177_v47 = vmin.f32 %v4113_v11, 6.0 }
 0x4b0   : > { %v3986_v51 = vadd.f32 %v6947_v3, %v3919_v35  ;;  %v4241_v6 = vmul.f32 %v4177_v47, %v3985_v46  ;;  %v7618_v46 = vld [vmem:[#allocation38_spill] sm:$0xff] }
 0x4b1   : > { %v3345_v26 = vpop.f32.mrf.mxu2 }
 0x4b2   : > { %v3585_v32 = vpop.f32.mrf.mxu3  ;;  %v4050_v22 = vadd.f32 3.0, %v3986_v51  ;;  %v3430_v50 = vadd.f32 %v3345_v26, %v3190_v55  ;;  %v3107_v21 = vpop.f32.mrf.mxu1  ;;  %v4305_v10 = vmul.f32 0.16666667, %v4241_v6 }
 0x4b3   : > { %v3191_v44 = vadd.f32 %v3107_v21, %v7616_v58 }
 0x4b4   : > { %v4114_v53 = vmax.f32 %v4050_v22, 0.0  ;;  %v3670_v5 = vadd.f32 %v3585_v32, %v3430_v50 }
 0x4b5   : > { %v3837_v12 = vpop.f32.mrf.mxu0 }
 0x4b6   : > { %v4178_v48 = vmin.f32 %v4114_v53, 6.0  ;;  %v3920_v1 = vadd.f32 %v3835_v0, %v3670_v5 }
 0x4b8   : > { %v4242_v60 = vmul.f32 %v4178_v48, %v3986_v51  ;;  %v3987_v37 = vadd.f32 %v6947_v3, %v3920_v1  ;;  %v7619_v51 = vld [vmem:[#allocation39_spill] sm:$0xff] }
 0x4b9   : > { %v3347_v24 = vpop.f32.mrf.mxu2 }
 0x4ba   : > { %v3587_v13 = vpop.f32.mrf.mxu3  ;;  %v4306_v14 = vmul.f32 0.16666667, %v4242_v60  ;;  %v4051_v18 = vadd.f32 3.0, %v3987_v37  ;;  %v3431_v4 = vadd.f32 %v3347_v24, %v3191_v44  ;;  %v3110_v63 = vpop.f32.mrf.mxu1 }
 0x4bb   : > { %v3192_v30 = vadd.f32 %v3110_v63, %v7617_v19 }
 0x4bc   : > { %v4950_v29 = vpack.c.bf16 %v4306_v14, %v4305_v10  ;;  %v3671_v38 = vadd.f32 %v3587_v13, %v3431_v4  ;;  %v4115_v9 = vmax.f32 %v4051_v18, 0.0 }
 0x4bd   : > { %v3840_v8 = vpop.f32.mrf.mxu0 }
 0x4be   : > { %5010 = vst [vmem:[%s6649_s6 + $0xc0] sm:$0xff] %v4950_v29   ;;  %v3921_v31 = vadd.f32 %v3837_v12, %v3671_v38  ;;  %v4179_v49 = vmin.f32 %v4115_v9, 6.0 }
 0x4c0   : > { %v3988_v16 = vadd.f32 %v6947_v3, %v3921_v31  ;;  %v4243_v42 = vmul.f32 %v4179_v49, %v3987_v37  ;;  %v7211_v3 = vld [vmem:[%s7279_s2] ss:$0 sm:$0xff]  ;;  %v7620_v37 = vld [vmem:[#allocation44_spill] sm:$0xff] }
 0x4c1   : > { %v3350_v17 = vpop.f32.mrf.mxu2 }
 0x4c2   : > { %v3590_v2 = vpop.f32.mrf.mxu3  ;;  %v4052_v15 = vadd.f32 3.0, %v3988_v16  ;;  %v3432_v59 = vadd.f32 %v3350_v17, %v3192_v30  ;;  %v3112_v61 = vpop.f32.mrf.mxu1  ;;  %v4307_v36 = vmul.f32 0.16666667, %v4243_v42 }
 0x4c3   : > { %v3193_v40 = vadd.f32 %v3112_v61, %v7618_v46 }
 0x4c4   : > { %v4116_v39 = vmax.f32 %v4052_v15, 0.0  ;;  %v3672_v57 = vadd.f32 %v3590_v2, %v3432_v59 }
 0x4c5   : > { %v3842_v62 = vpop.f32.mrf.mxu0 }
 0x4c6   : > { %v4180_v45 = vmin.f32 %v4116_v39, 6.0  ;;  %v3922_v33 = vadd.f32 %v3840_v8, %v3672_v57 }
 0x4c8   : > { %v4244_v41 = vmul.f32 %v4180_v45, %v3988_v16  ;;  %v3989_v23 = vadd.f32 %v7211_v3, %v3922_v33  ;;  %v7621_v16 = vld [vmem:[#allocation15_spill] sm:$0xff] }
 0x4c9   : > { %v3352_v20 = vpop.f32.mrf.mxu2 }
 0x4ca   : > { %v3592_v43 = vpop.f32.mrf.mxu3  ;;  %v4308_v56 = vmul.f32 0.16666667, %v4244_v41  ;;  %v4053_v28 = vadd.f32 3.0, %v3989_v23  ;;  %v3433_v52 = vadd.f32 %v3352_v20, %v3193_v40  ;;  %v3115_v27 = vpop.f32.mrf.mxu1 }
 0x4cb   : > { %v3194_v34 = vadd.f32 %v3115_v27, %v7619_v51 }
 0x4cc   : > { %v4955_v7 = vpack.c.bf16 %v4308_v56, %v4307_v36  ;;  %v3673_v54 = vadd.f32 %v3592_v43, %v3433_v52  ;;  %v4117_v0 = vmax.f32 %v4053_v28, 0.0 }
 0x4cd   : > { %v3845_v25 = vpop.f32.mrf.mxu0 }
 0x4ce   : > { %5011 = vst [vmem:[%s6649_s6 + $0xc8] sm:$0xff] %v4955_v7   ;;  %v3923_v11 = vadd.f32 %v3842_v62, %v3673_v54  ;;  %v4181_v32 = vmin.f32 %v4117_v0, 6.0 }
 0x4d0   : > { %v3990_v35 = vadd.f32 %v7211_v3, %v3923_v11  ;;  %v4245_v12 = vmul.f32 %v4181_v32, %v3989_v23  ;;  %v7622_v23 = vld [vmem:[#allocation45_spill] sm:$0xff] }
 0x4d1   : > { %v3355_v55 = vpop.f32.mrf.mxu2 }
 0x4d2   : > { %v3595_v26 = vpop.f32.mrf.mxu3  ;;  %v4054_v47 = vadd.f32 3.0, %v3990_v35  ;;  %v3434_v22 = vadd.f32 %v3355_v55, %v3194_v34  ;;  %v3117_v50 = vpop.f32.mrf.mxu1  ;;  %v4309_v13 = vmul.f32 0.16666667, %v4245_v12 }
 0x4d3   : > { %v3195_v58 = vadd.f32 %v3117_v50, %v7620_v37 }
 0x4d4   : > { %v4118_v21 = vmax.f32 %v4054_v47, 0.0  ;;  %v3674_v53 = vadd.f32 %v3595_v26, %v3434_v22 }
 0x4d5   : > { %v3847_v5 = vpop.f32.mrf.mxu0 }
 0x4d6   : > { %v4182_v6 = vmin.f32 %v4118_v21, 6.0  ;;  %v3924_v48 = vadd.f32 %v3845_v25, %v3674_v53 }
 0x4d8   : > { %v4246_v1 = vmul.f32 %v4182_v6, %v3990_v35  ;;  %v3991_v60 = vadd.f32 %v7211_v3, %v3924_v48  ;;  %v7623_v35 = vld [vmem:[#allocation42_spill] sm:$0xff] }
 0x4d9   : > { %v3357_v44 = vpop.f32.mrf.mxu2 }
 0x4da   : > { %v3597_v24 = vpop.f32.mrf.mxu3  ;;  %v4310_v10 = vmul.f32 0.16666667, %v4246_v1  ;;  %v4055_v14 = vadd.f32 3.0, %v3991_v60  ;;  %v3435_v18 = vadd.f32 %v3357_v44, %v3195_v58  ;;  %v3120_v4 = vpop.f32.mrf.mxu1 }
 0x4db   : > { %v3196_v19 = vadd.f32 %v3120_v4, %v7621_v16 }
 0x4dc   : > { %v4960_v63 = vpack.c.bf16 %v4310_v10, %v4309_v13  ;;  %v3675_v29 = vadd.f32 %v3597_v24, %v3435_v18  ;;  %v4119_v8 = vmax.f32 %v4055_v14, 0.0 }
 0x4dd   : > { %v3850_v38 = vpop.f32.mrf.mxu0 }
 0x4de   : > { %5012 = vst [vmem:[%s6649_s6 + $0xd0] sm:$0xff] %v4960_v63   ;;  %v3925_v9 = vadd.f32 %v3847_v5, %v3675_v29  ;;  %v4183_v2 = vmin.f32 %v4119_v8, 6.0 }
 0x4e0   : > { %v3992_v31 = vadd.f32 %v7211_v3, %v3925_v9  ;;  %v4247_v62 = vmul.f32 %v4183_v2, %v3991_v60  ;;  %v7624_v60 = vld [vmem:[#allocation43_spill] sm:$0xff] }
 0x4e1   : > { %v3360_v30 = vpop.f32.mrf.mxu2 }
 0x4e2   : > { %v3600_v17 = vpop.f32.mrf.mxu3  ;;  %v4056_v49 = vadd.f32 3.0, %v3992_v31  ;;  %v3436_v15 = vadd.f32 %v3360_v30, %v3196_v19  ;;  %v3122_v59 = vpop.f32.mrf.mxu1  ;;  %v4311_v43 = vmul.f32 0.16666667, %v4247_v62 }
 0x4e3   : > { %v3197_v46 = vadd.f32 %v3122_v59, %v7622_v23 }
 0x4e4   : > { %v4120_v61 = vmax.f32 %v4056_v49, 0.0  ;;  %v3676_v39 = vadd.f32 %v3600_v17, %v3436_v15 }
 0x4e5   : > { %v3852_v57 = vpop.f32.mrf.mxu0 }
 0x4e6   : > { %v4184_v42 = vmin.f32 %v4120_v61, 6.0  ;;  %v3926_v45 = vadd.f32 %v3850_v38, %v3676_v39 }
 0x4e8   : > { %v4248_v33 = vmul.f32 %v4184_v42, %v3992_v31  ;;  %v3993_v41 = vadd.f32 %v7211_v3, %v3926_v45  ;;  %v7625_v31 = vld [vmem:[#allocation48_spill] sm:$0xff] }
 0x4e9   : > { %v3362_v40 = vpop.f32.mrf.mxu2 }
 0x4ea   : > { %v3602_v20 = vpop.f32.mrf.mxu3  ;;  %v4312_v36 = vmul.f32 0.16666667, %v4248_v33  ;;  %v4057_v56 = vadd.f32 3.0, %v3993_v41  ;;  %v3437_v28 = vadd.f32 %v3362_v40, %v3197_v46  ;;  %v3125_v52 = vpop.f32.mrf.mxu1  ;;  %v7626_v33 = vld [vmem:[#allocation19_spill] sm:$0xff] }
 0x4eb   : > { %v3198_v51 = vadd.f32 %v3125_v52, %v7623_v35 }
 0x4ec   : > { %v4965_v27 = vpack.c.bf16 %v4312_v36, %v4311_v43  ;;  %v3677_v7 = vadd.f32 %v3602_v20, %v3437_v28  ;;  %v4121_v25 = vmax.f32 %v4057_v56, 0.0 }
 0x4ed   : > { %v3855_v54 = vpop.f32.mrf.mxu0 }
 0x4ee   : > { %5013 = vst [vmem:[%s6649_s6 + $0xd8] sm:$0xff] %v4965_v27   ;;  %v3927_v0 = vadd.f32 %v3852_v57, %v3677_v7  ;;  %v4185_v26 = vmin.f32 %v4121_v25, 6.0 }
 0x4f0   : > { %v3994_v11 = vadd.f32 %v7211_v3, %v3927_v0  ;;  %v4249_v5 = vmul.f32 %v4185_v26, %v3993_v41  ;;  %v7627_v0 = vld [vmem:[#allocation49_spill] sm:$0xff] }
 0x4f1   : > { %v3365_v34 = vpop.f32.mrf.mxu2 }
 0x4f2   : > { %v3605_v55 = vpop.f32.mrf.mxu3  ;;  %v4058_v32 = vadd.f32 3.0, %v3994_v11  ;;  %v3438_v47 = vadd.f32 %v3365_v34, %v3198_v51  ;;  %v3127_v22 = vpop.f32.mrf.mxu1  ;;  %v4313_v24 = vmul.f32 0.16666667, %v4249_v5 }
 0x4f3   : > { %v3199_v37 = vadd.f32 %v3127_v22, %v7624_v60 }
 0x4f4   : > { %v4122_v50 = vmax.f32 %v4058_v32, 0.0  ;;  %v3678_v21 = vadd.f32 %v3605_v55, %v3438_v47 }
 0x4f5   : > { %v3857_v53 = vpop.f32.mrf.mxu0 }
 0x4f6   : > { %v4186_v12 = vmin.f32 %v4122_v50, 6.0  ;;  %v3928_v6 = vadd.f32 %v3855_v54, %v3678_v21 }
 0x4f8   : > { %v4250_v48 = vmul.f32 %v4186_v12, %v3994_v11  ;;  %v3995_v1 = vadd.f32 %v7211_v3, %v3928_v6 }
 0x4f9   : > { %v3367_v58 = vpop.f32.mrf.mxu2 }
 0x4fa   : > { %v3607_v44 = vpop.f32.mrf.mxu3  ;;  %v4314_v13 = vmul.f32 0.16666667, %v4250_v48  ;;  %v4059_v10 = vadd.f32 3.0, %v3995_v1  ;;  %v3439_v14 = vadd.f32 %v3367_v58, %v3199_v37  ;;  %v3130_v18 = vpop.f32.mrf.mxu1  ;;  %v7628_v48 = vld [vmem:[#allocation46_spill] sm:$0xff] }
 0x4fb   : > { %v3200_v16 = vadd.f32 %v3130_v18, %v7625_v31 }
 0x4fc   : > { %v4970_v4 = vpack.c.bf16 %v4314_v13, %v4313_v24  ;;  %v3679_v63 = vadd.f32 %v3607_v44, %v3439_v14  ;;  %v4123_v29 = vmax.f32 %v4059_v10, 0.0 }
 0x4fd   : > { %v3860_v8 = vpop.f32.mrf.mxu0 }
 0x4fe   : > { %5014 = vst [vmem:[%s6649_s6 + $0xe0] sm:$0xff] %v4970_v4   ;;  %v3929_v38 = vadd.f32 %v3857_v53, %v3679_v63  ;;  %v4187_v17 = vmin.f32 %v4123_v29, 6.0 }
 0x500   : > { %v3996_v9 = vadd.f32 %v7211_v3, %v3929_v38  ;;  %v4251_v39 = vmul.f32 %v4187_v17, %v3995_v1 }
 0x501   : > { %v3370_v19 = vpop.f32.mrf.mxu2 }
 0x502   : > { %v3610_v30 = vpop.f32.mrf.mxu3  ;;  %v4060_v2 = vadd.f32 3.0, %v3996_v9  ;;  %v3440_v49 = vadd.f32 %v3370_v19, %v3200_v16  ;;  %v3132_v15 = vpop.f32.mrf.mxu1  ;;  %v4315_v20 = vmul.f32 0.16666667, %v4251_v39 }
 0x503   : > { %v3201_v41 = vadd.f32 %v3132_v15, %v7626_v33 }
 0x504   : > { %v4124_v59 = vmax.f32 %v4060_v2, 0.0  ;;  %v3680_v61 = vadd.f32 %v3610_v30, %v3440_v49 }
 0x505   : > { %v3862_v23 = vpop.f32.mrf.mxu0 }
 0x506   : > { %v4188_v57 = vmin.f32 %v4124_v59, 6.0  ;;  %v3930_v62 = vadd.f32 %v3860_v8, %v3680_v61 }
 0x508   : > { %v4252_v42 = vmul.f32 %v4188_v57, %v3996_v9  ;;  %v3997_v45 = vadd.f32 %v7211_v3, %v3930_v62 }
 0x509   : > { %v3372_v46 = vpop.f32.mrf.mxu2 }
 0x50a   : > { %v3612_v40 = vpop.f32.mrf.mxu3  ;;  %v4316_v43 = vmul.f32 0.16666667, %v4252_v42  ;;  %v4061_v36 = vadd.f32 3.0, %v3997_v45  ;;  %v3441_v56 = vadd.f32 %v3372_v46, %v3201_v41  ;;  %v3135_v28 = vpop.f32.mrf.mxu1 }
 0x50b   : > { %v3202_v11 = vadd.f32 %v3135_v28, %v7627_v0 }
 0x50c   : > { %v4975_v52 = vpack.c.bf16 %v4316_v43, %v4315_v20  ;;  %v3681_v27 = vadd.f32 %v3612_v40, %v3441_v56  ;;  %v4125_v7 = vmax.f32 %v4061_v36, 0.0 }
 0x50d   : > { %v3865_v32 = vpop.f32.mrf.mxu0 }
 0x50e   : > { %5015 = vst [vmem:[%s6649_s6 + $0xe8] sm:$0xff] %v4975_v52   ;;  %v3931_v54 = vadd.f32 %v3862_v23, %v3681_v27  ;;  %v4189_v34 = vmin.f32 %v4125_v7, 6.0 }
 0x510   : > { %v3998_v25 = vadd.f32 %v7211_v3, %v3931_v54  ;;  %v4253_v21 = vmul.f32 %v4189_v34, %v3997_v45 }
 0x511   : > { %v3375_v35 = vpop.f32.mrf.mxu2 }
 0x512   : > { %v3615_v51 = vpop.f32.mrf.mxu3  ;;  %v4062_v55 = vadd.f32 3.0, %v3998_v25  ;;  %v3442_v26 = vadd.f32 %v3375_v35, %v3202_v11  ;;  %v3137_v50 = vpop.f32.mrf.mxu1  ;;  %v4317_v37 = vmul.f32 0.16666667, %v4253_v21 }
 0x513   : > { %v3203_v1 = vadd.f32 %v3137_v50, %v7628_v48 }
 0x514   : > { %v4126_v47 = vmax.f32 %v4062_v55, 0.0  ;;  %v3682_v22 = vadd.f32 %v3615_v51, %v3442_v26 }
 0x515   : > { %v3867_v18 = vpop.f32.mrf.mxu0 }
 0x516   : > { %v4190_v53 = vmin.f32 %v4126_v47, 6.0  ;;  %v3932_v5 = vadd.f32 %v3865_v32, %v3682_v22 }
 0x518   : > { %v4254_v12 = vmul.f32 %v4190_v53, %v3998_v25  ;;  %v3999_v6 = vadd.f32 %v7211_v3, %v3932_v5 }
 0x519   : > { %v3377_v60 = vpop.f32.mrf.mxu2 }
 0x51a   : > { %v4318_v58 = vmul.f32 0.16666667, %v4254_v12  ;;  %v4063_v44 = vadd.f32 3.0, %v3999_v6  ;;  %v3443_v24 = vadd.f32 %v3377_v60, %v3203_v1  ;;  %v3617_v13 = vpop.f32.mrf.mxu3 }
 0x51c   : > { %v4980_v10 = vpack.c.bf16 %v4318_v58, %v4317_v37  ;;  %v3683_v14 = vadd.f32 %v3617_v13, %v3443_v24  ;;  %v4127_v4 = vmax.f32 %v4063_v44, 0.0 }
 0x51e   : > { %5016 = vst [vmem:[%s6649_s6 + $0xf0] sm:$0xff] %v4980_v10   ;;  %v3933_v63 = vadd.f32 %v3867_v18, %v3683_v14  ;;  %v4191_v38 = vmin.f32 %v4127_v4, 6.0 }
 0x520   : > { %v4000_v29 = vadd.f32 %v7211_v3, %v3933_v63  ;;  %v4255_v31 = vmul.f32 %v4191_v38, %v3999_v6 }
 0x522   : > { %v4064_v8 = vadd.f32 3.0, %v4000_v29  ;;  %v4319_v30 = vmul.f32 0.16666667, %v4255_v31 }
 0x524   : > { %v4128_v9 = vmax.f32 %v4064_v8, 0.0 }
 0x526   : > { %v4192_v16 = vmin.f32 %v4128_v9, 6.0 }
 0x528   : > { %v4256_v19 = vmul.f32 %v4192_v16, %v4000_v29 }
 0x52a   : > { %v4320_v17 = vmul.f32 0.16666667, %v4256_v19 }
 0x52c   : > { %v4985_v3 = vpack.c.bf16 %v4320_v17, %v4319_v30 }
 0x52e   : > { %5017 = vst [vmem:[%s6649_s6 + $0xf8] sm:$0xff] %v4985_v3  }
 0x52f   : > { %5155 = shalt.err (!%p5152_p3)
}
 0x530   : > { %s5192_s4 = smov 64   ;;  %s5193_s6 = smov 4  }
 0x531   : > { %5022 = dma.vmem_to_hbm [thread:$0]  (%p5252_p5), %s4463_s24, 4096, %s4465_s25, %s4450_s26, %s5192_s4, %s5192_s4, %s5193_s6  }
 0x532 PF: > { %p5028_p4 = scmp.ge.s32.totalorder %s5190_s15, 2  ;;  %s4479_s8 = sand.u32 1, %s5178_s12  }
 0x533   : > { %s4480_s9 = scalar_lea.sflag [#allocation3], %s4479_s8 }
 0x534   : > { %p5025_p7 = pnand %p5028_p4, %p5256_p6 }
 0x536   : > { %p5026_p8 = pneg %p5025_p7 }
 0x538   : > { %5173 = dma.done.wait (%p5026_p8), %s4480_s9, 4096  }
 0x539   : > { %5175 = vsyncadd (%p5026_p8), %s4480_s9, 4294963200  ;;  %p13_p9 = scmp.ge.s32.totalorder %s5239_s18, 4   ;;  %s7629_s12 = smov %s5182_s13 }
 0x53a   : > { %s7630_s13 = smov %s5186_s14  ;;  %s7631_s14 = smov %s5250_s21 }
 0x53b   : > { %s7632_s15 = smov %s5239_s18  ;;  %15 = sbr.rel (!%p13_p9) target bundleno = 3 (0x3), region = 67 }
 0x540   :  { %4486 = vsyncpa [#allocation3], 1 }
 0x541   :  { %4488 = vsyncpa [#allocation3 + $0x1], 1 }

</bundles_post_ra>
